<compile_context>
chip_gen: v6e
topology: v6e:2x2x1
jax: 0.10.0
libtpu: 0.0.40
codegen_flags: <defaults>
</compile_context>

<pallas_src>
import functools

import jax
import jax.numpy as jnp
import numpy as np
from jax import lax
from jax.experimental import pallas as pl
from jax.experimental.pallas import tpu as pltpu

EPS = 1e-5
LANE = 128


# ------------------------------ small helpers -------------------------------

def _round_up(x, m):
    return (x + m - 1) // m * m


@functools.lru_cache(maxsize=1)
def _vmem_limit():
    """Generation-aware scoped-VMEM limit (headroom on v7x, more on v5e/v6e)."""
    try:
        cap = int(pltpu.get_tpu_info().vmem_capacity_bytes)
    except Exception:                                    # pragma: no cover
        return 48 * 1024 * 1024
    head = 24 * 1024 * 1024
    return max(32 * 1024 * 1024, min(cap - head, 96 * 1024 * 1024))


def _compiler_params():
    return pltpu.CompilerParams(dimension_semantics=("parallel",),
                                vmem_limit_bytes=_vmem_limit())


def _pad_channels(x, cp):
    pad = cp - x.shape[-1]
    if pad == 0:
        return x
    return jnp.pad(x, ((0, 0),) * (x.ndim - 1) + ((0, pad),))


# ------------------------------ kernel bodies --------------------------------

def _conv_taps(src_ref, w_ref, *, k, s, Ho, Wo, Hp):
    """k x k conv (pad=1, stride=s) as k*k shifted MXU matmuls.

    src_ref: (s*s*Hp, Wp, Cin) f32 VMEM view of the zero-padded input;
             parity plane (a, b) = x_pad[a::s, b::s] lives at rows
             [(a*s+b)*Hp, (a*s+b+1)*Hp).
    w_ref:   (k*k, Cin, Cout) bf16 tap weights (VMEM-resident).
    Returns an f32 accumulator of shape (Ho*Wo, Cout).
    """
    # TODO(synk): pack taps along the contraction dim (K >= 256) to fill the
    # 2x256^2 MXU on v6e/v7x and drop the per-tap VPU accumulate.
    cin = src_ref.shape[-1]
    cout = w_ref.shape[-1]
    w = w_ref[...]
    acc = jnp.zeros((Ho * Wo, cout), jnp.float32)
    for kh in range(k):
        for kw in range(k):
            a, qh = kh % s, kh // s
            b, qw = kw % s, kw // s
            base = (a * s + b) * Hp
            xt = src_ref[base + qh:base + qh + Ho, qw:qw + Wo, :]
            xt = xt.reshape(Ho * Wo, cin).astype(jnp.bfloat16)
            acc = acc + jnp.dot(xt, w[kh * k + kw],
                                preferred_element_type=jnp.float32)
    return acc


def _write_stats(st_ref, y):
    # per-channel partial sums for the two-pass BatchNorm (kept in f32)
    st_ref[0:1, :] = jnp.sum(y, axis=0, keepdims=True)
    st_ref[1:2, :] = jnp.sum(y * y, axis=0, keepdims=True)


def _conv1_kernel(planes_ref, w_ref, yraw_ref, st_ref, xpl_ref,
                  *, k, s, Ho, Wo, Hp):
    # One padded image (bf16 in HBM) per grid step; upcast once into an f32
    # VMEM scratch so the shifted sublane-offset tap loads use a 32-bit layout.
    xpl_ref[...] = planes_ref[...].astype(jnp.float32)
    acc = _conv_taps(xpl_ref, w_ref, k=k, s=s, Ho=Ho, Wo=Wo, Hp=Hp)
    yraw_ref[...] = acc.astype(yraw_ref.dtype)          # raw conv out, bf16
    _write_stats(st_ref, acc)


def _conv2_core(y1_ref, a1_ref, c1_ref, w_ref, y2_ref, st2_ref, ypad_ref,
                Ho, Wo):
    # Fused BN1+ReLU apply followed by the 3x3 stride-1 conv.  The 1-pixel
    # halo must stay exactly zero (relu(0*a1+c1) != 0), so the padded scratch
    # is cleared first and only the interior is written.
    ypad_ref[...] = jnp.zeros_like(ypad_ref)
    act = jnp.maximum(
        y1_ref[...].astype(jnp.float32) * a1_ref[...] + c1_ref[...], 0.0)
    ypad_ref[1:Ho + 1, 1:Wo + 1, :] = act
    acc = _conv_taps(ypad_ref, w_ref, k=3, s=1, Ho=Ho, Wo=Wo, Hp=Ho + 2)
    y2_ref[...] = acc.astype(y2_ref.dtype)
    _write_stats(st2_ref, acc)


def _conv2_id_kernel(y1_ref, a1_ref, c1_ref, w_ref,
                     y2_ref, st2_ref, ypad_ref, *, Ho, Wo):
    _conv2_core(y1_ref, a1_ref, c1_ref, w_ref, y2_ref, st2_ref, ypad_ref,
                Ho, Wo)


def _conv2_proj_kernel(y1_ref, a1_ref, c1_ref, w_ref, xs_ref, w3_ref,
                       y2_ref, sc_ref, st2_ref, st3_ref, ypad_ref,
                       *, Ho, Wo):
    _conv2_core(y1_ref, a1_ref, c1_ref, w_ref, y2_ref, st2_ref, ypad_ref,
                Ho, Wo)
    # fused 1x1 stride-s projection shortcut (raw + stats)
    sc = jnp.dot(xs_ref[...], w3_ref[...], preferred_element_type=jnp.float32)
    sc_ref[...] = sc.astype(sc_ref.dtype)
    _write_stats(st3_ref, sc)


def _residual_id_kernel(y2_ref, x_ref, a2_ref, c2_ref, o_ref):
    y = y2_ref[...].astype(jnp.float32) * a2_ref[...] + c2_ref[...]
    o_ref[...] = jnp.maximum(y + x_ref[...].astype(jnp.float32),
                             0.0).astype(o_ref.dtype)


def _residual_proj_kernel(y2_ref, sc_ref, a2_ref, c2_ref, a3_ref, c3_ref,
                          o_ref):
    y = y2_ref[...].astype(jnp.float32) * a2_ref[...] + c2_ref[...]
    sc = sc_ref[...].astype(jnp.float32) * a3_ref[...] + c3_ref[...]
    o_ref[...] = jnp.maximum(y + sc, 0.0).astype(o_ref.dtype)


# ---------------------------- pallas_call wrappers ---------------------------

def _conv1_call(planes, wtaps, *, k, s, Ho, Wo, Hp, Wp):
    n = planes.shape[0]
    cin = planes.shape[-1]
    cout = wtaps.shape[-1]
    p = Ho * Wo
    kern = functools.partial(_conv1_kernel, k=k, s=s, Ho=Ho, Wo=Wo, Hp=Hp)
    return pl.pallas_call(
        kern,
        grid=(n,),
        in_specs=[
            pl.BlockSpec((None, s * s * Hp, Wp, cin), lambda i: (i, 0, 0, 0)),
            pl.BlockSpec((k * k, cin, cout), lambda i: (0, 0, 0)),
        ],
        out_specs=(
            pl.BlockSpec((None, p, cout), lambda i: (i, 0, 0)),
            pl.BlockSpec((None, 2, cout), lambda i: (i, 0, 0)),
        ),
        out_shape=(
            jax.ShapeDtypeStruct((n, p, cout), jnp.bfloat16),
            jax.ShapeDtypeStruct((n, 2, cout), jnp.float32),
        ),
        scratch_shapes=[pltpu.VMEM((s * s * Hp, Wp, cin), jnp.float32)],
        compiler_params=_compiler_params(),
    )(planes, wtaps)


def _conv2_id_call(y1_img, a1, c1, wtaps, *, Ho, Wo):
    n = y1_img.shape[0]
    cp = y1_img.shape[-1]
    p = Ho * Wo
    kern = functools.partial(_conv2_id_kernel, Ho=Ho, Wo=Wo)
    return pl.pallas_call(
        kern,
        grid=(n,),
        in_specs=[
            pl.BlockSpec((None, Ho, Wo, cp), lambda i: (i, 0, 0, 0)),
            pl.BlockSpec((1, cp), lambda i: (0, 0)),
            pl.BlockSpec((1, cp), lambda i: (0, 0)),
            pl.BlockSpec((9, cp, cp), lambda i: (0, 0, 0)),
        ],
        out_specs=(
            pl.BlockSpec((None, p, cp), lambda i: (i, 0, 0)),
            pl.BlockSpec((None, 2, cp), lambda i: (i, 0, 0)),
        ),
        out_shape=(
            jax.ShapeDtypeStruct((n, p, cp), jnp.bfloat16),
            jax.ShapeDtypeStruct((n, 2, cp), jnp.float32),
        ),
        scratch_shapes=[pltpu.VMEM((Ho + 2, Wo + 2, cp), jnp.float32)],
        compiler_params=_compiler_params(),
    )(y1_img, a1, c1, wtaps)


def _conv2_proj_call(y1_img, a1, c1, wtaps, xs, w3, *, Ho, Wo):
    n = y1_img.shape[0]
    cp = y1_img.shape[-1]
    cin_x = xs.shape[-1]
    p = Ho * Wo
    kern = functools.partial(_conv2_proj_kernel, Ho=Ho, Wo=Wo)
    return pl.pallas_call(
        kern,
        grid=(n,),
        in_specs=[
            pl.BlockSpec((None, Ho, Wo, cp), lambda i: (i, 0, 0, 0)),
            pl.BlockSpec((1, cp), lambda i: (0, 0)),
            pl.BlockSpec((1, cp), lambda i: (0, 0)),
            pl.BlockSpec((9, cp, cp), lambda i: (0, 0, 0)),
            pl.BlockSpec((None, p, cin_x), lambda i: (i, 0, 0)),
            pl.BlockSpec((cin_x, cp), lambda i: (0, 0)),
        ],
        out_specs=(
            pl.BlockSpec((None, p, cp), lambda i: (i, 0, 0)),
            pl.BlockSpec((None, p, cp), lambda i: (i, 0, 0)),
            pl.BlockSpec((None, 2, cp), lambda i: (i, 0, 0)),
            pl.BlockSpec((None, 2, cp), lambda i: (i, 0, 0)),
        ),
        out_shape=(
            jax.ShapeDtypeStruct((n, p, cp), jnp.bfloat16),
            jax.ShapeDtypeStruct((n, p, cp), jnp.bfloat16),
            jax.ShapeDtypeStruct((n, 2, cp), jnp.float32),
            jax.ShapeDtypeStruct((n, 2, cp), jnp.float32),
        ),
        scratch_shapes=[pltpu.VMEM((Ho + 2, Wo + 2, cp), jnp.float32)],
        compiler_params=_compiler_params(),
    )(y1_img, a1, c1, wtaps, xs, w3)


def _elementwise_call(kernel, big_inputs, vec_inputs, out_dtype):
    m, cp = big_inputs[0].shape
    tm = min(1024, _round_up(m, 8))
    mp = _round_up(m, tm)
    if mp != m:   # pad to a tile multiple so the tile never collapses to 8 rows
        big_inputs = [jnp.pad(b, ((0, mp - m), (0, 0))) for b in big_inputs]
    big = pl.BlockSpec((tm, cp), lambda i: (i, 0))
    vec = pl.BlockSpec((1, cp), lambda i: (0, 0))
    out = pl.pallas_call(
        kernel,
        grid=(mp // tm,),
        in_specs=[big] * len(big_inputs) + [vec] * len(vec_inputs),
        out_specs=big,
        out_shape=jax.ShapeDtypeStruct((mp, cp), out_dtype),
        compiler_params=_compiler_params(),
    )(*big_inputs, *vec_inputs)
    return out[:m] if mp != m else out


# ------------------------------- JAX glue ------------------------------------

def _make_planes(x_nhwc, k, s):
    """Parity planes of the zero-padded (p=1) input, kept in bf16.

    Returns (N, s*s*Hp, Wp, C) so the in-kernel conv only needs unit-stride
    shifted slices -> no im2col materialization, no strided in-kernel loads.
    """
    _, h, w, _ = x_nhwc.shape
    ho = (h + 2 - k) // s + 1
    wo = (w + 2 - k) // s + 1
    q = (k - 1) // s
    hp, wp = ho + q, wo + q
    xp = jnp.pad(x_nhwc, ((0, 0), (1, 1), (1, 1), (0, 0)))
    planes = []
    for a in range(s):
        for b in range(s):
            pab = xp[:, a::s, b::s, :][:, :hp, :wp, :]
            dh, dw = hp - pab.shape[1], wp - pab.shape[2]
            if dh or dw:
                pab = jnp.pad(pab, ((0, 0), (0, dh), (0, dw), (0, 0)))
            planes.append(pab)
    return jnp.concatenate(planes, axis=1), (ho, wo, hp, wp)


def _wtaps(w_oihw, cin_p, cout_p):
    """OIHW conv weight -> (k*k, Cin_p, Cout_p) bf16 tap matrices."""
    o, i, kh, kw = w_oihw.shape
    m = jnp.transpose(w_oihw, (2, 3, 1, 0)).reshape(kh * kw, i, o)
    m = jnp.pad(m, ((0, 0), (0, cin_p - i), (0, cout_p - o)))
    return m.astype(jnp.bfloat16)


def _bn_affine(stats, gamma, beta, count, cp):
    """Fold training-mode BN (batch mean / biased var) into y*a + c."""
    tot = jnp.sum(stats, axis=0)                          # (2, Cp)
    mean = tot[0] / count
    var = jnp.maximum(tot[1] / count - mean * mean, 0.0)
    g = _pad_channels(gamma.reshape(1, -1), cp)[0]
    b = _pad_channels(beta.reshape(1, -1), cp)[0]
    a = g * lax.rsqrt(var + EPS)
    c = b - mean * a
    return a.reshape(1, cp), c.reshape(1, cp)


def init_residual_params(key, in_ch, out_ch, s):
    add_m = (s != 1) or (in_ch != out_ch)
    keys = jax.random.split(key, 9)

    def conv_w(k, o, i, ks):
        fan_in = i * ks * ks
        return (jax.random.normal(k, (o, i, ks, ks), jnp.float32)
                / np.sqrt(fan_in))

    params = {
        "w1": conv_w(keys[0], out_ch, in_ch, 3),
        "g1": 1.0 + 0.1 * jax.random.normal(keys[1], (out_ch,), jnp.float32),
        "b1": 0.1 * jax.random.normal(keys[2], (out_ch,), jnp.float32),
        "w2": conv_w(keys[3], out_ch, out_ch, 3),
        "g2": 1.0 + 0.1 * jax.random.normal(keys[4], (out_ch,), jnp.float32),
        "b2": 0.1 * jax.random.normal(keys[5], (out_ch,), jnp.float32),
    }
    if add_m:
        params["w3"] = conv_w(keys[6], out_ch, in_ch, 1)
        params["g3"] = 1.0 + 0.1 * jax.random.normal(keys[7], (out_ch,),
                                                     jnp.float32)
        params["b3"] = 0.1 * jax.random.normal(keys[8], (out_ch,), jnp.float32)
    return params, add_m


@functools.partial(jax.jit, static_argnames=("s", "add_m"))
def residual_forward(x_nchw, params, s, add_m):
    x = jnp.transpose(x_nchw, (0, 2, 3, 1)).astype(jnp.float32)     # NHWC
    n, h, w, cin = x.shape
    cout = params["w1"].shape[0]
    cin_p = _round_up(cin, LANE)
    cout_p = _round_up(cout, LANE)

    # lane-dense, bf16 HBM copy of the input (halves all conv-input DMA)
    xq = _pad_channels(x, cin_p).astype(jnp.bfloat16)

    # ---- conv1: 3x3 stride s  (raw bf16 conv output + BN partial stats) ----
    planes1, (ho, wo, hp1, wp1) = _make_planes(xq, 3, s)
    y1_raw, st1 = _conv1_call(planes1, _wtaps(params["w1"], cin_p, cout_p),
                              k=3, s=s, Ho=ho, Wo=wo, Hp=hp1, Wp=wp1)
    m = n * ho * wo
    a1, c1 = _bn_affine(st1, params["g1"], params["b1"], m, cout_p)

    # ---- conv2: BN1+ReLU fused in-kernel, 3x3 stride 1 (+ fused 1x1 proj) ---
    y1_img = y1_raw.reshape(n, ho, wo, cout_p)
    w2 = _wtaps(params["w2"], cout_p, cout_p)
    if add_m:
        xs = xq[:, ::s, ::s, :][:, :ho, :wo, :].reshape(n, ho * wo, cin_p)
        w3 = _wtaps(params["w3"], cin_p, cout_p)[0]
        y2_raw, sc_raw, st2, st3 = _conv2_proj_call(
            y1_img, a1, c1, w2, xs, w3, Ho=ho, Wo=wo)
        a2, c2 = _bn_affine(st2, params["g2"], params["b2"], m, cout_p)
        a3, c3 = _bn_affine(st3, params["g3"], params["b3"], m, cout_p)
        out2d = _elementwise_call(
            _residual_proj_kernel,
            [y2_raw.reshape(m, cout_p), sc_raw.reshape(m, cout_p)],
            [a2, c2, a3, c3], jnp.float32)
    else:
        y2_raw, st2 = _conv2_id_call(y1_img, a1, c1, w2, Ho=ho, Wo=wo)
        a2, c2 = _bn_affine(st2, params["g2"], params["b2"], m, cout_p)
        out2d = _elementwise_call(
            _residual_id_kernel,
            [y2_raw.reshape(m, cout_p), xq.reshape(m, cin_p)],
            [a2, c2], jnp.float32)

    out = out2d.reshape(n, ho, wo, cout_p)[..., :cout]
    return jnp.transpose(out, (0, 3, 1, 2))                         # NCHW


# ----------------------------- pure-JAX reference ----------------------------

def residual_reference(x, params, s, add_m):
    def conv(z, wt, stride, pad):
        return lax.conv_general_dilated(
            z, wt, (stride, stride), [(pad, pad), (pad, pad)],
            dimension_numbers=("NCHW", "OIHW", "NCHW"),
            precision=lax.Precision.HIGHEST)

    def bn(z, g, b):
        mean = jnp.mean(z, axis=(0, 2, 3), keepdims=True)
        var = jnp.mean((z - mean) ** 2, axis=(0, 2, 3), keepdims=True)
        return ((z - mean) / jnp.sqrt(var + EPS)
                * g.reshape(1, -1, 1, 1) + b.reshape(1, -1, 1, 1))

    y = jax.nn.relu(bn(conv(x, params["w1"], s, 1), params["g1"], params["b1"]))
    y = bn(conv(y, params["w2"], 1, 1), params["g2"], params["b2"])
    if add_m:
        sc = bn(conv(x, params["w3"], s, 0), params["g3"], params["b3"])
    else:
        sc = x
    return jax.nn.relu(sc + y)


# ----------------------------------- main ------------------------------------

if __name__ == "__main__":
    key = jax.random.PRNGKey(0)
    k_x1, k_p1, k_x2, k_p2 = jax.random.split(key, 4)
    ok = True
    # Tolerance reflects bf16 MXU operands AND bf16 HBM intermediates
    # (raw conv outputs / activations) vs the f32 HIGHEST-precision reference,
    # compounded through two convs + BN; the BN statistics themselves stay f32.
    ATOL = 1e-1
    RTOL = 1e-1

    # Case 1: projection shortcut (in_ch=4 -> out_ch=8, stride 2)
    x1 = jax.random.normal(k_x1, (2, 4, 16, 16), jnp.float32)
    params1, add_m1 = init_residual_params(k_p1, 4, 8, 2)
    out1 = jax.block_until_ready(residual_forward(x1, params1, s=2,
                                                  add_m=add_m1))
    ref1 = residual_reference(x1, params1, 2, add_m1)
    assert out1.shape == (2, 8, 8, 8)
    ok &= bool(jnp.allclose(out1, ref1, atol=ATOL, rtol=RTOL))

    # Case 2: identity shortcut (in_ch=out_ch=8, stride 1)
    x2 = jax.random.normal(k_x2, (2, 8, 16, 16), jnp.float32)
    params2, add_m2 = init_residual_params(k_p2, 8, 8, 1)
    out2 = jax.block_until_ready(residual_forward(x2, params2, s=1,
                                                  add_m=add_m2))
    ref2 = residual_reference(x2, params2, 1, add_m2)
    assert out2.shape == (2, 8, 16, 16)
    ok &= bool(jnp.allclose(out2, ref2, atol=ATOL, rtol=RTOL))

    if ok:
        print("KERNEL_OK")
    else:
        raise SystemExit("Pallas output mismatch vs pure-JAX reference")
</pallas_src>

<mosaic_0001>
module attributes {stable_mosaic.version = 11 : i64} {
  func.func @_conv1_kernel(%arg0: i32, %arg1: memref<1x36x9x128xbf16, #tpu.memory_space<vmem>>, %arg2: memref<9x128x128xbf16, #tpu.memory_space<vmem>>, %arg3: memref<1x64x128xbf16, #tpu.memory_space<vmem>>, %arg4: memref<1x2x128xf32, #tpu.memory_space<vmem>>, %arg5: memref<36x9x128xf32, #tpu.memory_space<vmem>>) attributes {dimension_semantics = [#tpu.dimension_semantics<parallel>], iteration_bounds = array<i64: 2>, scalar_prefetch = 0 : i64, scratch_operands = 1 : i64, tpu.core_type = #tpu.core_type<tc>, window_params = [{transform_indices = @transform_0, window_bounds = array<i64: 1, 36, 9, 128>}, {pipeline_mode = #tpu.pipeline_mode<synchronous>, transform_indices = @transform_1, window_bounds = array<i64: 9, 128, 128>}, {transform_indices = @transform_2, window_bounds = array<i64: 1, 64, 128>}, {transform_indices = @transform_3, window_bounds = array<i64: 1, 2, 128>}]} {
    %c0 = arith.constant 0 : index
    %c0_0 = arith.constant 0 : index
    %c0_1 = arith.constant 0 : index
    %c0_2 = arith.constant 0 : index
    %0 = vector.load %arg1[%c0, %c0_0, %c0_1, %c0_2] : memref<1x36x9x128xbf16, #tpu.memory_space<vmem>>, vector<1x36x9x128xbf16>
    %1 = vector.shape_cast %0 : vector<1x36x9x128xbf16> to vector<36x9x128xbf16>
    %2 = arith.extf %1 : vector<36x9x128xbf16> to vector<36x9x128xf32>
    %c0_3 = arith.constant 0 : index
    %c0_4 = arith.constant 0 : index
    %c0_5 = arith.constant 0 : index
    %3 = vector.load %arg5[%c0_3, %c0_4, %c0_5] : memref<36x9x128xf32, #tpu.memory_space<vmem>>, vector<36x9x128xf32>
    tpu.vector_store %arg5[%c0_3, %c0_4, %c0_5], %2 {strides = array<i32>} : memref<36x9x128xf32, #tpu.memory_space<vmem>>, vector<36x9x128xf32>,
    %c0_6 = arith.constant 0 : index
    %c0_7 = arith.constant 0 : index
    %c0_8 = arith.constant 0 : index
    %4 = vector.load %arg2[%c0_6, %c0_7, %c0_8] : memref<9x128x128xbf16, #tpu.memory_space<vmem>>, vector<9x128x128xbf16>
    %cst = arith.constant 0.000000e+00 : f32
    %5 = vector.broadcast %cst : f32 to vector<64x128xf32>
    %c0_9 = arith.constant 0 : index
    %c0_10 = arith.constant 0 : index
    %c0_11 = arith.constant 0 : index
    %6 = vector.load %arg5[%c0_9, %c0_10, %c0_11] : memref<36x9x128xf32, #tpu.memory_space<vmem>>, vector<8x8x128xf32>
    %7 = vector.shape_cast %6 : vector<8x8x128xf32> to vector<64x128xf32>
    %8 = arith.truncf %7 : vector<64x128xf32> to vector<64x128xbf16>
    %9 = vector.extract_strided_slice %4 {offsets = [0, 0, 0], sizes = [1, 128, 128], strides = [1, 1, 1]} : vector<9x128x128xbf16> to vector<1x128x128xbf16>
    %10 = vector.shape_cast %9 : vector<1x128x128xbf16> to vector<128x128xbf16>
    %cst_12 = arith.constant dense<0.000000e+00> : vector<64x128xf32>
    %11 = tpu.matmul %8, %10, %cst_12 {dimension_numbers = #tpu.dot_dimension_numbers<[1], [0], [0], [1], [0, 0, 1, 1], [], []>} : vector<64x128xbf16>, vector<128x128xbf16>, vector<64x128xf32> -> vector<64x128xf32>
    %12 = arith.addf %5, %11 : vector<64x128xf32>
    %c9 = arith.constant 9 : index
    %c0_13 = arith.constant 0 : index
    %c0_14 = arith.constant 0 : index
    %13 = vector.load %arg5[%c9, %c0_13, %c0_14] : memref<36x9x128xf32, #tpu.memory_space<vmem>>, vector<8x8x128xf32>
    %14 = vector.shape_cast %13 : vector<8x8x128xf32> to vector<64x128xf32>
    %15 = arith.truncf %14 : vector<64x128xf32> to vector<64x128xbf16>
    %16 = vector.extract_strided_slice %4 {offsets = [1, 0, 0], sizes = [1, 128, 128], strides = [1, 1, 1]} : vector<9x128x128xbf16> to vector<1x128x128xbf16>
    %17 = vector.shape_cast %16 : vector<1x128x128xbf16> to vector<128x128xbf16>
    %cst_15 = arith.constant dense<0.000000e+00> : vector<64x128xf32>
    %18 = tpu.matmul %15, %17, %cst_15 {dimension_numbers = #tpu.dot_dimension_numbers<[1], [0], [0], [1], [0, 0, 1, 1], [], []>} : vector<64x128xbf16>, vector<128x128xbf16>, vector<64x128xf32> -> vector<64x128xf32>
    %19 = arith.addf %12, %18 : vector<64x128xf32>
    %c0_16 = arith.constant 0 : index
    %c1 = arith.constant 1 : index
    %c0_17 = arith.constant 0 : index
    %20 = vector.load %arg5[%c0_16, %c1, %c0_17] : memref<36x9x128xf32, #tpu.memory_space<vmem>>, vector<8x8x128xf32>
    %21 = vector.shape_cast %20 : vector<8x8x128xf32> to vector<64x128xf32>
    %22 = arith.truncf %21 : vector<64x128xf32> to vector<64x128xbf16>
    %23 = vector.extract_strided_slice %4 {offsets = [2, 0, 0], sizes = [1, 128, 128], strides = [1, 1, 1]} : vector<9x128x128xbf16> to vector<1x128x128xbf16>
    %24 = vector.shape_cast %23 : vector<1x128x128xbf16> to vector<128x128xbf16>
    %cst_18 = arith.constant dense<0.000000e+00> : vector<64x128xf32>
    %25 = tpu.matmul %22, %24, %cst_18 {dimension_numbers = #tpu.dot_dimension_numbers<[1], [0], [0], [1], [0, 0, 1, 1], [], []>} : vector<64x128xbf16>, vector<128x128xbf16>, vector<64x128xf32> -> vector<64x128xf32>
    %26 = arith.addf %19, %25 : vector<64x128xf32>
    %c18 = arith.constant 18 : index
    %c0_19 = arith.constant 0 : index
    %c0_20 = arith.constant 0 : index
    %27 = vector.load %arg5[%c18, %c0_19, %c0_20] : memref<36x9x128xf32, #tpu.memory_space<vmem>>, vector<8x8x128xf32>
    %28 = vector.shape_cast %27 : vector<8x8x128xf32> to vector<64x128xf32>
    %29 = arith.truncf %28 : vector<64x128xf32> to vector<64x128xbf16>
    %30 = vector.extract_strided_slice %4 {offsets = [3, 0, 0], sizes = [1, 128, 128], strides = [1, 1, 1]} : vector<9x128x128xbf16> to vector<1x128x128xbf16>
    %31 = vector.shape_cast %30 : vector<1x128x128xbf16> to vector<128x128xbf16>
    %cst_21 = arith.constant dense<0.000000e+00> : vector<64x128xf32>
    %32 = tpu.matmul %29, %31, %cst_21 {dimension_numbers = #tpu.dot_dimension_numbers<[1], [0], [0], [1], [0, 0, 1, 1], [], []>} : vector<64x128xbf16>, vector<128x128xbf16>, vector<64x128xf32> -> vector<64x128xf32>
    %33 = arith.addf %26, %32 : vector<64x128xf32>
    %c27 = arith.constant 27 : index
    %c0_22 = arith.constant 0 : index
    %c0_23 = arith.constant 0 : index
    %34 = vector.load %arg5[%c27, %c0_22, %c0_23] : memref<36x9x128xf32, #tpu.memory_space<vmem>>, vector<8x8x128xf32>
    %35 = vector.shape_cast %34 : vector<8x8x128xf32> to vector<64x128xf32>
    %36 = arith.truncf %35 : vector<64x128xf32> to vector<64x128xbf16>
    %37 = vector.extract_strided_slice %4 {offsets = [4, 0, 0], sizes = [1, 128, 128], strides = [1, 1, 1]} : vector<9x128x128xbf16> to vector<1x128x128xbf16>
    %38 = vector.shape_cast %37 : vector<1x128x128xbf16> to vector<128x128xbf16>
    %cst_24 = arith.constant dense<0.000000e+00> : vector<64x128xf32>
    %39 = tpu.matmul %36, %38, %cst_24 {dimension_numbers = #tpu.dot_dimension_numbers<[1], [0], [0], [1], [0, 0, 1, 1], [], []>} : vector<64x128xbf16>, vector<128x128xbf16>, vector<64x128xf32> -> vector<64x128xf32>
    %40 = arith.addf %33, %39 : vector<64x128xf32>
    %c18_25 = arith.constant 18 : index
    %c1_26 = arith.constant 1 : index
    %c0_27 = arith.constant 0 : index
    %41 = vector.load %arg5[%c18_25, %c1_26, %c0_27] : memref<36x9x128xf32, #tpu.memory_space<vmem>>, vector<8x8x128xf32>
    %42 = vector.shape_cast %41 : vector<8x8x128xf32> to vector<64x128xf32>
    %43 = arith.truncf %42 : vector<64x128xf32> to vector<64x128xbf16>
    %44 = vector.extract_strided_slice %4 {offsets = [5, 0, 0], sizes = [1, 128, 128], strides = [1, 1, 1]} : vector<9x128x128xbf16> to vector<1x128x128xbf16>
    %45 = vector.shape_cast %44 : vector<1x128x128xbf16> to vector<128x128xbf16>
    %cst_28 = arith.constant dense<0.000000e+00> : vector<64x128xf32>
    %46 = tpu.matmul %43, %45, %cst_28 {dimension_numbers = #tpu.dot_dimension_numbers<[1], [0], [0], [1], [0, 0, 1, 1], [], []>} : vector<64x128xbf16>, vector<128x128xbf16>, vector<64x128xf32> -> vector<64x128xf32>
    %47 = arith.addf %40, %46 : vector<64x128xf32>
    %c1_29 = arith.constant 1 : index
    %c0_30 = arith.constant 0 : index
    %c0_31 = arith.constant 0 : index
    %48 = vector.load %arg5[%c1_29, %c0_30, %c0_31] : memref<36x9x128xf32, #tpu.memory_space<vmem>>, vector<8x8x128xf32>
    %49 = vector.shape_cast %48 : vector<8x8x128xf32> to vector<64x128xf32>
    %50 = arith.truncf %49 : vector<64x128xf32> to vector<64x128xbf16>
    %51 = vector.extract_strided_slice %4 {offsets = [6, 0, 0], sizes = [1, 128, 128], strides = [1, 1, 1]} : vector<9x128x128xbf16> to vector<1x128x128xbf16>
    %52 = vector.shape_cast %51 : vector<1x128x128xbf16> to vector<128x128xbf16>
    %cst_32 = arith.constant dense<0.000000e+00> : vector<64x128xf32>
    %53 = tpu.matmul %50, %52, %cst_32 {dimension_numbers = #tpu.dot_dimension_numbers<[1], [0], [0], [1], [0, 0, 1, 1], [], []>} : vector<64x128xbf16>, vector<128x128xbf16>, vector<64x128xf32> -> vector<64x128xf32>
    %54 = arith.addf %47, %53 : vector<64x128xf32>
    %c10 = arith.constant 10 : index
    %c0_33 = arith.constant 0 : index
    %c0_34 = arith.constant 0 : index
    %55 = vector.load %arg5[%c10, %c0_33, %c0_34] : memref<36x9x128xf32, #tpu.memory_space<vmem>>, vector<8x8x128xf32>
    %56 = vector.shape_cast %55 : vector<8x8x128xf32> to vector<64x128xf32>
    %57 = arith.truncf %56 : vector<64x128xf32> to vector<64x128xbf16>
    %58 = vector.extract_strided_slice %4 {offsets = [7, 0, 0], sizes = [1, 128, 128], strides = [1, 1, 1]} : vector<9x128x128xbf16> to vector<1x128x128xbf16>
    %59 = vector.shape_cast %58 : vector<1x128x128xbf16> to vector<128x128xbf16>
    %cst_35 = arith.constant dense<0.000000e+00> : vector<64x128xf32>
    %60 = tpu.matmul %57, %59, %cst_35 {dimension_numbers = #tpu.dot_dimension_numbers<[1], [0], [0], [1], [0, 0, 1, 1], [], []>} : vector<64x128xbf16>, vector<128x128xbf16>, vector<64x128xf32> -> vector<64x128xf32>
    %61 = arith.addf %54, %60 : vector<64x128xf32>
    %c1_36 = arith.constant 1 : index
    %c1_37 = arith.constant 1 : index
    %c0_38 = arith.constant 0 : index
    %62 = vector.load %arg5[%c1_36, %c1_37, %c0_38] : memref<36x9x128xf32, #tpu.memory_space<vmem>>, vector<8x8x128xf32>
    %63 = vector.shape_cast %62 : vector<8x8x128xf32> to vector<64x128xf32>
    %64 = arith.truncf %63 : vector<64x128xf32> to vector<64x128xbf16>
    %65 = vector.extract_strided_slice %4 {offsets = [8, 0, 0], sizes = [1, 128, 128], strides = [1, 1, 1]} : vector<9x128x128xbf16> to vector<1x128x128xbf16>
    %66 = vector.shape_cast %65 : vector<1x128x128xbf16> to vector<128x128xbf16>
    %cst_39 = arith.constant dense<0.000000e+00> : vector<64x128xf32>
    %67 = tpu.matmul %64, %66, %cst_39 {dimension_numbers = #tpu.dot_dimension_numbers<[1], [0], [0], [1], [0, 0, 1, 1], [], []>} : vector<64x128xbf16>, vector<128x128xbf16>, vector<64x128xf32> -> vector<64x128xf32>
    %68 = arith.addf %61, %67 : vector<64x128xf32>
    %69 = arith.truncf %68 : vector<64x128xf32> to vector<64x128xbf16>
    %c0_40 = arith.constant 0 : index
    %c0_41 = arith.constant 0 : index
    %c0_42 = arith.constant 0 : index
    %70 = vector.load %arg3[%c0_40, %c0_41, %c0_42] : memref<1x64x128xbf16, #tpu.memory_space<vmem>>, vector<1x64x128xbf16>
    %71 = vector.shape_cast %70 : vector<1x64x128xbf16> to vector<64x128xbf16>
    %72 = vector.shape_cast %69 : vector<64x128xbf16> to vector<1x64x128xbf16>
    tpu.vector_store %arg3[%c0_40, %c0_41, %c0_42], %72 {strides = array<i32>} : memref<1x64x128xbf16, #tpu.memory_space<vmem>>, vector<1x64x128xbf16>,
    %cst_43 = arith.constant dense<0.000000e+00> : vector<128xf32>
    %73 = vector.multi_reduction <add>, %68, %cst_43 [0] : vector<64x128xf32> to vector<128xf32>
    %74 = vector.shape_cast %73 : vector<128xf32> to vector<1x128xf32>
    %c0_44 = arith.constant 0 : index
    %c0_45 = arith.constant 0 : index
    %c0_46 = arith.constant 0 : index
    %75 = vector.load %arg4[%c0_44, %c0_45, %c0_46] : memref<1x2x128xf32, #tpu.memory_space<vmem>>, vector<1x1x128xf32>
    %76 = vector.shape_cast %75 : vector<1x1x128xf32> to vector<1x128xf32>
    %77 = vector.shape_cast %74 : vector<1x128xf32> to vector<1x1x128xf32>
    tpu.vector_store %arg4[%c0_44, %c0_45, %c0_46], %77 {strides = array<i32>} : memref<1x2x128xf32, #tpu.memory_space<vmem>>, vector<1x1x128xf32>,
    %78 = arith.mulf %68, %68 : vector<64x128xf32>
    %cst_47 = arith.constant dense<0.000000e+00> : vector<128xf32>
    %79 = vector.multi_reduction <add>, %78, %cst_47 [0] : vector<64x128xf32> to vector<128xf32>
    %80 = vector.shape_cast %79 : vector<128xf32> to vector<1x128xf32>
    %c0_48 = arith.constant 0 : index
    %c1_49 = arith.constant 1 : index
    %c0_50 = arith.constant 0 : index
    %81 = vector.load %arg4[%c0_48, %c1_49, %c0_50] : memref<1x2x128xf32, #tpu.memory_space<vmem>>, vector<1x1x128xf32>
    %82 = vector.shape_cast %81 : vector<1x1x128xf32> to vector<1x128xf32>
    %83 = vector.shape_cast %80 : vector<1x128xf32> to vector<1x1x128xf32>
    tpu.vector_store %arg4[%c0_48, %c1_49, %c0_50], %83 {strides = array<i32>} : memref<1x2x128xf32, #tpu.memory_space<vmem>>, vector<1x1x128xf32>,
    return
  }
  func.func @transform_0(%arg0: i32) -> (i32, i32, i32, i32) {
    %c0_i32 = arith.constant 0 : i32
    %c0_i32_0 = arith.constant 0 : i32
    %c0_i32_1 = arith.constant 0 : i32
    %c0_i32_2 = arith.constant 0 : i32
    return %arg0, %c0_i32, %c0_i32_0, %c0_i32_1 : i32, i32, i32, i32
  }
  func.func @transform_1(%arg0: i32) -> (i32, i32, i32) {
    %c0_i32 = arith.constant 0 : i32
    %c0_i32_0 = arith.constant 0 : i32
    %c0_i32_1 = arith.constant 0 : i32
    %c0_i32_2 = arith.constant 0 : i32
    return %c0_i32, %c0_i32_0, %c0_i32_1 : i32, i32, i32
  }
  func.func @transform_2(%arg0: i32) -> (i32, i32, i32) {
    %c0_i32 = arith.constant 0 : i32
    %c0_i32_0 = arith.constant 0 : i32
    %c0_i32_1 = arith.constant 0 : i32
    return %arg0, %c0_i32, %c0_i32_0 : i32, i32, i32
  }
  func.func @transform_3(%arg0: i32) -> (i32, i32, i32) {
    %c0_i32 = arith.constant 0 : i32
    %c0_i32_0 = arith.constant 0 : i32
    %c0_i32_1 = arith.constant 0 : i32
    return %arg0, %c0_i32, %c0_i32_0 : i32, i32, i32
  }
}

module attributes {stable_mosaic.version = 11 : i64} {
  func.func @_conv2_proj_kernel(%arg0: i32, %arg1: memref<1x8x8x128xbf16, #tpu.memory_space<vmem>>, %arg2: memref<1x128xf32, #tpu.memory_space<vmem>>, %arg3: memref<1x128xf32, #tpu.memory_space<vmem>>, %arg4: memref<9x128x128xbf16, #tpu.memory_space<vmem>>, %arg5: memref<1x64x128xbf16, #tpu.memory_space<vmem>>, %arg6: memref<128x128xbf16, #tpu.memory_space<vmem>>, %arg7: memref<1x64x128xbf16, #tpu.memory_space<vmem>>, %arg8: memref<1x64x128xbf16, #tpu.memory_space<vmem>>, %arg9: memref<1x2x128xf32, #tpu.memory_space<vmem>>, %arg10: memref<1x2x128xf32, #tpu.memory_space<vmem>>, %arg11: memref<10x10x128xf32, #tpu.memory_space<vmem>>) attributes {dimension_semantics = [#tpu.dimension_semantics<parallel>], iteration_bounds = array<i64: 2>, scalar_prefetch = 0 : i64, scratch_operands = 1 : i64, tpu.core_type = #tpu.core_type<tc>, window_params = [{transform_indices = @transform_0, window_bounds = array<i64: 1, 8, 8, 128>}, {pipeline_mode = #tpu.pipeline_mode<synchronous>, transform_indices = @transform_1, window_bounds = array<i64: 1, 128>}, {pipeline_mode = #tpu.pipeline_mode<synchronous>, transform_indices = @transform_2, window_bounds = array<i64: 1, 128>}, {pipeline_mode = #tpu.pipeline_mode<synchronous>, transform_indices = @transform_3, window_bounds = array<i64: 9, 128, 128>}, {transform_indices = @transform_4, window_bounds = array<i64: 1, 64, 128>}, {pipeline_mode = #tpu.pipeline_mode<synchronous>, transform_indices = @transform_5, window_bounds = array<i64: 128, 128>}, {transform_indices = @transform_6, window_bounds = array<i64: 1, 64, 128>}, {transform_indices = @transform_7, window_bounds = array<i64: 1, 64, 128>}, {transform_indices = @transform_8, window_bounds = array<i64: 1, 2, 128>}, {transform_indices = @transform_9, window_bounds = array<i64: 1, 2, 128>}]} {
    %cst = arith.constant 0.000000e+00 : f32
    %0 = vector.broadcast %cst : f32 to vector<10x10x128xf32>
    %c0 = arith.constant 0 : index
    %c0_0 = arith.constant 0 : index
    %c0_1 = arith.constant 0 : index
    %1 = vector.load %arg11[%c0, %c0_0, %c0_1] : memref<10x10x128xf32, #tpu.memory_space<vmem>>, vector<10x10x128xf32>
    tpu.vector_store %arg11[%c0, %c0_0, %c0_1], %0 {strides = array<i32>} : memref<10x10x128xf32, #tpu.memory_space<vmem>>, vector<10x10x128xf32>,
    %c0_2 = arith.constant 0 : index
    %c0_3 = arith.constant 0 : index
    %c0_4 = arith.constant 0 : index
    %c0_5 = arith.constant 0 : index
    %2 = vector.load %arg1[%c0_2, %c0_3, %c0_4, %c0_5] : memref<1x8x8x128xbf16, #tpu.memory_space<vmem>>, vector<1x8x8x128xbf16>
    %3 = vector.shape_cast %2 : vector<1x8x8x128xbf16> to vector<8x8x128xbf16>
    %4 = arith.extf %3 : vector<8x8x128xbf16> to vector<8x8x128xf32>
    %c0_6 = arith.constant 0 : index
    %c0_7 = arith.constant 0 : index
    %5 = vector.load %arg2[%c0_6, %c0_7] : memref<1x128xf32, #tpu.memory_space<vmem>>, vector<1x128xf32>
    %6 = vector.shape_cast %5 : vector<1x128xf32> to vector<1x1x128xf32>
    %7 = vector.broadcast %6 : vector<1x1x128xf32> to vector<8x8x128xf32>
    %8 = arith.mulf %4, %7 : vector<8x8x128xf32>
    %c0_8 = arith.constant 0 : index
    %c0_9 = arith.constant 0 : index
    %9 = vector.load %arg3[%c0_8, %c0_9] : memref<1x128xf32, #tpu.memory_space<vmem>>, vector<1x128xf32>
    %10 = vector.shape_cast %9 : vector<1x128xf32> to vector<1x1x128xf32>
    %11 = vector.broadcast %10 : vector<1x1x128xf32> to vector<8x8x128xf32>
    %12 = arith.addf %8, %11 : vector<8x8x128xf32>
    %cst_10 = arith.constant 0.000000e+00 : f32
    %13 = vector.broadcast %cst_10 : f32 to vector<8x8x128xf32>
    %14 = arith.maximumf %12, %13 : vector<8x8x128xf32>
    %c1 = arith.constant 1 : index
    %c1_11 = arith.constant 1 : index
    %c0_12 = arith.constant 0 : index
    %15 = vector.load %arg11[%c1, %c1_11, %c0_12] : memref<10x10x128xf32, #tpu.memory_space<vmem>>, vector<8x8x128xf32>
    tpu.vector_store %arg11[%c1, %c1_11, %c0_12], %14 {strides = array<i32>} : memref<10x10x128xf32, #tpu.memory_space<vmem>>, vector<8x8x128xf32>,
    %c0_13 = arith.constant 0 : index
    %c0_14 = arith.constant 0 : index
    %c0_15 = arith.constant 0 : index
    %16 = vector.load %arg4[%c0_13, %c0_14, %c0_15] : memref<9x128x128xbf16, #tpu.memory_space<vmem>>, vector<9x128x128xbf16>
    %cst_16 = arith.constant 0.000000e+00 : f32
    %17 = vector.broadcast %cst_16 : f32 to vector<64x128xf32>
    %c0_17 = arith.constant 0 : index
    %c0_18 = arith.constant 0 : index
    %c0_19 = arith.constant 0 : index
    %18 = vector.load %arg11[%c0_17, %c0_18, %c0_19] : memref<10x10x128xf32, #tpu.memory_space<vmem>>, vector<8x8x128xf32>
    %19 = vector.shape_cast %18 : vector<8x8x128xf32> to vector<64x128xf32>
    %20 = arith.truncf %19 : vector<64x128xf32> to vector<64x128xbf16>
    %21 = vector.extract_strided_slice %16 {offsets = [0, 0, 0], sizes = [1, 128, 128], strides = [1, 1, 1]} : vector<9x128x128xbf16> to vector<1x128x128xbf16>
    %22 = vector.shape_cast %21 : vector<1x128x128xbf16> to vector<128x128xbf16>
    %cst_20 = arith.constant dense<0.000000e+00> : vector<64x128xf32>
    %23 = tpu.matmul %20, %22, %cst_20 {dimension_numbers = #tpu.dot_dimension_numbers<[1], [0], [0], [1], [0, 0, 1, 1], [], []>} : vector<64x128xbf16>, vector<128x128xbf16>, vector<64x128xf32> -> vector<64x128xf32>
    %24 = arith.addf %17, %23 : vector<64x128xf32>
    %c0_21 = arith.constant 0 : index
    %c1_22 = arith.constant 1 : index
    %c0_23 = arith.constant 0 : index
    %25 = vector.load %arg11[%c0_21, %c1_22, %c0_23] : memref<10x10x128xf32, #tpu.memory_space<vmem>>, vector<8x8x128xf32>
    %26 = vector.shape_cast %25 : vector<8x8x128xf32> to vector<64x128xf32>
    %27 = arith.truncf %26 : vector<64x128xf32> to vector<64x128xbf16>
    %28 = vector.extract_strided_slice %16 {offsets = [1, 0, 0], sizes = [1, 128, 128], strides = [1, 1, 1]} : vector<9x128x128xbf16> to vector<1x128x128xbf16>
    %29 = vector.shape_cast %28 : vector<1x128x128xbf16> to vector<128x128xbf16>
    %cst_24 = arith.constant dense<0.000000e+00> : vector<64x128xf32>
    %30 = tpu.matmul %27, %29, %cst_24 {dimension_numbers = #tpu.dot_dimension_numbers<[1], [0], [0], [1], [0, 0, 1, 1], [], []>} : vector<64x128xbf16>, vector<128x128xbf16>, vector<64x128xf32> -> vector<64x128xf32>
    %31 = arith.addf %24, %30 : vector<64x128xf32>
    %c0_25 = arith.constant 0 : index
    %c2 = arith.constant 2 : index
    %c0_26 = arith.constant 0 : index
    %32 = vector.load %arg11[%c0_25, %c2, %c0_26] : memref<10x10x128xf32, #tpu.memory_space<vmem>>, vector<8x8x128xf32>
    %33 = vector.shape_cast %32 : vector<8x8x128xf32> to vector<64x128xf32>
    %34 = arith.truncf %33 : vector<64x128xf32> to vector<64x128xbf16>
    %35 = vector.extract_strided_slice %16 {offsets = [2, 0, 0], sizes = [1, 128, 128], strides = [1, 1, 1]} : vector<9x128x128xbf16> to vector<1x128x128xbf16>
    %36 = vector.shape_cast %35 : vector<1x128x128xbf16> to vector<128x128xbf16>
    %cst_27 = arith.constant dense<0.000000e+00> : vector<64x128xf32>
    %37 = tpu.matmul %34, %36, %cst_27 {dimension_numbers = #tpu.dot_dimension_numbers<[1], [0], [0], [1], [0, 0, 1, 1], [], []>} : vector<64x128xbf16>, vector<128x128xbf16>, vector<64x128xf32> -> vector<64x128xf32>
    %38 = arith.addf %31, %37 : vector<64x128xf32>
    %c1_28 = arith.constant 1 : index
    %c0_29 = arith.constant 0 : index
    %c0_30 = arith.constant 0 : index
    %39 = vector.load %arg11[%c1_28, %c0_29, %c0_30] : memref<10x10x128xf32, #tpu.memory_space<vmem>>, vector<8x8x128xf32>
    %40 = vector.shape_cast %39 : vector<8x8x128xf32> to vector<64x128xf32>
    %41 = arith.truncf %40 : vector<64x128xf32> to vector<64x128xbf16>
    %42 = vector.extract_strided_slice %16 {offsets = [3, 0, 0], sizes = [1, 128, 128], strides = [1, 1, 1]} : vector<9x128x128xbf16> to vector<1x128x128xbf16>
    %43 = vector.shape_cast %42 : vector<1x128x128xbf16> to vector<128x128xbf16>
    %cst_31 = arith.constant dense<0.000000e+00> : vector<64x128xf32>
    %44 = tpu.matmul %41, %43, %cst_31 {dimension_numbers = #tpu.dot_dimension_numbers<[1], [0], [0], [1], [0, 0, 1, 1], [], []>} : vector<64x128xbf16>, vector<128x128xbf16>, vector<64x128xf32> -> vector<64x128xf32>
    %45 = arith.addf %38, %44 : vector<64x128xf32>
    %c1_32 = arith.constant 1 : index
    %c1_33 = arith.constant 1 : index
    %c0_34 = arith.constant 0 : index
    %46 = vector.load %arg11[%c1_32, %c1_33, %c0_34] : memref<10x10x128xf32, #tpu.memory_space<vmem>>, vector<8x8x128xf32>
    %47 = vector.shape_cast %46 : vector<8x8x128xf32> to vector<64x128xf32>
    %48 = arith.truncf %47 : vector<64x128xf32> to vector<64x128xbf16>
    %49 = vector.extract_strided_slice %16 {offsets = [4, 0, 0], sizes = [1, 128, 128], strides = [1, 1, 1]} : vector<9x128x128xbf16> to vector<1x128x128xbf16>
    %50 = vector.shape_cast %49 : vector<1x128x128xbf16> to vector<128x128xbf16>
    %cst_35 = arith.constant dense<0.000000e+00> : vector<64x128xf32>
    %51 = tpu.matmul %48, %50, %cst_35 {dimension_numbers = #tpu.dot_dimension_numbers<[1], [0], [0], [1], [0, 0, 1, 1], [], []>} : vector<64x128xbf16>, vector<128x128xbf16>, vector<64x128xf32> -> vector<64x128xf32>
    %52 = arith.addf %45, %51 : vector<64x128xf32>
    %c1_36 = arith.constant 1 : index
    %c2_37 = arith.constant 2 : index
    %c0_38 = arith.constant 0 : index
    %53 = vector.load %arg11[%c1_36, %c2_37, %c0_38] : memref<10x10x128xf32, #tpu.memory_space<vmem>>, vector<8x8x128xf32>
    %54 = vector.shape_cast %53 : vector<8x8x128xf32> to vector<64x128xf32>
    %55 = arith.truncf %54 : vector<64x128xf32> to vector<64x128xbf16>
    %56 = vector.extract_strided_slice %16 {offsets = [5, 0, 0], sizes = [1, 128, 128], strides = [1, 1, 1]} : vector<9x128x128xbf16> to vector<1x128x128xbf16>
    %57 = vector.shape_cast %56 : vector<1x128x128xbf16> to vector<128x128xbf16>
    %cst_39 = arith.constant dense<0.000000e+00> : vector<64x128xf32>
    %58 = tpu.matmul %55, %57, %cst_39 {dimension_numbers = #tpu.dot_dimension_numbers<[1], [0], [0], [1], [0, 0, 1, 1], [], []>} : vector<64x128xbf16>, vector<128x128xbf16>, vector<64x128xf32> -> vector<64x128xf32>
    %59 = arith.addf %52, %58 : vector<64x128xf32>
    %c2_40 = arith.constant 2 : index
    %c0_41 = arith.constant 0 : index
    %c0_42 = arith.constant 0 : index
    %60 = vector.load %arg11[%c2_40, %c0_41, %c0_42] : memref<10x10x128xf32, #tpu.memory_space<vmem>>, vector<8x8x128xf32>
    %61 = vector.shape_cast %60 : vector<8x8x128xf32> to vector<64x128xf32>
    %62 = arith.truncf %61 : vector<64x128xf32> to vector<64x128xbf16>
    %63 = vector.extract_strided_slice %16 {offsets = [6, 0, 0], sizes = [1, 128, 128], strides = [1, 1, 1]} : vector<9x128x128xbf16> to vector<1x128x128xbf16>
    %64 = vector.shape_cast %63 : vector<1x128x128xbf16> to vector<128x128xbf16>
    %cst_43 = arith.constant dense<0.000000e+00> : vector<64x128xf32>
    %65 = tpu.matmul %62, %64, %cst_43 {dimension_numbers = #tpu.dot_dimension_numbers<[1], [0], [0], [1], [0, 0, 1, 1], [], []>} : vector<64x128xbf16>, vector<128x128xbf16>, vector<64x128xf32> -> vector<64x128xf32>
    %66 = arith.addf %59, %65 : vector<64x128xf32>
    %c2_44 = arith.constant 2 : index
    %c1_45 = arith.constant 1 : index
    %c0_46 = arith.constant 0 : index
    %67 = vector.load %arg11[%c2_44, %c1_45, %c0_46] : memref<10x10x128xf32, #tpu.memory_space<vmem>>, vector<8x8x128xf32>
    %68 = vector.shape_cast %67 : vector<8x8x128xf32> to vector<64x128xf32>
    %69 = arith.truncf %68 : vector<64x128xf32> to vector<64x128xbf16>
    %70 = vector.extract_strided_slice %16 {offsets = [7, 0, 0], sizes = [1, 128, 128], strides = [1, 1, 1]} : vector<9x128x128xbf16> to vector<1x128x128xbf16>
    %71 = vector.shape_cast %70 : vector<1x128x128xbf16> to vector<128x128xbf16>
    %cst_47 = arith.constant dense<0.000000e+00> : vector<64x128xf32>
    %72 = tpu.matmul %69, %71, %cst_47 {dimension_numbers = #tpu.dot_dimension_numbers<[1], [0], [0], [1], [0, 0, 1, 1], [], []>} : vector<64x128xbf16>, vector<128x128xbf16>, vector<64x128xf32> -> vector<64x128xf32>
    %73 = arith.addf %66, %72 : vector<64x128xf32>
    %c2_48 = arith.constant 2 : index
    %c2_49 = arith.constant 2 : index
    %c0_50 = arith.constant 0 : index
    %74 = vector.load %arg11[%c2_48, %c2_49, %c0_50] : memref<10x10x128xf32, #tpu.memory_space<vmem>>, vector<8x8x128xf32>
    %75 = vector.shape_cast %74 : vector<8x8x128xf32> to vector<64x128xf32>
    %76 = arith.truncf %75 : vector<64x128xf32> to vector<64x128xbf16>
    %77 = vector.extract_strided_slice %16 {offsets = [8, 0, 0], sizes = [1, 128, 128], strides = [1, 1, 1]} : vector<9x128x128xbf16> to vector<1x128x128xbf16>
    %78 = vector.shape_cast %77 : vector<1x128x128xbf16> to vector<128x128xbf16>
    %cst_51 = arith.constant dense<0.000000e+00> : vector<64x128xf32>
    %79 = tpu.matmul %76, %78, %cst_51 {dimension_numbers = #tpu.dot_dimension_numbers<[1], [0], [0], [1], [0, 0, 1, 1], [], []>} : vector<64x128xbf16>, vector<128x128xbf16>, vector<64x128xf32> -> vector<64x128xf32>
    %80 = arith.addf %73, %79 : vector<64x128xf32>
    %81 = arith.truncf %80 : vector<64x128xf32> to vector<64x128xbf16>
    %c0_52 = arith.constant 0 : index
    %c0_53 = arith.constant 0 : index
    %c0_54 = arith.constant 0 : index
    %82 = vector.load %arg7[%c0_52, %c0_53, %c0_54] : memref<1x64x128xbf16, #tpu.memory_space<vmem>>, vector<1x64x128xbf16>
    %83 = vector.shape_cast %82 : vector<1x64x128xbf16> to vector<64x128xbf16>
    %84 = vector.shape_cast %81 : vector<64x128xbf16> to vector<1x64x128xbf16>
    tpu.vector_store %arg7[%c0_52, %c0_53, %c0_54], %84 {strides = array<i32>} : memref<1x64x128xbf16, #tpu.memory_space<vmem>>, vector<1x64x128xbf16>,
    %cst_55 = arith.constant dense<0.000000e+00> : vector<128xf32>
    %85 = vector.multi_reduction <add>, %80, %cst_55 [0] : vector<64x128xf32> to vector<128xf32>
    %86 = vector.shape_cast %85 : vector<128xf32> to vector<1x128xf32>
    %c0_56 = arith.constant 0 : index
    %c0_57 = arith.constant 0 : index
    %c0_58 = arith.constant 0 : index
    %87 = vector.load %arg9[%c0_56, %c0_57, %c0_58] : memref<1x2x128xf32, #tpu.memory_space<vmem>>, vector<1x1x128xf32>
    %88 = vector.shape_cast %87 : vector<1x1x128xf32> to vector<1x128xf32>
    %89 = vector.shape_cast %86 : vector<1x128xf32> to vector<1x1x128xf32>
    tpu.vector_store %arg9[%c0_56, %c0_57, %c0_58], %89 {strides = array<i32>} : memref<1x2x128xf32, #tpu.memory_space<vmem>>, vector<1x1x128xf32>,
    %90 = arith.mulf %80, %80 : vector<64x128xf32>
    %cst_59 = arith.constant dense<0.000000e+00> : vector<128xf32>
    %91 = vector.multi_reduction <add>, %90, %cst_59 [0] : vector<64x128xf32> to vector<128xf32>
    %92 = vector.shape_cast %91 : vector<128xf32> to vector<1x128xf32>
    %c0_60 = arith.constant 0 : index
    %c1_61 = arith.constant 1 : index
    %c0_62 = arith.constant 0 : index
    %93 = vector.load %arg9[%c0_60, %c1_61, %c0_62] : memref<1x2x128xf32, #tpu.memory_space<vmem>>, vector<1x1x128xf32>
    %94 = vector.shape_cast %93 : vector<1x1x128xf32> to vector<1x128xf32>
    %95 = vector.shape_cast %92 : vector<1x128xf32> to vector<1x1x128xf32>
    tpu.vector_store %arg9[%c0_60, %c1_61, %c0_62], %95 {strides = array<i32>} : memref<1x2x128xf32, #tpu.memory_space<vmem>>, vector<1x1x128xf32>,
    %c0_63 = arith.constant 0 : index
    %c0_64 = arith.constant 0 : index
    %c0_65 = arith.constant 0 : index
    %96 = vector.load %arg5[%c0_63, %c0_64, %c0_65] : memref<1x64x128xbf16, #tpu.memory_space<vmem>>, vector<1x64x128xbf16>
    %97 = vector.shape_cast %96 : vector<1x64x128xbf16> to vector<64x128xbf16>
    %c0_66 = arith.constant 0 : index
    %c0_67 = arith.constant 0 : index
    %98 = vector.load %arg6[%c0_66, %c0_67] : memref<128x128xbf16, #tpu.memory_space<vmem>>, vector<128x128xbf16>
    %cst_68 = arith.constant dense<0.000000e+00> : vector<64x128xf32>
    %99 = tpu.matmul %97, %98, %cst_68 {dimension_numbers = #tpu.dot_dimension_numbers<[1], [0], [0], [1], [0, 0, 1, 1], [], []>} : vector<64x128xbf16>, vector<128x128xbf16>, vector<64x128xf32> -> vector<64x128xf32>
    %100 = arith.truncf %99 : vector<64x128xf32> to vector<64x128xbf16>
    %c0_69 = arith.constant 0 : index
    %c0_70 = arith.constant 0 : index
    %c0_71 = arith.constant 0 : index
    %101 = vector.load %arg8[%c0_69, %c0_70, %c0_71] : memref<1x64x128xbf16, #tpu.memory_space<vmem>>, vector<1x64x128xbf16>
    %102 = vector.shape_cast %101 : vector<1x64x128xbf16> to vector<64x128xbf16>
    %103 = vector.shape_cast %100 : vector<64x128xbf16> to vector<1x64x128xbf16>
    tpu.vector_store %arg8[%c0_69, %c0_70, %c0_71], %103 {strides = array<i32>} : memref<1x64x128xbf16, #tpu.memory_space<vmem>>, vector<1x64x128xbf16>,
    %cst_72 = arith.constant dense<0.000000e+00> : vector<128xf32>
    %104 = vector.multi_reduction <add>, %99, %cst_72 [0] : vector<64x128xf32> to vector<128xf32>
    %105 = vector.shape_cast %104 : vector<128xf32> to vector<1x128xf32>
    %c0_73 = arith.constant 0 : index
    %c0_74 = arith.constant 0 : index
    %c0_75 = arith.constant 0 : index
    %106 = vector.load %arg10[%c0_73, %c0_74, %c0_75] : memref<1x2x128xf32, #tpu.memory_space<vmem>>, vector<1x1x128xf32>
    %107 = vector.shape_cast %106 : vector<1x1x128xf32> to vector<1x128xf32>
    %108 = vector.shape_cast %105 : vector<1x128xf32> to vector<1x1x128xf32>
    tpu.vector_store %arg10[%c0_73, %c0_74, %c0_75], %108 {strides = array<i32>} : memref<1x2x128xf32, #tpu.memory_space<vmem>>, vector<1x1x128xf32>,
    %109 = arith.mulf %99, %99 : vector<64x128xf32>
    %cst_76 = arith.constant dense<0.000000e+00> : vector<128xf32>
    %110 = vector.multi_reduction <add>, %109, %cst_76 [0] : vector<64x128xf32> to vector<128xf32>
    %111 = vector.shape_cast %110 : vector<128xf32> to vector<1x128xf32>
    %c0_77 = arith.constant 0 : index
    %c1_78 = arith.constant 1 : index
    %c0_79 = arith.constant 0 : index
    %112 = vector.load %arg10[%c0_77, %c1_78, %c0_79] : memref<1x2x128xf32, #tpu.memory_space<vmem>>, vector<1x1x128xf32>
    %113 = vector.shape_cast %112 : vector<1x1x128xf32> to vector<1x128xf32>
    %114 = vector.shape_cast %111 : vector<1x128xf32> to vector<1x1x128xf32>
    tpu.vector_store %arg10[%c0_77, %c1_78, %c0_79], %114 {strides = array<i32>} : memref<1x2x128xf32, #tpu.memory_space<vmem>>, vector<1x1x128xf32>,
    return
  }
  func.func @transform_0(%arg0: i32) -> (i32, i32, i32, i32) {
    %c0_i32 = arith.constant 0 : i32
    %c0_i32_0 = arith.constant 0 : i32
    %c0_i32_1 = arith.constant 0 : i32
    %c0_i32_2 = arith.constant 0 : i32
    return %arg0, %c0_i32, %c0_i32_0, %c0_i32_1 : i32, i32, i32, i32
  }
  func.func @transform_1(%arg0: i32) -> (i32, i32) {
    %c0_i32 = arith.constant 0 : i32
    %c0_i32_0 = arith.constant 0 : i32
    %c0_i32_1 = arith.constant 0 : i32
    return %c0_i32, %c0_i32_0 : i32, i32
  }
  func.func @transform_2(%arg0: i32) -> (i32, i32) {
    %c0_i32 = arith.constant 0 : i32
    %c0_i32_0 = arith.constant 0 : i32
    %c0_i32_1 = arith.constant 0 : i32
    return %c0_i32, %c0_i32_0 : i32, i32
  }
  func.func @transform_3(%arg0: i32) -> (i32, i32, i32) {
    %c0_i32 = arith.constant 0 : i32
    %c0_i32_0 = arith.constant 0 : i32
    %c0_i32_1 = arith.constant 0 : i32
    %c0_i32_2 = arith.constant 0 : i32
    return %c0_i32, %c0_i32_0, %c0_i32_1 : i32, i32, i32
  }
  func.func @transform_4(%arg0: i32) -> (i32, i32, i32) {
    %c0_i32 = arith.constant 0 : i32
    %c0_i32_0 = arith.constant 0 : i32
    %c0_i32_1 = arith.constant 0 : i32
    return %arg0, %c0_i32, %c0_i32_0 : i32, i32, i32
  }
  func.func @transform_5(%arg0: i32) -> (i32, i32) {
    %c0_i32 = arith.constant 0 : i32
    %c0_i32_0 = arith.constant 0 : i32
    %c0_i32_1 = arith.constant 0 : i32
    return %c0_i32, %c0_i32_0 : i32, i32
  }
  func.func @transform_6(%arg0: i32) -> (i32, i32, i32) {
    %c0_i32 = arith.constant 0 : i32
    %c0_i32_0 = arith.constant 0 : i32
    %c0_i32_1 = arith.constant 0 : i32
    return %arg0, %c0_i32, %c0_i32_0 : i32, i32, i32
  }
  func.func @transform_7(%arg0: i32) -> (i32, i32, i32) {
    %c0_i32 = arith.constant 0 : i32
    %c0_i32_0 = arith.constant 0 : i32
    %c0_i32_1 = arith.constant 0 : i32
    return %arg0, %c0_i32, %c0_i32_0 : i32, i32, i32
  }
  func.func @transform_8(%arg0: i32) -> (i32, i32, i32) {
    %c0_i32 = arith.constant 0 : i32
    %c0_i32_0 = arith.constant 0 : i32
    %c0_i32_1 = arith.constant 0 : i32
    return %arg0, %c0_i32, %c0_i32_0 : i32, i32, i32
  }
  func.func @transform_9(%arg0: i32) -> (i32, i32, i32) {
    %c0_i32 = arith.constant 0 : i32
    %c0_i32_0 = arith.constant 0 : i32
    %c0_i32_1 = arith.constant 0 : i32
    return %arg0, %c0_i32, %c0_i32_0 : i32, i32, i32
  }
}

module attributes {stable_mosaic.version = 11 : i64} {
  func.func @_residual_proj_kernel(%arg0: i32, %arg1: memref<128x128xbf16, #tpu.memory_space<vmem>>, %arg2: memref<128x128xbf16, #tpu.memory_space<vmem>>, %arg3: memref<1x128xf32, #tpu.memory_space<vmem>>, %arg4: memref<1x128xf32, #tpu.memory_space<vmem>>, %arg5: memref<1x128xf32, #tpu.memory_space<vmem>>, %arg6: memref<1x128xf32, #tpu.memory_space<vmem>>, %arg7: memref<128x128xf32, #tpu.memory_space<vmem>>) attributes {dimension_semantics = [#tpu.dimension_semantics<parallel>], iteration_bounds = array<i64: 1>, scalar_prefetch = 0 : i64, scratch_operands = 0 : i64, tpu.core_type = #tpu.core_type<tc>, window_params = [{transform_indices = @transform_0, window_bounds = array<i64: 128, 128>}, {transform_indices = @transform_1, window_bounds = array<i64: 128, 128>}, {pipeline_mode = #tpu.pipeline_mode<synchronous>, transform_indices = @transform_2, window_bounds = array<i64: 1, 128>}, {pipeline_mode = #tpu.pipeline_mode<synchronous>, transform_indices = @transform_3, window_bounds = array<i64: 1, 128>}, {pipeline_mode = #tpu.pipeline_mode<synchronous>, transform_indices = @transform_4, window_bounds = array<i64: 1, 128>}, {pipeline_mode = #tpu.pipeline_mode<synchronous>, transform_indices = @transform_5, window_bounds = array<i64: 1, 128>}, {transform_indices = @transform_6, window_bounds = array<i64: 128, 128>}]} {
    %c0 = arith.constant 0 : index
    %c0_0 = arith.constant 0 : index
    %0 = vector.load %arg1[%c0, %c0_0] : memref<128x128xbf16, #tpu.memory_space<vmem>>, vector<128x128xbf16>
    %1 = arith.extf %0 : vector<128x128xbf16> to vector<128x128xf32>
    %c0_1 = arith.constant 0 : index
    %c0_2 = arith.constant 0 : index
    %2 = vector.load %arg3[%c0_1, %c0_2] : memref<1x128xf32, #tpu.memory_space<vmem>>, vector<1x128xf32>
    %3 = vector.broadcast %2 : vector<1x128xf32> to vector<128x128xf32>
    %4 = arith.mulf %1, %3 : vector<128x128xf32>
    %c0_3 = arith.constant 0 : index
    %c0_4 = arith.constant 0 : index
    %5 = vector.load %arg4[%c0_3, %c0_4] : memref<1x128xf32, #tpu.memory_space<vmem>>, vector<1x128xf32>
    %6 = vector.broadcast %5 : vector<1x128xf32> to vector<128x128xf32>
    %7 = arith.addf %4, %6 : vector<128x128xf32>
    %c0_5 = arith.constant 0 : index
    %c0_6 = arith.constant 0 : index
    %8 = vector.load %arg2[%c0_5, %c0_6] : memref<128x128xbf16, #tpu.memory_space<vmem>>, vector<128x128xbf16>
    %9 = arith.extf %8 : vector<128x128xbf16> to vector<128x128xf32>
    %c0_7 = arith.constant 0 : index
    %c0_8 = arith.constant 0 : index
    %10 = vector.load %arg5[%c0_7, %c0_8] : memref<1x128xf32, #tpu.memory_space<vmem>>, vector<1x128xf32>
    %11 = vector.broadcast %10 : vector<1x128xf32> to vector<128x128xf32>
    %12 = arith.mulf %9, %11 : vector<128x128xf32>
    %c0_9 = arith.constant 0 : index
    %c0_10 = arith.constant 0 : index
    %13 = vector.load %arg6[%c0_9, %c0_10] : memref<1x128xf32, #tpu.memory_space<vmem>>, vector<1x128xf32>
    %14 = vector.broadcast %13 : vector<1x128xf32> to vector<128x128xf32>
    %15 = arith.addf %12, %14 : vector<128x128xf32>
    %16 = arith.addf %7, %15 : vector<128x128xf32>
    %cst = arith.constant 0.000000e+00 : f32
    %17 = vector.broadcast %cst : f32 to vector<128x128xf32>
    %18 = arith.maximumf %16, %17 : vector<128x128xf32>
    %c0_11 = arith.constant 0 : index
    %c0_12 = arith.constant 0 : index
    %19 = vector.load %arg7[%c0_11, %c0_12] : memref<128x128xf32, #tpu.memory_space<vmem>>, vector<128x128xf32>
    tpu.vector_store %arg7[%c0_11, %c0_12], %18 {strides = array<i32>} : memref<128x128xf32, #tpu.memory_space<vmem>>, vector<128x128xf32>,
    return
  }
  func.func @transform_0(%arg0: i32) -> (i32, i32) {
    %c0_i32 = arith.constant 0 : i32
    %c0_i32_0 = arith.constant 0 : i32
    return %arg0, %c0_i32 : i32, i32
  }
  func.func @transform_1(%arg0: i32) -> (i32, i32) {
    %c0_i32 = arith.constant 0 : i32
    %c0_i32_0 = arith.constant 0 : i32
    return %arg0, %c0_i32 : i32, i32
  }
  func.func @transform_2(%arg0: i32) -> (i32, i32) {
    %c0_i32 = arith.constant 0 : i32
    %c0_i32_0 = arith.constant 0 : i32
    %c0_i32_1 = arith.constant 0 : i32
    return %c0_i32, %c0_i32_0 : i32, i32
  }
  func.func @transform_3(%arg0: i32) -> (i32, i32) {
    %c0_i32 = arith.constant 0 : i32
    %c0_i32_0 = arith.constant 0 : i32
    %c0_i32_1 = arith.constant 0 : i32
    return %c0_i32, %c0_i32_0 : i32, i32
  }
  func.func @transform_4(%arg0: i32) -> (i32, i32) {
    %c0_i32 = arith.constant 0 : i32
    %c0_i32_0 = arith.constant 0 : i32
    %c0_i32_1 = arith.constant 0 : i32
    return %c0_i32, %c0_i32_0 : i32, i32
  }
  func.func @transform_5(%arg0: i32) -> (i32, i32) {
    %c0_i32 = arith.constant 0 : i32
    %c0_i32_0 = arith.constant 0 : i32
    %c0_i32_1 = arith.constant 0 : i32
    return %c0_i32, %c0_i32_0 : i32, i32
  }
  func.func @transform_6(%arg0: i32) -> (i32, i32) {
    %c0_i32 = arith.constant 0 : i32
    %c0_i32_0 = arith.constant 0 : i32
    return %arg0, %c0_i32 : i32, i32
  }
}

</mosaic_0001>

<bundles_post_ra>
// kernel: residual_forward.5
= control target key start
LH: loop header
LB: loop body
LE: loop exit
PB: predicated region body
PF: predicated region fallthrough
CT: control target
= control target key end

     0   :  { %s528_s0 = inlined_call_operand.vmem [shape: bf16[128,128], index: 0, kind: input, shape index: {}]   ;;  %s529_s1 = inlined_call_operand.vmem [shape: bf16[128,128], index: 1, kind: input, shape index: {}]   ;;  %s530_s2 = inlined_call_operand.vmem [shape: f32[1,128], index: 2, kind: input, shape index: {}]   ;;  %s531_s3 = inlined_call_operand.vmem [shape: f32[1,128], index: 3, kind: input, shape index: {}]   ;;  %s532_s4 = inlined_call_operand.vmem [shape: f32[1,128], index: 4, kind: input, shape index: {}]   ;;  %s533_s5 = inlined_call_operand.vmem [shape: f32[1,128], index: 5, kind: input, shape index: {}]   ;;  %s534_s6 = inlined_call_operand.vmem [shape: f32[128,128], index: 6, kind: output, shape index: {}]  }
   0x1   :  { %v236_v0 = vld [vmem:[%s528_s0] sm:$0xff]   ;;  %v299_v9 = vld [vmem:[%s528_s0 + $0x8] sm:$0xff]   ;;  %v300_v20 = vld [vmem:[%s528_s0 + $0x10] sm:$0xff]  }
   0x2   :  { %v354_v1 = vld [vmem:[%s530_s2] ss:$0 sm:$0xff]  ;;  %v237_v2 = vunpack.c.l.bf16 %v236_v0  ;;  %v238_v5 = vunpack.c.h.bf16 %v236_v0  ;;  %v306_v10 = vld [vmem:[%s529_s1 + $0x8] sm:$0xff]   ;;  %v241_v14 = vunpack.c.l.bf16 %v299_v9  ;;  %v242_v18 = vunpack.c.h.bf16 %v299_v9  ;;  %v307_v21 = vld [vmem:[%s529_s1 + $0x10] sm:$0xff]  }
   0x3   :  { %v268_v3 = vld [vmem:[%s529_s1] sm:$0xff]   ;;  %v273_v15 = vunpack.c.l.bf16 %v306_v10  ;;  %v274_v19 = vunpack.c.h.bf16 %v306_v10  ;;  %v245_v32 = vunpack.c.l.bf16 %v300_v20  ;;  %v277_v33 = vunpack.c.l.bf16 %v307_v21  ;;  %v301_v42 = vld [vmem:[%s528_s0 + $0x18] sm:$0xff]  }
   0x4   :  { %v362_v4 = vld [vmem:[%s532_s4] ss:$0 sm:$0xff]  ;;  %v269_v7 = vunpack.c.l.bf16 %v268_v3  ;;  %v270_v8 = vunpack.c.h.bf16 %v268_v3  ;;  %v62_v11 = vmul.f32 %v237_v2, %v354_v1  ;;  %v63_v13 = vmul.f32 %v238_v5, %v354_v1  ;;  %v308_v43 = vld [vmem:[%s529_s1 + $0x18] sm:$0xff]  }
   0x5   :  { %v367_v6 = vld [vmem:[%s531_s3] ss:$0 sm:$0xff]  ;;  %v64_v24 = vmul.f32 %v241_v14, %v354_v1  ;;  %v142_v25 = vmul.f32 %v273_v15, %v362_v4  ;;  %v65_v28 = vmul.f32 %v242_v18, %v354_v1  ;;  %v143_v29 = vmul.f32 %v274_v19, %v362_v4  ;;  %v303_v14 = vld [vmem:[%s528_s0 + $0x28] sm:$0xff]  }
   0x6   :  { %v379_v12 = vld [vmem:[%s533_s5] ss:$0 sm:$0xff]  ;;  %v140_v16 = vmul.f32 %v269_v7, %v362_v4  ;;  %v141_v17 = vmul.f32 %v270_v8, %v362_v4  ;;  %v85_v22 = vadd.f32 %v367_v6, %v62_v11  ;;  %v86_v23 = vadd.f32 %v367_v6, %v63_v13  ;;  %v310_v19 = vld [vmem:[%s529_s1 + $0x28] sm:$0xff]  }
   0x7   :  { %v87_v30 = vadd.f32 %v367_v6, %v64_v24  ;;  %v165_v31 = vadd.f32 %v379_v12, %v142_v25  ;;  %v88_v36 = vadd.f32 %v367_v6, %v65_v28  ;;  %v166_v37 = vadd.f32 %v379_v12, %v143_v29  ;;  %v302_v52 = vld [vmem:[%s528_s0 + $0x20] sm:$0xff]  }
   0x8   :  { %v163_v26 = vadd.f32 %v379_v12, %v140_v16  ;;  %v164_v27 = vadd.f32 %v379_v12, %v141_v17  ;;  %v66_v39 = vmul.f32 %v245_v32, %v354_v1  ;;  %v144_v40 = vmul.f32 %v277_v33, %v362_v4  ;;  %v309_v57 = vld [vmem:[%s529_s1 + $0x20] sm:$0xff]   ;;  %v304_v32 = vld [vmem:[%s528_s0 + $0x30] sm:$0xff]  }
   0x9   :  { %v181_v38 = vadd.f32 %v165_v31, %v87_v30  ;;  %v246_v41 = vunpack.c.h.bf16 %v300_v20  ;;  %v182_v46 = vadd.f32 %v166_v37, %v88_v36  ;;  %v278_v47 = vunpack.c.h.bf16 %v307_v21  ;;  %v311_v33 = vld [vmem:[%s529_s1 + $0x30] sm:$0xff]  }
   0xa   :  { %v179_v34 = vadd.f32 %v163_v26, %v85_v22  ;;  %v180_v35 = vadd.f32 %v164_v27, %v86_v23  ;;  %v89_v49 = vadd.f32 %v367_v6, %v66_v39  ;;  %v167_v50 = vadd.f32 %v379_v12, %v144_v40 }
   0xb   :  { %v197_v48 = vmax.f32 %v181_v38, 0.0  ;;  %v67_v51 = vmul.f32 %v246_v41, %v354_v1  ;;  %v198_v53 = vmax.f32 %v182_v46, 0.0  ;;  %v145_v54 = vmul.f32 %v278_v47, %v362_v4  ;;  %v305_v46 = vld [vmem:[%s528_s0 + $0x38] sm:$0xff]  }
   0xc   :  { %v195_v44 = vmax.f32 %v179_v34, 0.0  ;;  %v196_v45 = vmax.f32 %v180_v35, 0.0  ;;  %v249_v55 = vunpack.c.l.bf16 %v301_v42  ;;  %v281_v56 = vunpack.c.l.bf16 %v308_v43 }
   0xd   :  { %213 = vst [vmem:[%s534_s6 + $0x10] sm:$0xff] %v197_v48  ;;  %v183_v58 = vadd.f32 %v167_v50, %v89_v49  ;;  %v90_v59 = vadd.f32 %v367_v6, %v67_v51  ;;  %v250_v60 = vunpack.c.h.bf16 %v301_v42  ;;  %v282_v61 = vunpack.c.h.bf16 %v308_v43  ;;  %214 = vst [vmem:[%s534_s6 + $0x18] sm:$0xff] %v198_v53 }
   0xe   :  { %211 = vst [vmem:[%s534_s6] sm:$0xff] %v195_v44  ;;  %212 = vst [vmem:[%s534_s6 + $0x8] sm:$0xff] %v196_v45  ;;  %v168_v62 = vadd.f32 %v379_v12, %v145_v54  ;;  %v68_v63 = vmul.f32 %v249_v55, %v354_v1  ;;  %v146_v0 = vmul.f32 %v281_v56, %v362_v4  ;;  %v253_v2 = vunpack.c.l.bf16 %v302_v52  ;;  %v312_v55 = vld [vmem:[%s529_s1 + $0x38] sm:$0xff]  }
   0xf   :  { %v199_v3 = vmax.f32 %v183_v58, 0.0  ;;  %v69_v5 = vmul.f32 %v250_v60, %v354_v1  ;;  %v147_v7 = vmul.f32 %v282_v61, %v362_v4  ;;  %v285_v8 = vunpack.c.l.bf16 %v309_v57 }
  0x10   :  { %v184_v9 = vadd.f32 %v168_v62, %v90_v59  ;;  %v91_v10 = vadd.f32 %v367_v6, %v68_v63  ;;  %v169_v11 = vadd.f32 %v379_v12, %v146_v0  ;;  %v70_v13 = vmul.f32 %v253_v2, %v354_v1 }
  0x11   :  { %215 = vst [vmem:[%s534_s6 + $0x20] sm:$0xff] %v199_v3  ;;  %v92_v15 = vadd.f32 %v367_v6, %v69_v5  ;;  %v170_v16 = vadd.f32 %v379_v12, %v147_v7  ;;  %v148_v17 = vmul.f32 %v285_v8, %v362_v4  ;;  %v254_v18 = vunpack.c.h.bf16 %v302_v52 }
  0x12   :  { %v200_v20 = vmax.f32 %v184_v9, 0.0  ;;  %v185_v21 = vadd.f32 %v169_v11, %v91_v10  ;;  %v93_v22 = vadd.f32 %v367_v6, %v70_v13  ;;  %v286_v23 = vunpack.c.h.bf16 %v309_v57 }
  0x13   :  { %v186_v24 = vadd.f32 %v170_v16, %v92_v15  ;;  %v171_v25 = vadd.f32 %v379_v12, %v148_v17  ;;  %v71_v26 = vmul.f32 %v254_v18, %v354_v1  ;;  %v257_v27 = vunpack.c.l.bf16 %v303_v14 }
  0x14   :  { %216 = vst [vmem:[%s534_s6 + $0x28] sm:$0xff] %v200_v20  ;;  %v201_v28 = vmax.f32 %v185_v21, 0.0  ;;  %v149_v29 = vmul.f32 %v286_v23, %v362_v4  ;;  %v289_v30 = vunpack.c.l.bf16 %v310_v19  ;;  %v258_v31 = vunpack.c.h.bf16 %v303_v14 }
  0x15   :  { %v202_v34 = vmax.f32 %v186_v24, 0.0  ;;  %v187_v35 = vadd.f32 %v171_v25, %v93_v22  ;;  %v94_v36 = vadd.f32 %v367_v6, %v71_v26  ;;  %v72_v37 = vmul.f32 %v257_v27, %v354_v1 }
  0x16   :  { %217 = vst [vmem:[%s534_s6 + $0x30] sm:$0xff] %v201_v28  ;;  %v172_v38 = vadd.f32 %v379_v12, %v149_v29  ;;  %v150_v39 = vmul.f32 %v289_v30, %v362_v4  ;;  %v73_v40 = vmul.f32 %v258_v31, %v354_v1  ;;  %v290_v41 = vunpack.c.h.bf16 %v310_v19 }
  0x17   :  { %218 = vst [vmem:[%s534_s6 + $0x38] sm:$0xff] %v202_v34  ;;  %v203_v42 = vmax.f32 %v187_v35, 0.0  ;;  %v95_v43 = vadd.f32 %v367_v6, %v72_v37  ;;  %v261_v44 = vunpack.c.l.bf16 %v304_v32  ;;  %v293_v45 = vunpack.c.l.bf16 %v311_v33 }
  0x18   :  { %v188_v47 = vadd.f32 %v172_v38, %v94_v36  ;;  %v173_v48 = vadd.f32 %v379_v12, %v150_v39  ;;  %v96_v49 = vadd.f32 %v367_v6, %v73_v40  ;;  %v151_v50 = vmul.f32 %v290_v41, %v362_v4 }
  0x19   :  { %219 = vst [vmem:[%s534_s6 + $0x40] sm:$0xff] %v203_v42  ;;  %v74_v51 = vmul.f32 %v261_v44, %v354_v1  ;;  %v152_v52 = vmul.f32 %v293_v45, %v362_v4  ;;  %v262_v53 = vunpack.c.h.bf16 %v304_v32  ;;  %v294_v54 = vunpack.c.h.bf16 %v311_v33 }
  0x1a   :  { %v204_v56 = vmax.f32 %v188_v47, 0.0  ;;  %v189_v57 = vadd.f32 %v173_v48, %v95_v43  ;;  %v174_v58 = vadd.f32 %v379_v12, %v151_v50  ;;  %v265_v59 = vunpack.c.l.bf16 %v305_v46 }
  0x1b   :  { %v97_v60 = vadd.f32 %v367_v6, %v74_v51  ;;  %v175_v61 = vadd.f32 %v379_v12, %v152_v52  ;;  %v75_v62 = vmul.f32 %v262_v53, %v354_v1  ;;  %v153_v63 = vmul.f32 %v294_v54, %v362_v4 }
  0x1c   :  { %220 = vst [vmem:[%s534_s6 + $0x48] sm:$0xff] %v204_v56  ;;  %v205_v0 = vmax.f32 %v189_v57, 0.0  ;;  %v190_v2 = vadd.f32 %v174_v58, %v96_v49  ;;  %v76_v3 = vmul.f32 %v265_v59, %v354_v1  ;;  %v297_v5 = vunpack.c.l.bf16 %v312_v55 }
  0x1d   :  { %v191_v7 = vadd.f32 %v175_v61, %v97_v60  ;;  %v98_v8 = vadd.f32 %v367_v6, %v75_v62  ;;  %v176_v9 = vadd.f32 %v379_v12, %v153_v63  ;;  %v266_v10 = vunpack.c.h.bf16 %v305_v46 }
  0x1e   :  { %221 = vst [vmem:[%s534_s6 + $0x50] sm:$0xff] %v205_v0  ;;  %v206_v11 = vmax.f32 %v190_v2, 0.0  ;;  %v99_v13 = vadd.f32 %v367_v6, %v76_v3  ;;  %v154_v14 = vmul.f32 %v297_v5, %v362_v4  ;;  %v298_v15 = vunpack.c.h.bf16 %v312_v55 }
  0x1f   :  { %v207_v16 = vmax.f32 %v191_v7, 0.0  ;;  %v192_v17 = vadd.f32 %v176_v9, %v98_v8  ;;  %v77_v18 = vmul.f32 %v266_v10, %v354_v1 }
  0x20   :  { %222 = vst [vmem:[%s534_s6 + $0x58] sm:$0xff] %v206_v11  ;;  %v177_v19 = vadd.f32 %v379_v12, %v154_v14  ;;  %v155_v20 = vmul.f32 %v298_v15, %v362_v4 }
  0x21   :  { %223 = vst [vmem:[%s534_s6 + $0x60] sm:$0xff] %v207_v16  ;;  %v208_v21 = vmax.f32 %v192_v17, 0.0  ;;  %v100_v22 = vadd.f32 %v367_v6, %v77_v18 }
  0x22   :  { %v193_v23 = vadd.f32 %v177_v19, %v99_v13  ;;  %v178_v24 = vadd.f32 %v379_v12, %v155_v20 }
  0x23   :  { %224 = vst [vmem:[%s534_s6 + $0x68] sm:$0xff] %v208_v21 }
  0x24   :  { %v209_v1 = vmax.f32 %v193_v23, 0.0  ;;  %v194_v25 = vadd.f32 %v178_v24, %v100_v22 }
  0x26   :  { %225 = vst [vmem:[%s534_s6 + $0x70] sm:$0xff] %v209_v1  ;;  %v210_v4 = vmax.f32 %v194_v25, 0.0 }
  0x28   :  { %226 = vst [vmem:[%s534_s6 + $0x78] sm:$0xff] %v210_v4 }

// kernel: residual_forward.3
= control target key start
LH: loop header
LB: loop body
LE: loop exit
PB: predicated region body
PF: predicated region fallthrough
CT: control target
= control target key end

     0   :  { %s2487_s12 = smov 0   ;;  %s2829_s0 = inlined_call_operand.vmem [shape: bf16[2,36,9,128], index: 0, kind: input, shape index: {}]   ;;  %s2830_s1 = inlined_call_operand.vmem [shape: bf16[9,128,128], index: 1, kind: input, shape index: {}]   ;;  %s2831_s2 = inlined_call_operand.vmem [shape: bf16[2,64,128], index: 2, kind: output, shape index: {0}]   ;;  %s2832_s3 = inlined_call_operand.vmem [shape: f32[2,2,128], index: 3, kind: output, shape index: {1}]  }
   0x1 LB: > { %s1891_s13 = sadd.s32 4294967295, %s2465_s12   ;;  %p1895_p0 = scmp.ge.s32.totalorder %s2465_s12, 1  ;;  %s2465_s12 = sphi %s2487_s12, %s14_s12  }
   0x2   : > { %p140_p1 = scmp.lt.s32.totalorder %s2465_s12, 3 }
   0x4   : > { %p141_p2 = pnand %p1895_p0, %p140_p1 }
   0x6   : > { %144 = sbr.rel (%p141_p2) target bundleno = 402 (0x192), region = 28 }
   0xb   : > { %v2363_v0 = vld [vmem:[%s2830_s1 + $0x78] sm:$0xff]   ;;  %v2365_v2 = vld [vmem:[%s2830_s1 + $0x70] sm:$0xff]   ;;  %p168_p3 = scmp.lt.s32.totalorder %s1891_s13, 1  ;;  %v2367_v4 = vld [vmem:[%s2830_s1 + $0x68] sm:$0xff]  }
   0xc   : > { %v2364_v1 = vld [vmem:[%s2830_s1 + $0x38] sm:$0xff]   ;;  %2122 = vmatprep.subr.bf16.mxu0 %v2363_v0  ;;  %v2366_v3 = vld [vmem:[%s2830_s1 + $0x30] sm:$0xff]   ;;  %v2368_v5 = vld [vmem:[%s2830_s1 + $0x28] sm:$0xff]  }
   0xd   : > { %2146 = vmatprep.subr.bf16.mxu1 %v2364_v1  ;;  %2123 = vmatpush3.bf16.msra.mxu0 %v2363_v0  ;;  %s2842_s13 = smov (!%p168_p3, %s1891_s13), 1  ;;  %v2369_v6 = vld [vmem:[%s2830_s1 + $0x60] sm:$0xff]   ;;  %v2371_v8 = vld [vmem:[%s2830_s1 + $0x58] sm:$0xff]   ;;  %v2373_v10 = vld [vmem:[%s2830_s1 + $0x50] sm:$0xff]  }
   0xe   : > { %2147 = vmatpush3.bf16.msra.mxu1 %v2364_v1  ;;  %2124 = vmatprep.subr.bf16.mxu0 %v2365_v2  ;;  %v2370_v7 = vld [vmem:[%s2830_s1 + $0x20] sm:$0xff]   ;;  %s2354_s30 = smul.u32 288, %s2842_s13  ;;  %v2372_v9 = vld [vmem:[%s2830_s1 + $0x18] sm:$0xff]   ;;  %v2374_v11 = vld [vmem:[%s2830_s1 + $0x10] sm:$0xff]   ;;  %s1982_s15 = sshll.u32 %s2842_s13, 5 }
   0xf   : > { %2148 = vmatprep.subr.bf16.mxu1 %v2366_v3  ;;  %v2375_v12 = vld [vmem:[%s2830_s1 + $0x48] sm:$0xff]   ;;  %v2377_v17 = vld [vmem:[%s2830_s1 + $0x40] sm:$0xff]   ;;  %v2383_v24 = vld [vmem:[%s2830_s1 + $0xb8] sm:$0xff]   ;;  %s177_s19 = scalar_lea.vmem %s2831_s2, %s1982_s15  ;;  %s1899_s20 = sshll.u32 %s2842_s13, 1 }
  0x10   : > { %s2537_s16 = scalar_lea.vmem %s2829_s0, %s2354_s30  ;;  %v2376_v13 = vld [vmem:[%s2830_s1 + $0x8] sm:$0xff]   ;;  %v2378_v21 = vld [vmem:[%s2830_s1] sm:$0xff]   ;;  %v2384_v25 = vld [vmem:[%s2830_s1 + $0xf8] sm:$0xff]   ;;  %s181_s23 = scalar_lea.vmem %s2832_s3, %s1899_s20 }
  0x11   : > { %2125 = vmatpush3.bf16.msra.mxu0 %v2365_v2  ;;  %v2379_v14 = vld [vmem:[%s2537_s16 + $0x48] ss:$8 sps:$4 sm:$0xff]   ;;  %v2381_v26 = vld [vmem:[%s2537_s16 + $0x58] ss:$8 sps:$4 sm:$0xff]   ;;  %v184_v46 = vld [vmem:[%s2537_s16 + $0x4] sm:$0x1] }
  0x12   : > { %2149 = vmatpush3.bf16.msra.mxu1 %v2366_v3  ;;  %2126 = vmatprep.subr.bf16.mxu0 %v2367_v4  ;;  %v183_v15 = vld [vmem:[%s2537_s16] ss:$8 sps:$4 sm:$0xff]   ;;  %v187_v20 = vld [vmem:[%s2537_s16 + $0x10] ss:$8 sps:$4 sm:$0xff]   ;;  %v186_v47 = vld [vmem:[%s2537_s16 + $0xc] sm:$0x1]  ;;  %v256_v49 = vunpack.c.l.bf16 %v184_v46 }
  0x13   : > { %2150 = vmatprep.subr.bf16.mxu1 %v2368_v5  ;;  %v2380_v16 = vld [vmem:[%s2537_s16] ss:$8 sps:$4 sm:$0xff]   ;;  %v255_v18 = vunpack.c.l.bf16 %v183_v15  ;;  %v257_v19 = vunpack.c.h.bf16 %v183_v15  ;;  %2138 = vmatprep.mubr.bf16.mxu0 %v2379_v14  ;;  %v259_v22 = vunpack.c.l.bf16 %v187_v20  ;;  %v261_v23 = vunpack.c.h.bf16 %v187_v20  ;;  %v2382_v27 = vld [vmem:[%s2537_s16 + $0x10] ss:$8 sps:$4 sm:$0xff]   ;;  %v188_v48 = vld [vmem:[%s2537_s16 + $0x14] sm:$0x1] }
  0x14   : > { %2162 = vmatprep.mubr.bf16.mxu1 %v2380_v16  ;;  %v2385_v28 = vld [vmem:[%s2830_s1 + $0xb0] sm:$0xff]   ;;  %v2387_v30 = vld [vmem:[%s2830_s1 + $0xa8] sm:$0xff]   ;;  %v2395_v38 = vld [vmem:[%s2537_s16 + $0x78] ss:$8 sps:$4 sm:$0xff]   ;;  %v258_v50 = vunpack.c.l.bf16 %v186_v47  ;;  %v260_v52 = vunpack.c.l.bf16 %v188_v48  ;;  %328 = vst [vmem:[#allocation2 + $0x8] sm:$0x1] %v256_v49 }
  0x15   : > { %2127 = vmatpush3.bf16.msra.mxu0 %v2367_v4  ;;  %327 = vst [vmem:[#allocation2] sm:$0xff] %v255_v18  ;;  %329 = vst [vmem:[#allocation2 + $0x10] sm:$0xff] %v257_v19  ;;  %v2386_v29 = vld [vmem:[%s2830_s1 + $0xf0] sm:$0xff]   ;;  %v191_v32 = vld [vmem:[%s2537_s16 + $0x20] ss:$8 sps:$4 sm:$0xff]  }
  0x16   : > { %2151 = vmatpush3.bf16.msra.mxu1 %v2368_v5  ;;  %2128 = vmatprep.subr.bf16.mxu0 %v2369_v6  ;;  %331 = vst [vmem:[#allocation2 + $0x20] sm:$0xff] %v259_v22  ;;  %333 = vst [vmem:[#allocation2 + $0x30] sm:$0xff] %v261_v23  ;;  %v2393_v31 = vld [vmem:[%s2537_s16 + $0x68] ss:$8 sps:$4 sm:$0xff]   ;;  %v263_v35 = vunpack.c.l.bf16 %v191_v32  ;;  %v265_v36 = vunpack.c.h.bf16 %v191_v32  ;;  %v2389_v42 = vld [vmem:[%s2830_s1 + $0xa0] sm:$0xff]  }
  0x17   : > { %2152 = vmatprep.subr.bf16.mxu1 %v2370_v7  ;;  %v2394_v33 = vld [vmem:[%s2537_s16 + $0x20] ss:$8 sps:$4 sm:$0xff]   ;;  %v195_v37 = vld [vmem:[%s2537_s16 + $0x30] ss:$8 sps:$4 sm:$0xff]   ;;  %v190_v51 = vld [vmem:[%s2537_s16 + $0x1c] sm:$0x1] }
  0x18   : > { %v2388_v34 = vld [vmem:[%s2830_s1 + $0xe8] sm:$0xff]   ;;  %v267_v39 = vunpack.c.l.bf16 %v195_v37  ;;  %v269_v40 = vunpack.c.h.bf16 %v195_v37  ;;  %335 = vst [vmem:[#allocation2 + $0x40] sm:$0xff] %v263_v35  ;;  %337 = vst [vmem:[#allocation2 + $0x50] sm:$0xff] %v265_v36  ;;  %v2396_v41 = vld [vmem:[%s2537_s16 + $0x30] ss:$8 sps:$4 sm:$0xff]   ;;  %v262_v55 = vunpack.c.l.bf16 %v190_v51 }
  0x19   : > { %2129 = vmatpush3.bf16.msra.mxu0 %v2369_v6  ;;  %v2390_v43 = vld [vmem:[%s2830_s1 + $0xe0] sm:$0xff]   ;;  %v2391_v44 = vld [vmem:[%s2830_s1 + $0x98] sm:$0xff]   ;;  %330 = vst [vmem:[#allocation2 + $0x18] sm:$0x1] %v258_v50  ;;  %332 = vst [vmem:[#allocation2 + $0x28] sm:$0x1] %v260_v52 }
  0x1a   : > { %2153 = vmatpush3.bf16.msra.mxu1 %v2370_v7  ;;  %2130 = vmatprep.subr.bf16.mxu0 %v2371_v8  ;;  %339 = vst [vmem:[#allocation2 + $0x60] sm:$0xff] %v267_v39  ;;  %341 = vst [vmem:[#allocation2 + $0x70] sm:$0xff] %v269_v40  ;;  %v2392_v45 = vld [vmem:[%s2830_s1 + $0xd8] sm:$0xff]   ;;  %v2397_v58 = vld [vmem:[%s2830_s1 + $0x90] sm:$0xff]  }
  0x1b   : > { %2154 = vmatprep.subr.bf16.mxu1 %v2372_v9  ;;  %v219_v53 = vld [vmem:[%s2537_s16 + $0x90] ss:$8 sps:$4 sm:$0xff]   ;;  %334 = vst [vmem:[#allocation2 + $0x38] sm:$0x1] %v262_v55  ;;  %v223_v59 = vld [vmem:[%s2537_s16 + $0xa0] ss:$8 sps:$4 sm:$0xff]  }
  0x1c   : > { %v2403_v54 = vld [vmem:[%s2537_s16 + $0x90] ss:$8 sps:$4 sm:$0xff]   ;;  %v291_v56 = vunpack.c.l.bf16 %v219_v53  ;;  %v293_v57 = vunpack.c.h.bf16 %v219_v53  ;;  %v295_v61 = vunpack.c.l.bf16 %v223_v59  ;;  %v297_v62 = vunpack.c.h.bf16 %v223_v59  ;;  %v192_v63 = vld [vmem:[%s2537_s16 + $0x24] sm:$0x1]  ;;  %v194_v0 = vld [vmem:[%s2537_s16 + $0x2c] sm:$0x1] }
  0x1d   : > { %2131 = vmatpush3.bf16.msra.mxu0 %v2371_v8  ;;  %v2398_v60 = vld [vmem:[%s2830_s1 + $0xd0] sm:$0xff]   ;;  %v264_v1 = vunpack.c.l.bf16 %v192_v63  ;;  %v198_v3 = vld [vmem:[%s2537_s16 + $0x3c] sm:$0x1]  ;;  %v2399_v4 = vld [vmem:[%s2830_s1 + $0x88] sm:$0xff]   ;;  %v266_v5 = vunpack.c.l.bf16 %v194_v0 }
  0x1e   : > { %2155 = vmatpush3.bf16.msra.mxu1 %v2372_v9  ;;  %2132 = vmatprep.subr.bf16.mxu0 %v2373_v10  ;;  %363 = vst [vmem:[#allocation2 + $0x120] sm:$0xff] %v291_v56  ;;  %365 = vst [vmem:[#allocation2 + $0x130] sm:$0xff] %v293_v57  ;;  %v196_v2 = vld [vmem:[%s2537_s16 + $0x34] sm:$0x1]  ;;  %v270_v7 = vunpack.c.l.bf16 %v198_v3  ;;  %v2400_v8 = vld [vmem:[%s2830_s1 + $0xc8] sm:$0xff]  }
  0x1f   : > { %2156 = vmatprep.subr.bf16.mxu1 %v2374_v11  ;;  %367 = vst [vmem:[#allocation2 + $0x140] sm:$0xff] %v295_v61  ;;  %369 = vst [vmem:[#allocation2 + $0x150] sm:$0xff] %v297_v62  ;;  %v268_v6 = vunpack.c.l.bf16 %v196_v2  ;;  %v794_v9 = vld [vmem:[#allocation2 + $0x1] sm:$0xff]  ;;  %v2404_v23 = vld [vmem:[%s2830_s1 + $0x138] sm:$0xff]  }
  0x20   : > { %336 = vst [vmem:[#allocation2 + $0x48] sm:$0x1] %v264_v1  ;;  %338 = vst [vmem:[#allocation2 + $0x58] sm:$0x1] %v266_v5  ;;  %v2401_v15 = vld [vmem:[%s2830_s1 + $0x80] sm:$0xff]   ;;  %v2407_v32 = vld [vmem:[%s2830_s1 + $0x130] sm:$0xff]  }
  0x21   : > { %2133 = vmatpush3.bf16.msra.mxu0 %v2373_v10  ;;  %v2616_v10 = vld [vmem:[#allocation2 + $0x11] sm:$0xff]  ;;  %340 = vst [vmem:[#allocation2 + $0x68] sm:$0x1] %v268_v6  ;;  %342 = vst [vmem:[#allocation2 + $0x78] sm:$0x1] %v270_v7  ;;  %v2402_v19 = vld [vmem:[%s2830_s1 + $0xc0] sm:$0xff]  }
  0x22   : > { %2157 = vmatpush3.bf16.msra.mxu1 %v2374_v11  ;;  %2134 = vmatprep.subr.bf16.mxu0 %v2375_v12  ;;  %v2618_v11 = vld [vmem:[#allocation2 + $0x21] sm:$0xff]  ;;  %v2631_v22 = vld [vmem:[#allocation2 + $0x31] sm:$0xff]  ;;  %v226_v48 = vld [vmem:[%s2537_s16 + $0xac] sm:$0x1] }
  0x23   : > { %2158 = vmatprep.subr.bf16.mxu1 %v2376_v13  ;;  %v1604_v14 = vpack.c.bf16 %v2618_v11, %v2616_v10  ;;  %v231_v18 = vld [vmem:[%s2537_s16 + $0xc0] ss:$8 sps:$4 sm:$0xff]   ;;  %v2411_v36 = vld [vmem:[%s2537_s16 + $0xb0] ss:$8 sps:$4 sm:$0xff]   ;;  %v220_v40 = vld [vmem:[%s2537_s16 + $0x94] sm:$0x1]  ;;  %v298_v51 = vunpack.c.l.bf16 %v226_v48 }
  0x24   : > { %v303_v20 = vunpack.c.l.bf16 %v231_v18  ;;  %v2409_v35 = vld [vmem:[%s2830_s1 + $0x128] sm:$0xff]   ;;  %v2414_v46 = vld [vmem:[%s2830_s1 + $0x160] sm:$0xff]   ;;  %v2415_v52 = vld [vmem:[%s2830_s1 + $0x118] sm:$0xff]  }
  0x25   : > { %2135 = vmatpush3.bf16.msra.mxu0 %v2375_v12  ;;  %v802_v12 = vpack.c.bf16 %v2616_v10, %v794_v9  ;;  %v2412_v39 = vld [vmem:[%s2537_s16 + $0xc0] ss:$8 sps:$4 sm:$0xff]   ;;  %v224_v47 = vld [vmem:[%s2537_s16 + $0xa4] sm:$0x1]  ;;  %370 = vst [vmem:[#allocation2 + $0x158] sm:$0x1] %v298_v51 }
  0x26   : > { %2159 = vmatpush3.bf16.msra.mxu1 %v2376_v13  ;;  %2136 = vmatprep.subr.bf16.mxu0 %v2377_v17  ;;  %v227_v13 = vld [vmem:[%s2537_s16 + $0xb0] ss:$8 sps:$4 sm:$0xff]   ;;  %375 = vst [vmem:[#allocation2 + $0x180] sm:$0xff] %v303_v20  ;;  %v296_v50 = vunpack.c.l.bf16 %v224_v47  ;;  %v230_v55 = vld [vmem:[%s2537_s16 + $0xbc] sm:$0x1]  ;;  %v2419_v3 = vld [vmem:[%s2830_s1 + $0x108] sm:$0xff]  }
  0x27   : > { %2160 = vmatprep.subr.bf16.mxu1 %v2378_v21  ;;  %v299_v16 = vunpack.c.l.bf16 %v227_v13  ;;  %v2423_v49 = vld [vmem:[%s2537_s16 + $0xd8] ss:$8 sps:$4 sm:$0xff]   ;;  %v232_v56 = vld [vmem:[%s2537_s16 + $0xc4] sm:$0x1]  ;;  %v234_v61 = vld [vmem:[%s2537_s16 + $0xcc] sm:$0x1] }
  0x28   : > { %v2664_v37 = vld [vmem:[#allocation2 + $0x71] sm:$0xff]  ;;  %368 = vst [vmem:[#allocation2 + $0x148] sm:$0x1] %v296_v50  ;;  %v304_v62 = vunpack.c.l.bf16 %v232_v56  ;;  %v306_v1 = vunpack.c.l.bf16 %v234_v61  ;;  %v2421_v5 = vld [vmem:[%s2830_s1 + $0x100] sm:$0xff]   ;;  %v2439_v47 = vld [vmem:[%s2830_s1 + $0x188] sm:$0xff]  }
  0x29   : > { %2137 = vmatpush3.bf16.msra.mxu0 %v2377_v17  ;;  %v301_v17 = vunpack.c.h.bf16 %v227_v13  ;;  %371 = vst [vmem:[#allocation2 + $0x160] sm:$0xff] %v299_v16  ;;  %v2416_v53 = vld [vmem:[%s2830_s1 + $0x158] sm:$0xff]   ;;  %v2417_v63 = vld [vmem:[%s2830_s1 + $0x110] sm:$0xff]   ;;  %v2422_v6 = vld [vmem:[%s2830_s1 + $0x140] sm:$0xff]  }
  0x2a   : > { %2161 = vmatpush3.bf16.msra.mxu1 %v2378_v21  ;;  %2170 = vmatprep.subr.bf16.mxu0 %v2383_v24  ;;  %v305_v21 = vunpack.c.h.bf16 %v231_v18  ;;  %v2418_v2 = vld [vmem:[%s2830_s1 + $0x150] sm:$0xff]   ;;  %376 = vst [vmem:[#allocation2 + $0x188] sm:$0x1] %v304_v62  ;;  %378 = vst [vmem:[#allocation2 + $0x198] sm:$0x1] %v306_v1  ;;  %v2425_v7 = vld [vmem:[%s2830_s1 + $0x1b8] sm:$0xff]  }
  0x2b   : > { %2194 = vmatprep.subr.bf16.mxu1 %v2384_v25  ;;  %373 = vst [vmem:[#allocation2 + $0x170] sm:$0xff] %v301_v17  ;;  %v2424_v13 = vld [vmem:[%s2537_s16 + $0xe8] ss:$8 sps:$4 sm:$0xff]   ;;  %v2442_v50 = vld [vmem:[%s2830_s1 + $0x1c0] sm:$0xff]   ;;  %v2446_v51 = vld [vmem:[%s2830_s1 + $0x238] sm:$0xff]  }
  0x2c   : > { %2139 = vmatmul.mubr.bf16.vlgmr.msra.gmra.mxu0 %v2381_v26  ;;  %377 = vst [vmem:[#allocation2 + $0x190] sm:$0xff] %v305_v21  ;;  %v2641_v26 = vld [vmem:[#allocation2 + $0x51] sm:$0xff]  ;;  %v199_v18 = vld [vmem:[%s2537_s16 + $0x40] ss:$72 sps:$4 sm:$0xff]  }
  0x2d   : > { %2163 = vmatmul.mubr.bf16.vlgmr.msra.gmra.mxu1 %v2382_v27  ;;  %2171 = vmatpush3.bf16.msra.mxu0 %v2383_v24  ;;  %v2636_v24 = vld [vmem:[#allocation2 + $0x41] sm:$0xff]  ;;  %v1198_v9 = vld [vmem:[#allocation2 + $0x151] sm:$0xff]  ;;  %v271_v20 = vunpack.c.l.bf16 %v199_v18 }
  0x2e   : > { %2195 = vmatpush3.bf16.msra.mxu1 %v2384_v25  ;;  %2172 = vmatprep.subr.bf16.mxu0 %v2385_v28  ;;  %v2405_v25 = vld [vmem:[%s2830_s1 + $0x178] sm:$0xff]   ;;  %v2643_v27 = vld [vmem:[#allocation2 + $0x61] sm:$0xff]  ;;  %v2428_v21 = vld [vmem:[%s2830_s1 + $0x1f0] sm:$0xff]  }
  0x2f   : > { %2196 = vmatprep.subr.bf16.mxu1 %v2386_v29  ;;  %2142 = vmatprep.mubr.bf16.mxu0 %v2393_v31  ;;  %v2406_v31 = vld [vmem:[%s2537_s16 + $0xa0] ss:$8 sps:$4 sm:$0xff]   ;;  %343 = vst [vmem:[#allocation2 + $0x80] sm:$0xff] %v271_v20  ;;  %v2452_v56 = vld [vmem:[%s2537_s16 + $0x70] ss:$8 sps:$4 sm:$0xff]  }
  0x30   : > { %2166 = vmatprep.mubr.bf16.mxu1 %v2394_v33  ;;  %v2408_v33 = vld [vmem:[%s2830_s1 + $0x170] sm:$0xff]   ;;  %v2440_v48 = vld [vmem:[%s2830_s1 + $0x1c8] sm:$0xff]   ;;  %v2455_v61 = vld [vmem:[%s2830_s1 + $0x218] sm:$0xff]  }
  0x31   : > { %2173 = vmatpush3.bf16.msra.mxu0 %v2385_v28  ;;  %v1605_v28 = vpack.c.bf16 %v2636_v24, %v2631_v22  ;;  %v2456_v62 = vld [vmem:[%s2830_s1 + $0x210] sm:$0xff]   ;;  %v2457_v10 = vld [vmem:[%s2830_s1 + $0x208] sm:$0xff]  }
  0x32   : > { %2197 = vmatpush3.bf16.msra.mxu1 %v2386_v29  ;;  %2174 = vmatprep.subr.bf16.mxu0 %v2387_v30  ;;  %v803_v29 = vpack.c.bf16 %v2631_v22, %v2618_v11  ;;  %v2458_v11 = vld [vmem:[%s2830_s1 + $0x200] sm:$0xff]  }
  0x33   : > { %2198 = vmatprep.subr.bf16.mxu1 %v2388_v34 }
  0x34   : > { %2143 = vmatmul.mubr.bf16.gmra.mxu0 %v2395_v38  ;;  %v2410_v38 = vld [vmem:[%s2830_s1 + $0x168] sm:$0xff]  }
  0x35   : > { %2175 = vmatpush3.bf16.msra.mxu0 %v2387_v30  ;;  %2167 = vmatmul.mubr.bf16.gmra.mxu1 %v2396_v41  ;;  %v1606_v30 = vpack.c.bf16 %v2643_v27, %v2641_v26  ;;  %v222_v41 = vld [vmem:[%s2537_s16 + $0x9c] sm:$0x1] }
  0x36   : > { %2199 = vmatpush3.bf16.msra.mxu1 %v2388_v34  ;;  %2176 = vmatprep.subr.bf16.mxu0 %v2389_v42  ;;  %v804_v34 = vpack.c.bf16 %v2641_v26, %v2636_v24 }
  0x37   : > { %2200 = vmatprep.subr.bf16.mxu1 %v2390_v43  ;;  %2210 = vmatprep.mubr.bf16.mxu1 %v2403_v54  ;;  %v228_v54 = vld [vmem:[%s2537_s16 + $0xb4] sm:$0x1] }
  0x38   : > { %2186 = vmatprep.mubr.bf16.mxu0 %v802_v12  ;;  %v300_v59 = vunpack.c.l.bf16 %v228_v54  ;;  %v2426_v12 = vld [vmem:[%s2830_s1 + $0x1f8] sm:$0xff]   ;;  %v2448_v54 = vld [vmem:[%s2830_s1 + $0x230] sm:$0xff]  }
  0x39   : > { %2177 = vmatpush3.bf16.msra.mxu0 %v2389_v42  ;;  %v805_v42 = vpack.c.bf16 %v2664_v37, %v2643_v27 }
  0x3a   : > { %2201 = vmatpush3.bf16.msra.mxu1 %v2390_v43  ;;  %2178 = vmatprep.subr.bf16.mxu0 %v2391_v44  ;;  %v2413_v43 = vld [vmem:[%s2830_s1 + $0x120] sm:$0xff]   ;;  %372 = vst [vmem:[#allocation2 + $0x168] sm:$0x1] %v300_v59 }
  0x3b   : > { %2202 = vmatprep.subr.bf16.mxu1 %v2392_v45  ;;  %v2453_v59 = vld [vmem:[%s2537_s16 + $0x80] ss:$8 sps:$4 sm:$0xff]  }
  0x3d   : > { %2179 = vmatpush3.bf16.msra.mxu0 %v2391_v44  ;;  %v292_v44 = vunpack.c.l.bf16 %v220_v40  ;;  %v2434_v40 = vld [vmem:[%s2830_s1 + $0x1e0] sm:$0xff]  }
  0x3e   : > { %2203 = vmatpush3.bf16.msra.mxu1 %v2392_v45  ;;  %2180 = vmatprep.subr.bf16.mxu0 %v2397_v58  ;;  %v294_v45 = vunpack.c.l.bf16 %v222_v41  ;;  %v2443_v41 = vld [vmem:[%s2537_s16 + $0x8] ss:$8 sps:$4 sm:$0xff]  }
  0x3f   : > { %2204 = vmatprep.subr.bf16.mxu1 %v2398_v60  ;;  %364 = vst [vmem:[#allocation2 + $0x128] sm:$0x1] %v292_v44  ;;  %v2436_v44 = vld [vmem:[%s2830_s1 + $0x1d8] sm:$0xff]  }
  0x40   : > { %366 = vst [vmem:[#allocation2 + $0x138] sm:$0x1] %v294_v45  ;;  %v2437_v45 = vld [vmem:[%s2830_s1 + $0x190] sm:$0xff]  }
  0x41   : > { %2181 = vmatpush3.bf16.msra.mxu0 %v2397_v58  ;;  %v1199_v16 = vld [vmem:[#allocation2 + $0x161] sm:$0xff] }
  0x42   : > { %2205 = vmatpush3.bf16.msra.mxu1 %v2398_v60  ;;  %2182 = vmatprep.subr.bf16.mxu0 %v2399_v4  ;;  %v302_v60 = vunpack.c.l.bf16 %v230_v55  ;;  %v2449_v55 = vld [vmem:[%s2537_s16 + $0x28] ss:$8 sps:$4 sm:$0xff]  }
  0x43   : > { %2206 = vmatprep.subr.bf16.mxu1 %v2400_v8 }
  0x44   : > { %374 = vst [vmem:[#allocation2 + $0x178] sm:$0x1] %v302_v60  ;;  %v2454_v60 = vld [vmem:[%s2830_s1 + $0x220] sm:$0xff]  }
  0x45   : > { %2183 = vmatpush3.bf16.msra.mxu0 %v2399_v4  ;;  %v2420_v4 = vld [vmem:[%s2830_s1 + $0x148] sm:$0xff]  }
  0x46   : > { %2207 = vmatpush3.bf16.msra.mxu1 %v2400_v8  ;;  %2184 = vmatprep.subr.bf16.mxu0 %v2401_v15  ;;  %v1195_v57 = vld [vmem:[#allocation2 + $0x121] sm:$0xff] }
  0x47   : > { %2208 = vmatprep.subr.bf16.mxu1 %v2402_v19  ;;  %v1196_v58 = vld [vmem:[#allocation2 + $0x131] sm:$0xff]  ;;  %v1197_v8 = vld [vmem:[#allocation2 + $0x141] sm:$0xff] }
  0x48   : > { %v1203_v0 = vpack.c.bf16 %v1196_v58, %v1195_v57  ;;  %v2451_v57 = vld [vmem:[%s2830_s1 + $0x228] sm:$0xff]   ;;  %v2450_v58 = vld [vmem:[%s2537_s16 + $0x38] ss:$8 sps:$4 sm:$0xff]  }
  0x49   : > { %2185 = vmatpush3.bf16.msra.mxu0 %v2401_v15  ;;  %v1204_v15 = vpack.c.bf16 %v1198_v9, %v1197_v8 }
  0x4a   : > { %2209 = vmatpush3.bf16.msra.mxu1 %v2402_v19  ;;  %2218 = vmatprep.subr.bf16.mxu0 %v2404_v23  ;;  %v2427_v19 = vld [vmem:[%s2830_s1 + $0x1b0] sm:$0xff]  }
  0x4b   : > { %2242 = vmatprep.subr.bf16.mxu1 %v2405_v25  ;;  %v1200_v17 = vld [vmem:[#allocation2 + $0x171] sm:$0xff] }
  0x4c   : > { %2187 = vmatmul.mubr.bf16.vlgmr.msra.gmra.mxu0 %v803_v29  ;;  %v1205_v29 = vpack.c.bf16 %v1200_v17, %v1199_v16 }
  0x4d   : > { %2211 = vmatmul.mubr.bf16.vlgmr.msra.gmra.mxu1 %v2406_v31  ;;  %2219 = vmatpush3.bf16.msra.mxu0 %v2404_v23  ;;  %v2429_v23 = vld [vmem:[%s2537_s16 + $0xf8] ss:$8 sps:$4 sm:$0xff]  }
  0x4e   : > { %2243 = vmatpush3.bf16.msra.mxu1 %v2405_v25  ;;  %2220 = vmatprep.subr.bf16.mxu0 %v2407_v32  ;;  %v2431_v25 = vld [vmem:[%s2830_s1 + $0x1a8] sm:$0xff]  }
  0x4f   : > { %2244 = vmatprep.subr.bf16.mxu1 %v2408_v33  ;;  %2190 = vmatprep.mubr.bf16.mxu0 %v804_v34  ;;  %v1201_v31 = vld [vmem:[#allocation2 + $0x181] sm:$0xff] }
  0x50   : > { %2214 = vmatprep.mubr.bf16.mxu1 %v2411_v36  ;;  %v2430_v34 = vld [vmem:[%s2537_s16 + $0x108] ss:$8 sps:$4 sm:$0xff]   ;;  %v200_v36 = vld [vmem:[%s2537_s16 + $0x44] sm:$0x1] }
  0x51   : > { %2221 = vmatpush3.bf16.msra.mxu0 %v2407_v32  ;;  %v1202_v32 = vld [vmem:[#allocation2 + $0x191] sm:$0xff] }
  0x52   : > { %2245 = vmatpush3.bf16.msra.mxu1 %v2408_v33  ;;  %2222 = vmatprep.subr.bf16.mxu0 %v2409_v35  ;;  %v2432_v33 = vld [vmem:[%s2830_s1 + $0x1e8] sm:$0xff]  }
  0x53   : > { %2246 = vmatprep.subr.bf16.mxu1 %v2410_v38 }
  0x54   : > { %2191 = vmatmul.mubr.bf16.gmra.mxu0 %v805_v42  ;;  %v2445_v42 = vld [vmem:[%s2537_s16 + $0x50] ss:$8 sps:$4 sm:$0xff]  }
  0x55   : > { %2223 = vmatpush3.bf16.msra.mxu0 %v2409_v35  ;;  %2215 = vmatmul.mubr.bf16.gmra.mxu1 %v2412_v39  ;;  %v1206_v35 = vpack.c.bf16 %v1202_v32, %v1201_v31  ;;  %v272_v39 = vunpack.c.l.bf16 %v200_v36 }
  0x56   : > { %2247 = vmatpush3.bf16.msra.mxu1 %v2410_v38  ;;  %2224 = vmatprep.subr.bf16.mxu0 %v2413_v43  ;;  %v2433_v38 = vld [vmem:[%s2830_s1 + $0x1a0] sm:$0xff]  }
  0x57   : > { %2248 = vmatprep.subr.bf16.mxu1 %v2414_v46  ;;  %2234 = vmatprep.mubr.bf16.mxu0 %v2423_v49  ;;  %344 = vst [vmem:[#allocation2 + $0x88] sm:$0x1] %v272_v39  ;;  %v2441_v49 = vld [vmem:[%s2830_s1 + $0x180] sm:$0xff]  }
  0x58   : > { %2258 = vmatprep.mubr.bf16.mxu1 %v1203_v0 }
  0x59   : > { %2225 = vmatpush3.bf16.msra.mxu0 %v2413_v43  ;;  %v2435_v43 = vld [vmem:[%s2830_s1 + $0x198] sm:$0xff]  }
  0x5a   : > { %2249 = vmatpush3.bf16.msra.mxu1 %v2414_v46  ;;  %2226 = vmatprep.subr.bf16.mxu0 %v2415_v52  ;;  %v2438_v46 = vld [vmem:[%s2830_s1 + $0x1d0] sm:$0xff]  }
  0x5b   : > { %2250 = vmatprep.subr.bf16.mxu1 %v2416_v53 }
  0x5d   : > { %2227 = vmatpush3.bf16.msra.mxu0 %v2415_v52  ;;  %v2444_v52 = vld [vmem:[%s2537_s16 + $0x18] ss:$8 sps:$4 sm:$0xff]  }
  0x5e   : > { %2251 = vmatpush3.bf16.msra.mxu1 %v2416_v53  ;;  %2228 = vmatprep.subr.bf16.mxu0 %v2417_v63  ;;  %v2447_v53 = vld [vmem:[%s2537_s16 + $0x60] ss:$8 sps:$4 sm:$0xff]  }
  0x5f   : > { %2252 = vmatprep.subr.bf16.mxu1 %v2418_v2 }
  0x61   : > { %2229 = vmatpush3.bf16.msra.mxu0 %v2417_v63 }
  0x62   : > { %2253 = vmatpush3.bf16.msra.mxu1 %v2418_v2  ;;  %2230 = vmatprep.subr.bf16.mxu0 %v2419_v3 }
  0x63   : > { %2254 = vmatprep.subr.bf16.mxu1 %v2420_v4 }
  0x65   : > { %2231 = vmatpush3.bf16.msra.mxu0 %v2419_v3 }
  0x66   : > { %2255 = vmatpush3.bf16.msra.mxu1 %v2420_v4  ;;  %2232 = vmatprep.subr.bf16.mxu0 %v2421_v5 }
  0x67   : > { %2256 = vmatprep.subr.bf16.mxu1 %v2422_v6 }
  0x69   : > { %2233 = vmatpush3.bf16.msra.mxu0 %v2421_v5 }
  0x6a   : > { %2257 = vmatpush3.bf16.msra.mxu1 %v2422_v6  ;;  %2266 = vmatprep.subr.bf16.mxu0 %v2425_v7 }
  0x6b   : > { %2290 = vmatprep.subr.bf16.mxu1 %v2426_v12 }
  0x6c   : > { %2235 = vmatmul.mubr.bf16.vlgmr.msra.gmra.mxu0 %v2424_v13 }
  0x6d   : > { %2259 = vmatmul.mubr.bf16.vlgmr.msra.gmra.mxu1 %v1204_v15  ;;  %2267 = vmatpush3.bf16.msra.mxu0 %v2425_v7 }
  0x6e   : > { %2291 = vmatpush3.bf16.msra.mxu1 %v2426_v12  ;;  %2268 = vmatprep.subr.bf16.mxu0 %v2427_v19 }
  0x6f   : > { %2292 = vmatprep.subr.bf16.mxu1 %v2428_v21  ;;  %2238 = vmatprep.mubr.bf16.mxu0 %v2429_v23 }
  0x70   : > { %2262 = vmatprep.mubr.bf16.mxu1 %v1205_v29 }
  0x71   : > { %2269 = vmatpush3.bf16.msra.mxu0 %v2427_v19 }
  0x72   : > { %2293 = vmatpush3.bf16.msra.mxu1 %v2428_v21  ;;  %2270 = vmatprep.subr.bf16.mxu0 %v2431_v25 }
  0x73   : > { %2294 = vmatprep.subr.bf16.mxu1 %v2432_v33 }
  0x74   : > { %2239 = vmatmul.mubr.bf16.gmra.mxu0 %v2430_v34 }
  0x75   : > { %2271 = vmatpush3.bf16.msra.mxu0 %v2431_v25  ;;  %2263 = vmatmul.mubr.bf16.gmra.mxu1 %v1206_v35 }
  0x76   : > { %2295 = vmatpush3.bf16.msra.mxu1 %v2432_v33  ;;  %2272 = vmatprep.subr.bf16.mxu0 %v2433_v38 }
  0x77   : > { %2296 = vmatprep.subr.bf16.mxu1 %v2434_v40  ;;  %2282 = vmatprep.mubr.bf16.mxu0 %v2443_v41 }
  0x78   : > { %2306 = vmatprep.mubr.bf16.mxu1 %v2445_v42 }
  0x79   : > { %2273 = vmatpush3.bf16.msra.mxu0 %v2433_v38 }
  0x7a   : > { %2297 = vmatpush3.bf16.msra.mxu1 %v2434_v40  ;;  %2274 = vmatprep.subr.bf16.mxu0 %v2435_v43 }
  0x7b   : > { %2298 = vmatprep.subr.bf16.mxu1 %v2436_v44 }
  0x7d   : > { %2275 = vmatpush3.bf16.msra.mxu0 %v2435_v43 }
  0x7e   : > { %2299 = vmatpush3.bf16.msra.mxu1 %v2436_v44  ;;  %2276 = vmatprep.subr.bf16.mxu0 %v2437_v45 }
  0x7f   : > { %2300 = vmatprep.subr.bf16.mxu1 %v2438_v46 }
  0x81   : > { %2277 = vmatpush3.bf16.msra.mxu0 %v2437_v45 }
  0x82   : > { %2301 = vmatpush3.bf16.msra.mxu1 %v2438_v46  ;;  %2278 = vmatprep.subr.bf16.mxu0 %v2439_v47 }
  0x83   : > { %2302 = vmatprep.subr.bf16.mxu1 %v2440_v48 }
  0x85   : > { %2279 = vmatpush3.bf16.msra.mxu0 %v2439_v47 }
  0x86   : > { %2303 = vmatpush3.bf16.msra.mxu1 %v2440_v48  ;;  %2280 = vmatprep.subr.bf16.mxu0 %v2441_v49 }
  0x87   : > { %2304 = vmatprep.subr.bf16.mxu1 %v2442_v50 }
  0x89   : > { %2281 = vmatpush3.bf16.msra.mxu0 %v2441_v49 }
  0x8a   : > { %2305 = vmatpush3.bf16.msra.mxu1 %v2442_v50  ;;  %2314 = vmatprep.subr.bf16.mxu0 %v2446_v51 }
  0x8b   : > { %2338 = vmatprep.subr.bf16.mxu1 %v2446_v51 }
  0x8c   : > { %2283 = vmatmul.mubr.bf16.vlgmr.msra.gmra.mxu0 %v2444_v52 }
  0x8d   : > { %2307 = vmatmul.mubr.bf16.vlgmr.msra.gmra.mxu1 %v2447_v53  ;;  %2315 = vmatpush3.bf16.msra.mxu0 %v2446_v51 }
  0x8e   : > { %2346 = vmatpush3.bf16.msra.mxu1 %v2446_v51  ;;  %2316 = vmatprep.subr.bf16.mxu0 %v2448_v54 }
  0x8f   : > { %2339 = vmatprep.subr.bf16.mxu1 %v2448_v54  ;;  %2286 = vmatprep.mubr.bf16.mxu0 %v2449_v55 }
  0x90   : > { %2310 = vmatprep.mubr.bf16.mxu1 %v2452_v56 }
  0x91   : > { %2317 = vmatpush3.bf16.msra.mxu0 %v2448_v54 }
  0x92   : > { %2347 = vmatpush3.bf16.msra.mxu1 %v2448_v54  ;;  %2318 = vmatprep.subr.bf16.mxu0 %v2451_v57 }
  0x93   : > { %2340 = vmatprep.subr.bf16.mxu1 %v2451_v57 }
  0x94   : > { %2287 = vmatmul.mubr.bf16.gmra.mxu0 %v2450_v58 }
  0x95   : > { %2319 = vmatpush3.bf16.msra.mxu0 %v2451_v57  ;;  %2311 = vmatmul.mubr.bf16.gmra.mxu1 %v2453_v59 }
  0x96   : > { %2348 = vmatpush3.bf16.msra.mxu1 %v2451_v57  ;;  %2320 = vmatprep.subr.bf16.mxu0 %v2454_v60 }
  0x97   : > { %2341 = vmatprep.subr.bf16.mxu1 %v2454_v60  ;;  %2330 = vmatprep.mubr.bf16.mxu0 %v1604_v14  ;;  %v1603_v14 = vld [vmem:[#allocation2 + $0x81] sm:$0xff] }
  0x98   : > { %2334 = vmatprep.mubr.bf16.mxu1 %v1606_v30  ;;  %v1607_v26 = vpack.c.bf16 %v1603_v14, %v2664_v37 }
  0x99   : > { %2321 = vmatpush3.bf16.msra.mxu0 %v2454_v60 }
  0x9a   : > { %2349 = vmatpush3.bf16.msra.mxu1 %v2454_v60  ;;  %2322 = vmatprep.subr.bf16.mxu0 %v2455_v61 }
  0x9b   : > { %2342 = vmatprep.subr.bf16.mxu1 %v2455_v61 }
  0x9d   : > { %2323 = vmatpush3.bf16.msra.mxu0 %v2455_v61 }
  0x9e   : > { %2350 = vmatpush3.bf16.msra.mxu1 %v2455_v61  ;;  %2324 = vmatprep.subr.bf16.mxu0 %v2456_v62 }
  0x9f   : > { %2343 = vmatprep.subr.bf16.mxu1 %v2456_v62 }
  0xa1   : > { %2325 = vmatpush3.bf16.msra.mxu0 %v2456_v62 }
  0xa2   : > { %2351 = vmatpush3.bf16.msra.mxu1 %v2456_v62  ;;  %2326 = vmatprep.subr.bf16.mxu0 %v2457_v10 }
  0xa3   : > { %2344 = vmatprep.subr.bf16.mxu1 %v2457_v10 }
  0xa5   : > { %2327 = vmatpush3.bf16.msra.mxu0 %v2457_v10 }
  0xa6   : > { %2352 = vmatpush3.bf16.msra.mxu1 %v2457_v10  ;;  %2328 = vmatprep.subr.bf16.mxu0 %v2458_v11 }
  0xa7   : > { %2345 = vmatprep.subr.bf16.mxu1 %v2458_v11 }
  0xa9   : > { %2329 = vmatpush3.bf16.msra.mxu0 %v2458_v11 }
  0xaa   : > { %2353 = vmatpush3.bf16.msra.mxu1 %v2458_v11 }
  0xac   : > { %2331 = vmatmul.mubr.bf16.vlgmr.msra.gmra.mxu0 %v1605_v28 }
  0xad   : > { %2335 = vmatmul.mubr.bf16.vlgmr.msra.gmra.mxu1 %v1607_v26 }
  0xec   : > { %v2140_v27 = vpop.f32.mrf.mxu0 }
  0xed   : > { %v2164_v30 = vpop.f32.mrf.mxu1 }
  0xee   : > { %v650_v63 = vpop.f32.mrf.mxu0  ;;  %v772_v59 = vadd.f32 %v2164_v30, %v2140_v27 }
  0xef   : > { %v763_v0 = vpop.f32.mrf.mxu1 }
  0xf0   : > { %v2141_v1 = vpop.f32.mrf.mxu0  ;;  %v764_v60 = vadd.f32 %v763_v0, %v650_v63 }
  0xf1   : > { %v2165_v2 = vpop.f32.mrf.mxu1 }
  0xf2   : > { %v653_v3 = vpop.f32.mrf.mxu0  ;;  %v775_v61 = vadd.f32 %v2165_v2, %v2141_v1 }
  0xf3   : > { %v766_v4 = vpop.f32.mrf.mxu1 }
  0xf4   : > { %v2144_v5 = vpop.f32.mrf.mxu0  ;;  %v767_v14 = vadd.f32 %v766_v4, %v653_v3 }
  0xf5   : > { %v2168_v6 = vpop.f32.mrf.mxu1 }
  0xf6   : > { %v666_v7 = vpop.f32.mrf.mxu0  ;;  %v788_v62 = vadd.f32 %v2168_v6, %v2144_v5 }
  0xf7   : > { %v779_v8 = vpop.f32.mrf.mxu1 }
  0xf8   : > { %v2145_v9 = vpop.f32.mrf.mxu0 }
  0xf9   : > { %v2169_v37 = vpop.f32.mrf.mxu1 }
  0xfa   : > { %v669_v12 = vpop.f32.mrf.mxu0  ;;  %v791_v10 = vadd.f32 %v2169_v37, %v2145_v9 }
  0xfb   : > { %v782_v13 = vpop.f32.mrf.mxu1 }
  0xfc   : > { %v783_v27 = vadd.f32 %v782_v13, %v669_v12 }
 0x10c   : > { %v2188_v15 = vpop.f32.mrf.mxu0 }
 0x10d   : > { %v2212_v22 = vpop.f32.mrf.mxu1  ;;  %v921_v26 = vadd.f32 %v2188_v15, %v772_v59 }
 0x10e   : > { %v888_v24 = vpop.f32.mrf.mxu0 }
 0x10f   : > { %v1022_v28 = vpop.f32.mrf.mxu1  ;;  %v1055_v6 = vadd.f32 %v2212_v22, %v921_v26 }
 0x110   : > { %v2189_v16 = vpop.f32.mrf.mxu0 }
 0x111   : > { %v2213_v17 = vpop.f32.mrf.mxu1 }
 0x112   : > { %v891_v18 = vpop.f32.mrf.mxu0 }
 0x113   : > { %v1025_v19 = vpop.f32.mrf.mxu1  ;;  %v920_v63 = vadd.f32 %v891_v18, %v767_v14 }
 0x114   : > { %v2192_v20 = vpop.f32.mrf.mxu0 }
 0x115   : > { %v2216_v21 = vpop.f32.mrf.mxu1  ;;  %v925_v30 = vadd.f32 %v2192_v20, %v788_v62  ;;  %v1054_v59 = vadd.f32 %v1025_v19, %v920_v63 }
 0x116   : > { %v904_v23 = vpop.f32.mrf.mxu0 }
 0x117   : > { %v1038_v25 = vpop.f32.mrf.mxu1  ;;  %v1059_v4 = vadd.f32 %v2216_v21, %v925_v30 }
 0x118   : > { %v2193_v29 = vpop.f32.mrf.mxu0 }
 0x119   : > { %v2217_v31 = vpop.f32.mrf.mxu1  ;;  %v926_v0 = vadd.f32 %v2193_v29, %v791_v10 }
 0x11a   : > { %v907_v32 = vpop.f32.mrf.mxu0 }
 0x11b   : > { %v1041_v33 = vpop.f32.mrf.mxu1  ;;  %v924_v2 = vadd.f32 %v907_v32, %v783_v27  ;;  %v1060_v15 = vadd.f32 %v2217_v31, %v926_v0 }
 0x12c   : > { %v2236_v34 = vpop.f32.mrf.mxu0 }
 0x12d   : > { %v2260_v35 = vpop.f32.mrf.mxu1 }
 0x12e   : > { %v1156_v36 = vpop.f32.mrf.mxu0 }
 0x12f   : > { %v1289_v38 = vpop.f32.mrf.mxu1 }
 0x130   : > { %v2237_v39 = vpop.f32.mrf.mxu0 }
 0x131   : > { %v2261_v40 = vpop.f32.mrf.mxu1 }
 0x132   : > { %v1159_v41 = vpop.f32.mrf.mxu0 }
 0x133   : > { %v1292_v42 = vpop.f32.mrf.mxu1  ;;  %v1188_v20 = vadd.f32 %v1159_v41, %v1054_v59 }
 0x134   : > { %v2240_v43 = vpop.f32.mrf.mxu0 }
 0x135   : > { %v2264_v44 = vpop.f32.mrf.mxu1  ;;  %v1321_v31 = vadd.f32 %v1292_v42, %v1188_v20 }
 0x136   : > { %v1172_v45 = vpop.f32.mrf.mxu0 }
 0x137   : > { %v1305_v46 = vpop.f32.mrf.mxu1 }
 0x138   : > { %v2241_v47 = vpop.f32.mrf.mxu0 }
 0x139   : > { %v2265_v48 = vpop.f32.mrf.mxu1  ;;  %v1194_v12 = vadd.f32 %v2241_v47, %v1060_v15 }
 0x13a   : > { %v1175_v49 = vpop.f32.mrf.mxu0 }
 0x13b   : > { %v1308_v50 = vpop.f32.mrf.mxu1 }
 0x14c   : > { %v2284_v51 = vpop.f32.mrf.mxu0 }
 0x14d   : > { %v2806_v52 = vpop.f32.mrf.mxu1 }
 0x14e   : > { %2833 = vst [vmem:[#allocation3_spill] sm:$0xff] %v2806_v52  ;;  %v1423_v53 = vpop.f32.mrf.mxu0  ;;  %v919_v52 = vadd.f32 %v888_v24, %v764_v60  ;;  %v1189_v24 = vadd.f32 %v2236_v34, %v1055_v6 }
 0x14f   : > { %v2808_v54 = vpop.f32.mrf.mxu1 }
 0x150   : > { %2834 = vst [vmem:[#allocation4_spill] sm:$0xff] %v2808_v54  ;;  %v2285_v55 = vpop.f32.mrf.mxu0  ;;  %v922_v54 = vadd.f32 %v2189_v16, %v775_v61  ;;  %v1053_v9 = vadd.f32 %v1022_v28, %v919_v52  ;;  %v1322_v32 = vadd.f32 %v2260_v35, %v1189_v24  ;;  %v1327_v52 = vadd.f32 %v2265_v48, %v1194_v12 }
 0x151   : > { %v2810_v56 = vpop.f32.mrf.mxu1 }
 0x152   : > { %2835 = vst [vmem:[#allocation5_spill] sm:$0xff] %v2810_v56  ;;  %v1426_v57 = vpop.f32.mrf.mxu0  ;;  %v1056_v37 = vadd.f32 %v2213_v17, %v922_v54  ;;  %v1187_v60 = vadd.f32 %v1156_v36, %v1053_v9  ;;  %v1456_v19 = vadd.f32 %v2284_v51, %v1322_v32 }
 0x153   : > { %v2812_v58 = vpop.f32.mrf.mxu1  ;;  %v1455_v54 = vadd.f32 %v1426_v57, %v1321_v31 }
 0x154   : > { %2836 = vst [vmem:[#allocation6_spill] sm:$0xff] %v2812_v58  ;;  %v2288_v11 = vpop.f32.mrf.mxu0  ;;  %v780_v58 = vadd.f32 %v779_v8, %v666_v7  ;;  %v1190_v16 = vadd.f32 %v2237_v39, %v1056_v37  ;;  %v1058_v7 = vadd.f32 %v1041_v33, %v924_v2  ;;  %v1193_v8 = vadd.f32 %v2240_v43, %v1059_v4 }
 0x155   : > { %v2312_v56 = vpop.f32.mrf.mxu1  ;;  %v1320_v22 = vadd.f32 %v1289_v38, %v1187_v60 }
 0x156   : > { %v923_v1 = vadd.f32 %v904_v23, %v780_v58  ;;  %v1439_v5 = vpop.f32.mrf.mxu0  ;;  %v1192_v29 = vadd.f32 %v1175_v49, %v1058_v7  ;;  %v1323_v28 = vadd.f32 %v2261_v40, %v1190_v16  ;;  %v1326_v17 = vadd.f32 %v2264_v44, %v1193_v8  ;;  %v2837_v40 = vld [vmem:[#allocation3_spill] sm:$0xff] }
 0x157   : > { %v1573_v3 = vpop.f32.mrf.mxu1  ;;  %v1454_v34 = vadd.f32 %v1423_v53, %v1320_v22  ;;  %v1590_v44 = vadd.f32 %v2837_v40, %v1456_v19  ;;  %v2838_v48 = vld [vmem:[#allocation4_spill] sm:$0xff] }
 0x158   : > { %v1057_v61 = vadd.f32 %v1038_v25, %v923_v1  ;;  %v2289_v13 = vpop.f32.mrf.mxu0  ;;  %v1457_v36 = vadd.f32 %v2285_v55, %v1323_v28  ;;  %v1325_v39 = vadd.f32 %v1308_v50, %v1192_v29  ;;  %v1460_v43 = vadd.f32 %v2288_v11, %v1326_v17 }
 0x159   : > { %v2313_v18 = vpop.f32.mrf.mxu1  ;;  %v1461_v47 = vadd.f32 %v2289_v13, %v1327_v52  ;;  %v1588_v58 = vadd.f32 %v2838_v48, %v1454_v34  ;;  %v2839_v42 = vld [vmem:[#allocation5_spill] sm:$0xff] }
 0x15a   : > { %v1191_v23 = vadd.f32 %v1172_v45, %v1057_v61  ;;  %v1442_v21 = vpop.f32.mrf.mxu0  ;;  %v1591_v51 = vadd.f32 %v2839_v42, %v1457_v36  ;;  %v1594_v55 = vadd.f32 %v2312_v56, %v1460_v43 }
 0x15b   : > { %v1576_v25 = vpop.f32.mrf.mxu1  ;;  %v1459_v35 = vadd.f32 %v1442_v21, %v1325_v39  ;;  %v1595_v62 = vadd.f32 %v2313_v18, %v1461_v47  ;;  %v2840_v50 = vld [vmem:[#allocation6_spill] sm:$0xff] }
 0x15c   : > { %v1324_v33 = vadd.f32 %v1305_v46, %v1191_v23  ;;  %v1589_v10 = vadd.f32 %v2840_v50, %v1455_v54 }
 0x15d   : > { %v1593_v30 = vadd.f32 %v1576_v25, %v1459_v35 }
 0x15e   : > { %v1458_v49 = vadd.f32 %v1439_v5, %v1324_v33 }
 0x160   : > { %v1592_v27 = vadd.f32 %v1573_v3, %v1458_v49 }
 0x16c   : > { %v2332_v41 = vpop.f32.mrf.mxu0 }
 0x16d   : > { %v2336_v45 = vpop.f32.mrf.mxu1  ;;  %v1723_v11 = vadd.f32 %v2332_v41, %v1590_v44 }
 0x16e   : > { %v1690_v38 = vpop.f32.mrf.mxu0  ;;  %v1727_v0 = vadd.f32 %v2336_v45, %v1594_v55 }
 0x16f   : > { %v1706_v53 = vpop.f32.mrf.mxu1  ;;  %v1721_v14 = vadd.f32 %v1690_v38, %v1588_v58  ;;  %v1785_v60 = vmul.f32 %v1723_v11, %v1723_v11 }
 0x170   : > { %v2333_v46 = vpop.f32.mrf.mxu0  ;;  %v1725_v6 = vadd.f32 %v1706_v53, %v1592_v27  ;;  %v1789_v22 = vmul.f32 %v1727_v0, %v1727_v0 }
 0x171   : > { %v1724_v57 = vadd.f32 %v2333_v46, %v1591_v51  ;;  %v2337_v26 = vpop.f32.mrf.mxu1  ;;  %v1783_v4 = vmul.f32 %v1721_v14, %v1721_v14 }
 0x172   : > { %v1728_v63 = vadd.f32 %v2337_v26, %v1595_v62  ;;  %v1693_v1 = vpop.f32.mrf.mxu0  ;;  %v1787_v13 = vmul.f32 %v1725_v6, %v1725_v6 }
 0x173   : > { %v1999_v2 = vpack.c.bf16 %v1724_v57, %v1723_v11  ;;  %v1722_v5 = vadd.f32 %v1693_v1, %v1589_v10  ;;  %v1709_v56 = vpop.f32.mrf.mxu1  ;;  %v1786_v7 = vmul.f32 %v1724_v57, %v1724_v57 }
 0x174   : > { %v2009_v9 = vpack.c.bf16 %v1728_v63, %v1727_v0  ;;  %v1726_v37 = vadd.f32 %v1709_v56, %v1593_v30  ;;  %v1790_v52 = vmul.f32 %v1728_v63, %v1728_v63 }
 0x175   : > { %2011 = vst [vmem:[%s177_s19 + $0x8] sm:$0xff] %v1999_v2   ;;  %v1994_v15 = vpack.c.bf16 %v1722_v5, %v1721_v14  ;;  %v1769_v59 = vadd.f32 %v1722_v5, %v1721_v14  ;;  %v1784_v24 = vmul.f32 %v1722_v5, %v1722_v5 }
 0x176   : > { %2013 = vst [vmem:[%s177_s19 + $0x18] sm:$0xff] %v2009_v9   ;;  %v2004_v3 = vpack.c.bf16 %v1726_v37, %v1725_v6  ;;  %v1788_v29 = vmul.f32 %v1726_v37, %v1726_v37 }
 0x177   : > { %1995 = vst [vmem:[%s177_s19] sm:$0xff] %v1994_v15   ;;  %v1770_v16 = vadd.f32 %v1769_v59, %v1723_v11  ;;  %v1791_v61 = vadd.f32 %v1784_v24, %v1783_v4 }
 0x178   : > { %2012 = vst [vmem:[%s177_s19 + $0x10] sm:$0xff] %v2004_v3  }
 0x179   : > { %v1792_v8 = vadd.f32 %v1791_v61, %v1785_v60  ;;  %v1771_v12 = vadd.f32 %v1770_v16, %v1724_v57 }
 0x17b   : > { %v1772_v20 = vadd.f32 %v1771_v12, %v1725_v6  ;;  %v1793_v18 = vadd.f32 %v1792_v8, %v1786_v7 }
 0x17d   : > { %v1773_v23 = vadd.f32 %v1772_v20, %v1726_v37  ;;  %v1794_v32 = vadd.f32 %v1793_v18, %v1787_v13 }
 0x17f   : > { %v1774_v28 = vadd.f32 %v1773_v23, %v1727_v0  ;;  %v1795_v17 = vadd.f32 %v1794_v32, %v1788_v29 }
 0x181   : > { %v1775_v21 = vadd.f32 %v1774_v28, %v1728_v63  ;;  %v1796_v31 = vadd.f32 %v1795_v17, %v1789_v22 }
 0x183   : > { %v1776_v19 = vrot.slane %v1775_v21, 4  ;;  %v1797_v34 = vadd.f32 %v1796_v31, %v1790_v52 }
 0x185   : > { %v1777_v36 = vadd.f32 %v1776_v19, %v1775_v21  ;;  %v1798_v25 = vrot.slane %v1797_v34, 4 }
 0x187   : > { %v1778_v33 = vrot.slane %v1777_v36, 2  ;;  %v1799_v39 = vadd.f32 %v1798_v25, %v1797_v34 }
 0x189   : > { %v1779_v43 = vadd.f32 %v1778_v33, %v1777_v36  ;;  %v1800_v47 = vrot.slane %v1799_v39, 2 }
 0x18b   : > { %v1780_v41 = vrot.slane %v1779_v43, 1  ;;  %v1801_v54 = vadd.f32 %v1800_v47, %v1799_v39 }
 0x18d   : > { %v1781_v45 = vadd.f32 %v1780_v41, %v1779_v43  ;;  %v1802_v49 = vrot.slane %v1801_v54, 1 }
 0x18f   : > { %1782 = vst [vmem:[%s181_s23] sm:$0x1] %v1781_v45  ;;  %v1803_v35 = vadd.f32 %v1802_v49, %v1801_v54 }
 0x191   : > { %1804 = vst [vmem:[%s181_s23 + $0x1] sm:$0x1] %v1803_v35 }
 0x192 PF: > { %s14_s12 = sadd.s32 1, %s2465_s12  }
 0x193   : > { %p11_p4 = scmp.ge.s32.totalorder %s14_s12, 4  }
 0x195   :  { %13 = sbr.rel (!%p11_p4) target bundleno = 1 (0x1), region = 75 }

// kernel: residual_forward.4
= control target key start
LH: loop header
LB: loop body
LE: loop exit
PB: predicated region body
PF: predicated region fallthrough
CT: control target
= control target key end

     0   :  { %s2987_s30 = smov 0   ;;  %s3486_s0 = inlined_call_operand.vmem [shape: bf16[2,8,8,128], index: 0, kind: input, shape index: {}]   ;;  %s3487_s1 = inlined_call_operand.vmem [shape: f32[1,128], index: 1, kind: input, shape index: {}]   ;;  %s3488_s2 = inlined_call_operand.vmem [shape: f32[1,128], index: 2, kind: input, shape index: {}]   ;;  %s3489_s3 = inlined_call_operand.vmem [shape: bf16[9,128,128], index: 3, kind: input, shape index: {}]   ;;  %s3490_s4 = inlined_call_operand.vmem [shape: bf16[2,64,128], index: 4, kind: input, shape index: {}]   ;;  %s3491_s5 = inlined_call_operand.vmem [shape: bf16[128,128], index: 5, kind: input, shape index: {}]   ;;  %s3492_s6 = inlined_call_operand.vmem [shape: bf16[2,64,128], index: 6, kind: output, shape index: {0}]   ;;  %s3493_s7 = inlined_call_operand.vmem [shape: bf16[2,64,128], index: 7, kind: output, shape index: {1}]   ;;  %s3494_s8 = inlined_call_operand.vmem [shape: f32[2,2,128], index: 8, kind: output, shape index: {2}]   ;;  %s3495_s9 = inlined_call_operand.vmem [shape: f32[2,2,128], index: 9, kind: output, shape index: {3}]  }
   0x1 LB: > { %s2271_s10 = sadd.s32 4294967295, %s2934_s30   ;;  %p2275_p0 = scmp.ge.s32.totalorder %s2934_s30, 1  ;;  %s2934_s30 = sphi %s2987_s30, %s20_s30  }
   0x2   : > { %p304_p1 = scmp.lt.s32.totalorder %s2934_s30, 3 }
   0x4   : > { %p305_p2 = pnand %p2275_p0, %p304_p1 }
   0x6   : > { %308 = sbr.rel (%p305_p2) target bundleno = 404 (0x194), region = 44 }
   0xb   : > { %v2844_v0 = vld [vmem:[%s3489_s3 + $0x78] sm:$0xff]   ;;  %v2846_v2 = vld [vmem:[%s3489_s3 + $0x70] sm:$0xff]   ;;  %p3006_p3 = scmp.lt.s32.totalorder %s2271_s10, 1  ;;  %v2936_v3 = vmov 0.0   ;;  %v2848_v5 = vld [vmem:[%s3489_s3 + $0x68] sm:$0xff]  }
   0xc   : > { %v2845_v1 = vld [vmem:[%s3489_s3 + $0x38] sm:$0xff]   ;;  %2595 = vmatprep.subr.bf16.mxu0 %v2844_v0  ;;  %387 = vst [vmem:[#allocation2] sm:$0xff] %v2936_v3  ;;  %388 = vst [vmem:[#allocation2 + $0x8] sm:$0x3] %v2936_v3  ;;  %v2847_v4 = vld [vmem:[%s3489_s3 + $0x30] sm:$0xff]  }
   0xd   : > { %389 = vst [vmem:[#allocation2 + $0x10] sm:$0xff] %v2936_v3  ;;  %390 = vst [vmem:[#allocation2 + $0x18] sm:$0x3] %v2936_v3  ;;  %2619 = vmatprep.subr.bf16.mxu1 %v2845_v1  ;;  %2596 = vmatpush3.bf16.msra.mxu0 %v2844_v0  ;;  %v2849_v6 = vld [vmem:[%s3489_s3 + $0x28] sm:$0xff]   ;;  %s3508_s10 = smov (!%p3006_p3, %s2271_s10), 1  ;;  %v2850_v7 = vld [vmem:[%s3489_s3 + $0x60] sm:$0xff]  }
   0xe   : > { %391 = vst [vmem:[#allocation2 + $0x20] sm:$0xff] %v2936_v3  ;;  %392 = vst [vmem:[#allocation2 + $0x28] sm:$0x3] %v2936_v3  ;;  %2620 = vmatpush3.bf16.msra.mxu1 %v2845_v1  ;;  %2597 = vmatprep.subr.bf16.mxu0 %v2846_v2  ;;  %v2851_v8 = vld [vmem:[%s3489_s3 + $0x20] sm:$0xff]   ;;  %s3052_s28 = sshll.u32 %s3508_s10, 5  ;;  %v2852_v9 = vld [vmem:[%s3489_s3 + $0x58] sm:$0xff]  }
   0xf   : > { %393 = vst [vmem:[#allocation2 + $0x30] sm:$0xff] %v2936_v3  ;;  %394 = vst [vmem:[#allocation2 + $0x38] sm:$0x3] %v2936_v3  ;;  %2621 = vmatprep.subr.bf16.mxu1 %v2847_v4  ;;  %v2853_v10 = vld [vmem:[%s3489_s3 + $0x18] sm:$0xff]   ;;  %s3064_s16 = scalar_lea.vmem %s3486_s0, %s3052_s28  ;;  %v2854_v11 = vld [vmem:[%s3489_s3 + $0x50] sm:$0xff]   ;;  %s3301_s23 = scalar_lea.vmem %s3490_s4, %s3052_s28 }
  0x10   : > { %395 = vst [vmem:[#allocation2 + $0x40] sm:$0xff] %v2936_v3  ;;  %396 = vst [vmem:[#allocation2 + $0x48] sm:$0x3] %v2936_v3  ;;  %v2411_v12 = vld [vmem:[%s3064_s16] sm:$0xff]   ;;  %v2855_v14 = vld [vmem:[%s3489_s3 + $0x10] sm:$0xff]   ;;  %s3458_s25 = scalar_lea.vmem %s3492_s6, %s3052_s28  ;;  %s3464_s29 = scalar_lea.vmem %s3493_s7, %s3052_s28 }
  0x11   : > { %397 = vst [vmem:[#allocation2 + $0x50] sm:$0xff] %v2936_v3  ;;  %398 = vst [vmem:[#allocation2 + $0x58] sm:$0x3] %v2936_v3  ;;  %2598 = vmatpush3.bf16.msra.mxu0 %v2846_v2  ;;  %v2286_v13 = vld [vmem:[%s3487_s1] ss:$0 sm:$0xff]  ;;  %v2412_v15 = vunpack.c.l.bf16 %v2411_v12  ;;  %v2413_v16 = vunpack.c.h.bf16 %v2411_v12  ;;  %v2466_v17 = vld [vmem:[%s3064_s16 + $0x8] sm:$0xff]  }
  0x12   : > { %399 = vst [vmem:[#allocation2 + $0x60] sm:$0xff] %v2936_v3  ;;  %400 = vst [vmem:[#allocation2 + $0x68] sm:$0x3] %v2936_v3  ;;  %2622 = vmatpush3.bf16.msra.mxu1 %v2847_v4  ;;  %2599 = vmatprep.subr.bf16.mxu0 %v2848_v5  ;;  %v3080_v18 = vld [vmem:[%s3488_s2] ss:$0 sm:$0xff]  ;;  %v2416_v19 = vunpack.c.l.bf16 %v2466_v17  ;;  %v2417_v20 = vunpack.c.h.bf16 %v2466_v17  ;;  %v2856_v23 = vld [vmem:[%s3489_s3 + $0x48] sm:$0xff]  }
  0x13   : > { %401 = vst [vmem:[#allocation2 + $0x70] sm:$0xff] %v2936_v3  ;;  %402 = vst [vmem:[#allocation2 + $0x78] sm:$0x3] %v2936_v3  ;;  %2623 = vmatprep.subr.bf16.mxu1 %v2849_v6  ;;  %v430_v21 = vmul.f32 %v2412_v15, %v2286_v13  ;;  %v431_v22 = vmul.f32 %v2413_v16, %v2286_v13  ;;  %v2857_v26 = vld [vmem:[%s3489_s3 + $0x8] sm:$0xff]   ;;  %v2858_v32 = vld [vmem:[%s3489_s3 + $0x40] sm:$0xff]   ;;  %s2284_s28 = sshll.u32 %s3508_s10, 1 }
  0x14   : > { %403 = vst [vmem:[#allocation2 + $0x80] sm:$0xff] %v2936_v3  ;;  %404 = vst [vmem:[#allocation2 + $0x88] sm:$0x3] %v2936_v3  ;;  %v432_v24 = vmul.f32 %v2416_v19, %v2286_v13  ;;  %v433_v25 = vmul.f32 %v2417_v20, %v2286_v13  ;;  %v626_v29 = vld [vmem:[#allocation2 + $0x1] sm:$0xff]  ;;  %v2860_v39 = vld [vmem:[%s3489_s3 + $0xb8] sm:$0xff]   ;;  %s385_s13 = scalar_lea.vmem %s3495_s9, %s2284_s28  ;;  %s381_s17 = scalar_lea.vmem %s3494_s8, %s2284_s28 }
  0x15   : > { %405 = vst [vmem:[#allocation2 + $0x90] sm:$0xff] %v2936_v3  ;;  %406 = vst [vmem:[#allocation2 + $0x98] sm:$0x3] %v2936_v3  ;;  %2600 = vmatpush3.bf16.msra.mxu0 %v2848_v5  ;;  %v445_v27 = vadd.f32 %v3080_v18, %v430_v21  ;;  %v446_v28 = vadd.f32 %v3080_v18, %v431_v22  ;;  %v2859_v35 = vld [vmem:[%s3489_s3] sm:$0xff]   ;;  %v2467_v40 = vld [vmem:[%s3064_s16 + $0x10] sm:$0xff]  }
  0x16   : > { %2624 = vmatpush3.bf16.msra.mxu1 %v2849_v6  ;;  %2601 = vmatprep.subr.bf16.mxu0 %v2850_v7  ;;  %v447_v30 = vadd.f32 %v3080_v18, %v432_v24  ;;  %v448_v31 = vadd.f32 %v3080_v18, %v433_v25  ;;  %v2420_v41 = vunpack.c.l.bf16 %v2467_v40  ;;  %v2421_v42 = vunpack.c.h.bf16 %v2467_v40  ;;  %v2468_v43 = vld [vmem:[%s3064_s16 + $0x18] sm:$0xff]   ;;  %v2862_v55 = vld [vmem:[%s3489_s3 + $0xb0] sm:$0xff]   ;;  %v2864_v5 = vld [vmem:[%s3489_s3 + $0xa8] sm:$0xff]  }
  0x17   : > { %2625 = vmatprep.subr.bf16.mxu1 %v2851_v8  ;;  %v3095_v33 = vmax.f32 %v445_v27, 0.0  ;;  %v3097_v34 = vmax.f32 %v446_v28, 0.0  ;;  %v2861_v45 = vld [vmem:[%s3489_s3 + $0xf8] sm:$0xff]   ;;  %v2424_v46 = vunpack.c.l.bf16 %v2468_v43  ;;  %v2425_v47 = vunpack.c.h.bf16 %v2468_v43  ;;  %v2863_v63 = vld [vmem:[%s3489_s3 + $0xf0] sm:$0xff]   ;;  %v2867_v15 = vld [vmem:[%s3489_s3 + $0xe0] sm:$0xff]  }
  0x18   : > { %v3102_v36 = vmax.f32 %v447_v30, 0.0  ;;  %v3108_v38 = vmax.f32 %v448_v31, 0.0  ;;  %v434_v49 = vmul.f32 %v2420_v41, %v2286_v13  ;;  %v435_v50 = vmul.f32 %v2421_v42, %v2286_v13  ;;  %v2870_v24 = vld [vmem:[%s3489_s3 + $0x90] sm:$0xff]   ;;  %v2873_v27 = vld [vmem:[%s3489_s3 + $0xc8] sm:$0xff]   ;;  %v2874_v28 = vld [vmem:[%s3489_s3 + $0x80] sm:$0xff]  }
  0x19   : > { %2602 = vmatpush3.bf16.msra.mxu0 %v2850_v7  ;;  %462 = vst [vmem:[#allocation2 + $0x11] sm:$0xff] %v3095_v33  ;;  %v634_v37 = vpack.c.bf16 %v3095_v33, %v626_v29  ;;  %463 = vst [vmem:[#allocation2 + $0x21] sm:$0xff] %v3097_v34  ;;  %v436_v51 = vmul.f32 %v2424_v46, %v2286_v13  ;;  %v437_v52 = vmul.f32 %v2425_v47, %v2286_v13  ;;  %v864_v7 = vld [vmem:[#allocation2 + $0x2] sm:$0xff]  ;;  %v2871_v25 = vld [vmem:[%s3489_s3 + $0xd0] sm:$0xff]  }
  0x1a   : > { %2626 = vmatpush3.bf16.msra.mxu1 %v2851_v8  ;;  %2603 = vmatprep.subr.bf16.mxu0 %v2852_v9  ;;  %464 = vst [vmem:[#allocation2 + $0x31] sm:$0xff] %v3102_v36  ;;  %465 = vst [vmem:[#allocation2 + $0x41] sm:$0xff] %v3108_v38  ;;  %v1139_v44 = vpack.c.bf16 %v3108_v38, %v3102_v36  ;;  %v3123_v48 = vpack.c.bf16 %v3102_v36, %v3097_v34  ;;  %v2866_v13 = vld [vmem:[%s3489_s3 + $0xa0] sm:$0xff]   ;;  %v2877_v40 = vld [vmem:[%s3489_s3 + $0x178] sm:$0xff]  }
  0x1b   : > { %2627 = vmatprep.subr.bf16.mxu1 %v2853_v10  ;;  %2611 = vmatprep.mubr.bf16.mxu0 %v634_v37  ;;  %v449_v56 = vadd.f32 %v3080_v18, %v434_v49  ;;  %v450_v57 = vadd.f32 %v3080_v18, %v435_v50  ;;  %v451_v60 = vadd.f32 %v3080_v18, %v436_v51  ;;  %v2875_v29 = vld [vmem:[%s3489_s3 + $0xc0] sm:$0xff]   ;;  %v2878_v43 = vld [vmem:[%s3489_s3 + $0x130] sm:$0xff]   ;;  %v2880_v50 = vld [vmem:[%s3489_s3 + $0x128] sm:$0xff]  }
  0x1c   : > { %v452_v61 = vadd.f32 %v3080_v18, %v437_v52  ;;  %v2868_v18 = vld [vmem:[%s3489_s3 + $0x98] sm:$0xff]   ;;  %v2897_v36 = vld [vmem:[%s3489_s3 + $0x1e8] sm:$0xff]  }
  0x1d   : > { %2604 = vmatpush3.bf16.msra.mxu0 %v2852_v9  ;;  %v3145_v0 = vmax.f32 %v449_v56, 0.0  ;;  %v3147_v1 = vmax.f32 %v450_v57, 0.0  ;;  %v3149_v2 = vmax.f32 %v451_v60, 0.0  ;;  %v2865_v9 = vld [vmem:[%s3489_s3 + $0xe8] sm:$0xff]   ;;  %v2882_v56 = vld [vmem:[%s3489_s3 + $0x120] sm:$0xff]   ;;  %v2887_v60 = vld [vmem:[%s3489_s3 + $0x150] sm:$0xff]  }
  0x1e   : > { %2628 = vmatpush3.bf16.msra.mxu1 %v2853_v10  ;;  %2605 = vmatprep.subr.bf16.mxu0 %v2854_v11  ;;  %v3151_v4 = vmax.f32 %v452_v61, 0.0  ;;  %v2888_v61 = vld [vmem:[%s3489_s3 + $0x108] sm:$0xff]  }
  0x1f   : > { %2629 = vmatprep.subr.bf16.mxu1 %v2855_v14  ;;  %466 = vst [vmem:[#allocation2 + $0x51] sm:$0xff] %v3145_v0  ;;  %v3160_v6 = vpack.c.bf16 %v3145_v0, %v3108_v38  ;;  %467 = vst [vmem:[#allocation2 + $0x61] sm:$0xff] %v3147_v1  ;;  %v3173_v10 = vpack.c.bf16 %v3149_v2, %v3147_v1 }
  0x20   : > { %v3125_v53 = vld [vmem:[#allocation2 + $0x10] sm:$0xff]  ;;  %v616_v54 = vld [vmem:[#allocation2 + $0x20] sm:$0xff]  ;;  %468 = vst [vmem:[#allocation2 + $0x71] sm:$0xff] %v3149_v2  ;;  %469 = vst [vmem:[#allocation2 + $0x81] sm:$0xff] %v3151_v4 }
  0x21   : > { %2606 = vmatpush3.bf16.msra.mxu0 %v2854_v11  ;;  %v622_v58 = vpack.c.bf16 %v3125_v53, %v2936_v3  ;;  %v3134_v59 = vld [vmem:[#allocation2 + $0x30] sm:$0xff]  ;;  %v1141_v11 = vpack.c.bf16 %v3151_v4, %v3149_v2  ;;  %v1005_v21 = vpack.c.bf16 %v616_v54, %v3125_v53  ;;  %v866_v30 = vld [vmem:[#allocation2 + $0x22] sm:$0xff]  ;;  %v2901_v2 = vld [vmem:[%s3489_s3 + $0x1d8] sm:$0xff]  }
  0x22   : > { %2630 = vmatpush3.bf16.msra.mxu1 %v2855_v14  ;;  %2607 = vmatprep.subr.bf16.mxu0 %v2856_v23  ;;  %v3140_v62 = vpack.c.bf16 %v3134_v59, %v616_v54  ;;  %v3163_v8 = vld [vmem:[#allocation2 + $0x12] sm:$0xff]  ;;  %v3181_v14 = vld [vmem:[#allocation2 + $0x40] sm:$0xff]  ;;  %v2881_v53 = vld [vmem:[%s3489_s3 + $0x168] sm:$0xff]   ;;  %v1138_v54 = vpack.c.bf16 %v3097_v34, %v3095_v33 }
  0x23   : > { %2631 = vmatprep.subr.bf16.mxu1 %v2857_v26  ;;  %2635 = vmatprep.mubr.bf16.mxu1 %v622_v58  ;;  %v872_v12 = vpack.c.bf16 %v3163_v8, %v864_v7  ;;  %v3222_v31 = vld [vmem:[#allocation2 + $0x32] sm:$0xff]  ;;  %v1006_v42 = vpack.c.bf16 %v3181_v14, %v3134_v59  ;;  %v1271_v57 = vpack.c.bf16 %v866_v30, %v3163_v8  ;;  %v2883_v58 = vld [vmem:[%s3489_s3 + $0x160] sm:$0xff]  }
  0x24   : > { %v2884_v33 = vld [vmem:[%s3489_s3 + $0x118] sm:$0xff]   ;;  %v2886_v59 = vld [vmem:[%s3489_s3 + $0x110] sm:$0xff]   ;;  %v2891_v7 = vld [vmem:[%s3489_s3 + $0x140] sm:$0xff]  }
  0x25   : > { %2608 = vmatpush3.bf16.msra.mxu0 %v2856_v23  ;;  %v2869_v23 = vld [vmem:[%s3489_s3 + $0xd8] sm:$0xff]  }
  0x26   : > { %2632 = vmatpush3.bf16.msra.mxu1 %v2857_v26  ;;  %2609 = vmatprep.subr.bf16.mxu0 %v2858_v32  ;;  %v619_v16 = vld [vmem:[#allocation2 + $0x50] sm:$0xff]  ;;  %v620_v17 = vld [vmem:[#allocation2 + $0x60] sm:$0xff]  ;;  %v2872_v26 = vld [vmem:[%s3489_s3 + $0x88] sm:$0xff]  }
  0x27   : > { %2633 = vmatprep.subr.bf16.mxu1 %v2859_v35  ;;  %v3191_v19 = vpack.c.bf16 %v619_v16, %v3181_v14  ;;  %v3193_v20 = vld [vmem:[#allocation2 + $0x70] sm:$0xff]  ;;  %v1007_v46 = vpack.c.bf16 %v620_v17, %v619_v16  ;;  %v3250_v47 = vld [vmem:[#allocation2 + $0x62] sm:$0xff]  ;;  %v2885_v34 = vld [vmem:[%s3489_s3 + $0x158] sm:$0xff]  }
  0x28   : > { %v3197_v22 = vpack.c.bf16 %v3193_v20, %v620_v17  ;;  %v3229_v37 = vld [vmem:[#allocation2 + $0x52] sm:$0xff]  ;;  %v3258_v51 = vld [vmem:[#allocation2 + $0x80] sm:$0xff] }
  0x29   : > { %2610 = vmatpush3.bf16.msra.mxu0 %v2858_v32  ;;  %v2876_v32 = vld [vmem:[%s3489_s3 + $0x138] sm:$0xff]   ;;  %v2894_v14 = vld [vmem:[%s3489_s3 + $0x1b0] sm:$0xff]   ;;  %v3333_v16 = vld [vmem:[#allocation2 + $0x82] sm:$0xff] }
  0x2a   : > { %2634 = vmatpush3.bf16.msra.mxu1 %v2859_v35  ;;  %2643 = vmatprep.subr.bf16.mxu0 %v2860_v39  ;;  %v3227_v35 = vld [vmem:[#allocation2 + $0x42] sm:$0xff]  ;;  %v3253_v49 = vld [vmem:[#allocation2 + $0x72] sm:$0xff] }
  0x2b   : > { %2667 = vmatprep.subr.bf16.mxu1 %v2861_v45  ;;  %v3239_v41 = vpack.c.bf16 %v3229_v37, %v3227_v35  ;;  %v3262_v52 = vpack.c.bf16 %v3253_v49, %v3250_v47  ;;  %v2892_v8 = vld [vmem:[%s3489_s3 + $0x1b8] sm:$0xff]   ;;  %v1274_v38 = vpack.c.bf16 %v3333_v16, %v3253_v49  ;;  %v2899_v17 = vld [vmem:[%s3489_s3 + $0x1e0] sm:$0xff]  }
  0x2c   : > { %2612 = vmatmul.mubr.bf16.vlgmr.msra.gmra.mxu0 %v3123_v48  ;;  %v2927_v49 = vld [vmem:[%s3301_s23 + $0x18] sm:$0xff]  }
  0x2d   : > { %2644 = vmatpush3.bf16.msra.mxu0 %v2860_v39  ;;  %2636 = vmatmul.mubr.bf16.vlgmr.msra.gmra.mxu1 %v3140_v62  ;;  %v3232_v39 = vpack.c.bf16 %v3222_v31, %v866_v30  ;;  %v2913_v30 = vld [vmem:[%s3491_s5 + $0x28] sm:$0xff]  }
  0x2e   : > { %2645 = vmatprep.subr.bf16.mxu0 %v2862_v55  ;;  %2668 = vmatpush3.bf16.msra.mxu1 %v2861_v45  ;;  %v2879_v45 = vld [vmem:[%s3489_s3 + $0x170] sm:$0xff]  }
  0x2f   : > { %2669 = vmatprep.subr.bf16.mxu1 %v2863_v63  ;;  %2615 = vmatprep.mubr.bf16.mxu0 %v3160_v6 }
  0x30   : > { %2639 = vmatprep.mubr.bf16.mxu1 %v3191_v19 }
  0x31   : > { %2646 = vmatpush3.bf16.msra.mxu0 %v2862_v55  ;;  %v1008_v55 = vpack.c.bf16 %v3258_v51, %v3193_v20  ;;  %v2905_v20 = vld [vmem:[%s3489_s3 + $0x1c8] sm:$0xff]  }
  0x32   : > { %2647 = vmatprep.subr.bf16.mxu0 %v2864_v5  ;;  %2670 = vmatpush3.bf16.msra.mxu1 %v2863_v63  ;;  %v2889_v63 = vld [vmem:[%s3489_s3 + $0x148] sm:$0xff]  }
  0x33   : > { %2671 = vmatprep.subr.bf16.mxu1 %v2865_v9 }
  0x34   : > { %2616 = vmatmul.mubr.bf16.gmra.mxu0 %v3173_v10 }
  0x35   : > { %2648 = vmatpush3.bf16.msra.mxu0 %v2864_v5  ;;  %2659 = vmatprep.mubr.bf16.mxu0 %v872_v12  ;;  %v2890_v5 = vld [vmem:[%s3489_s3 + $0x100] sm:$0xff]   ;;  %v1140_v12 = vpack.c.bf16 %v3147_v1, %v3145_v0  ;;  %v2895_v0 = vld [vmem:[%s3489_s3 + $0x1f0] sm:$0xff]   ;;  %v2896_v1 = vld [vmem:[%s3489_s3 + $0x1a8] sm:$0xff]  }
  0x36   : > { %2649 = vmatprep.subr.bf16.mxu0 %v2866_v13  ;;  %2672 = vmatpush3.bf16.msra.mxu1 %v2865_v9  ;;  %v2893_v9 = vld [vmem:[%s3489_s3 + $0x1f8] sm:$0xff]  }
  0x37   : > { %2673 = vmatprep.subr.bf16.mxu1 %v2867_v15  ;;  %2640 = vmatmul.mubr.bf16.gmra.mxu1 %v3197_v22 }
  0x38   : > { %2683 = vmatprep.mubr.bf16.mxu1 %v1005_v21  ;;  %v2906_v21 = vld [vmem:[%s3489_s3 + $0x180] sm:$0xff]  }
  0x39   : > { %2650 = vmatpush3.bf16.msra.mxu0 %v2866_v13  ;;  %v1272_v13 = vpack.c.bf16 %v3227_v35, %v3222_v31  ;;  %v2924_v31 = vld [vmem:[%s3301_s23] sm:$0xff]   ;;  %v2919_v35 = vld [vmem:[%s3491_s5 + $0x10] sm:$0xff]  }
  0x3a   : > { %2651 = vmatprep.subr.bf16.mxu0 %v2868_v18  ;;  %2674 = vmatpush3.bf16.msra.mxu1 %v2867_v15  ;;  %v1273_v15 = vpack.c.bf16 %v3250_v47, %v3229_v37  ;;  %v2920_v37 = vld [vmem:[%s3489_s3 + $0x208] sm:$0xff]  }
  0x3b   : > { %2675 = vmatprep.subr.bf16.mxu1 %v2869_v23 }
  0x3d   : > { %2652 = vmatpush3.bf16.msra.mxu0 %v2868_v18  ;;  %v2900_v18 = vld [vmem:[%s3489_s3 + $0x198] sm:$0xff]  }
  0x3e   : > { %2653 = vmatprep.subr.bf16.mxu0 %v2870_v24  ;;  %2676 = vmatpush3.bf16.msra.mxu1 %v2869_v23  ;;  %v2907_v23 = vld [vmem:[%s3489_s3 + $0x1c0] sm:$0xff]  }
  0x3f   : > { %2677 = vmatprep.subr.bf16.mxu1 %v2871_v25 }
  0x41   : > { %2654 = vmatpush3.bf16.msra.mxu0 %v2870_v24  ;;  %v2908_v24 = vld [vmem:[%s3489_s3 + $0x238] sm:$0xff]  }
  0x42   : > { %2655 = vmatprep.subr.bf16.mxu0 %v2872_v26  ;;  %2678 = vmatpush3.bf16.msra.mxu1 %v2871_v25  ;;  %v2909_v25 = vld [vmem:[%s3491_s5 + $0x38] sm:$0xff]  }
  0x43   : > { %2679 = vmatprep.subr.bf16.mxu1 %v2873_v27 }
  0x45   : > { %2656 = vmatpush3.bf16.msra.mxu0 %v2872_v26  ;;  %v2910_v26 = vld [vmem:[%s3489_s3 + $0x230] sm:$0xff]  }
  0x46   : > { %2657 = vmatprep.subr.bf16.mxu0 %v2874_v28  ;;  %2680 = vmatpush3.bf16.msra.mxu1 %v2873_v27  ;;  %v2911_v27 = vld [vmem:[%s3491_s5 + $0x30] sm:$0xff]  }
  0x47   : > { %2681 = vmatprep.subr.bf16.mxu1 %v2875_v29 }
  0x49   : > { %2658 = vmatpush3.bf16.msra.mxu0 %v2874_v28  ;;  %v2912_v28 = vld [vmem:[%s3489_s3 + $0x228] sm:$0xff]  }
  0x4a   : > { %2691 = vmatprep.subr.bf16.mxu0 %v2876_v32  ;;  %2682 = vmatpush3.bf16.msra.mxu1 %v2875_v29  ;;  %v1408_v29 = vpack.c.bf16 %v2936_v3, %v3258_v51  ;;  %v2915_v3 = vld [vmem:[%s3491_s5 + $0x20] sm:$0xff]  }
  0x4b   : > { %2715 = vmatprep.subr.bf16.mxu1 %v2877_v40 }
  0x4c   : > { %2660 = vmatmul.mubr.bf16.vlgmr.msra.gmra.mxu0 %v3232_v39 }
  0x4d   : > { %2692 = vmatpush3.bf16.msra.mxu0 %v2876_v32  ;;  %2663 = vmatprep.mubr.bf16.mxu0 %v3239_v41  ;;  %v2918_v32 = vld [vmem:[%s3489_s3 + $0x210] sm:$0xff]  }
  0x4e   : > { %2684 = vmatmul.mubr.bf16.vlgmr.msra.gmra.mxu1 %v1006_v42  ;;  %2693 = vmatprep.subr.bf16.mxu0 %v2878_v43  ;;  %v2923_v42 = vld [vmem:[%s3491_s5] sm:$0xff]  }
  0x4f   : > { %2716 = vmatpush3.bf16.msra.mxu1 %v2877_v40  ;;  %2687 = vmatprep.mubr.bf16.mxu1 %v1007_v46  ;;  %v2922_v40 = vld [vmem:[%s3489_s3 + $0x200] sm:$0xff]   ;;  %v1670_v46 = vld [vmem:[#allocation2 + $0x92] sm:$0xff] }
  0x50   : > { %2717 = vmatprep.subr.bf16.mxu1 %v2879_v45  ;;  %v1674_v47 = vpack.c.bf16 %v1670_v46, %v3333_v16 }
  0x51   : > { %2694 = vmatpush3.bf16.msra.mxu0 %v2878_v43  ;;  %v2925_v43 = vld [vmem:[%s3301_s23 + $0x8] sm:$0xff]  }
  0x52   : > { %2695 = vmatprep.subr.bf16.mxu0 %v2880_v50 }
  0x53   : > { %2718 = vmatpush3.bf16.msra.mxu1 %v2879_v45  ;;  %v2926_v45 = vld [vmem:[%s3301_s23 + $0x10] sm:$0xff]  }
  0x54   : > { %2664 = vmatmul.mubr.bf16.gmra.mxu0 %v3262_v52  ;;  %2719 = vmatprep.subr.bf16.mxu1 %v2881_v53 }
  0x55   : > { %2696 = vmatpush3.bf16.msra.mxu0 %v2880_v50  ;;  %2707 = vmatprep.mubr.bf16.mxu0 %v1138_v54 }
  0x56   : > { %2688 = vmatmul.mubr.bf16.gmra.mxu1 %v1008_v55  ;;  %2697 = vmatprep.subr.bf16.mxu0 %v2882_v56 }
  0x57   : > { %2720 = vmatpush3.bf16.msra.mxu1 %v2881_v53  ;;  %2731 = vmatprep.mubr.bf16.mxu1 %v1271_v57 }
  0x58   : > { %2721 = vmatprep.subr.bf16.mxu1 %v2883_v58 }
  0x59   : > { %2698 = vmatpush3.bf16.msra.mxu0 %v2882_v56 }
  0x5a   : > { %2699 = vmatprep.subr.bf16.mxu0 %v2884_v33 }
  0x5b   : > { %2722 = vmatpush3.bf16.msra.mxu1 %v2883_v58 }
  0x5c   : > { %2723 = vmatprep.subr.bf16.mxu1 %v2885_v34 }
  0x5d   : > { %2700 = vmatpush3.bf16.msra.mxu0 %v2884_v33 }
  0x5e   : > { %2701 = vmatprep.subr.bf16.mxu0 %v2886_v59 }
  0x5f   : > { %2724 = vmatpush3.bf16.msra.mxu1 %v2885_v34 }
  0x60   : > { %2725 = vmatprep.subr.bf16.mxu1 %v2887_v60 }
  0x61   : > { %2702 = vmatpush3.bf16.msra.mxu0 %v2886_v59 }
  0x62   : > { %2703 = vmatprep.subr.bf16.mxu0 %v2888_v61 }
  0x63   : > { %2726 = vmatpush3.bf16.msra.mxu1 %v2887_v60 }
  0x64   : > { %2727 = vmatprep.subr.bf16.mxu1 %v2889_v63 }
  0x65   : > { %2704 = vmatpush3.bf16.msra.mxu0 %v2888_v61 }
  0x66   : > { %2705 = vmatprep.subr.bf16.mxu0 %v2890_v5 }
  0x67   : > { %2728 = vmatpush3.bf16.msra.mxu1 %v2889_v63 }
  0x68   : > { %2729 = vmatprep.subr.bf16.mxu1 %v2891_v7 }
  0x69   : > { %2706 = vmatpush3.bf16.msra.mxu0 %v2890_v5 }
  0x6a   : > { %2739 = vmatprep.subr.bf16.mxu0 %v2892_v8 }
  0x6b   : > { %2730 = vmatpush3.bf16.msra.mxu1 %v2891_v7 }
  0x6c   : > { %2708 = vmatmul.mubr.bf16.vlgmr.msra.gmra.mxu0 %v1139_v44  ;;  %2763 = vmatprep.subr.bf16.mxu1 %v2893_v9  ;;  %v2898_v44 = vld [vmem:[%s3489_s3 + $0x1a0] sm:$0xff]  }
  0x6d   : > { %2740 = vmatpush3.bf16.msra.mxu0 %v2892_v8  ;;  %2711 = vmatprep.mubr.bf16.mxu0 %v1140_v12 }
  0x6e   : > { %2732 = vmatmul.mubr.bf16.vlgmr.msra.gmra.mxu1 %v1272_v13  ;;  %2741 = vmatprep.subr.bf16.mxu0 %v2894_v14 }
  0x6f   : > { %2764 = vmatpush3.bf16.msra.mxu1 %v2893_v9  ;;  %2735 = vmatprep.mubr.bf16.mxu1 %v1273_v15 }
  0x70   : > { %2765 = vmatprep.subr.bf16.mxu1 %v2895_v0 }
  0x71   : > { %2742 = vmatpush3.bf16.msra.mxu0 %v2894_v14 }
  0x72   : > { %2743 = vmatprep.subr.bf16.mxu0 %v2896_v1 }
  0x73   : > { %2766 = vmatpush3.bf16.msra.mxu1 %v2895_v0 }
  0x74   : > { %2712 = vmatmul.mubr.bf16.gmra.mxu0 %v1141_v11  ;;  %2767 = vmatprep.subr.bf16.mxu1 %v2897_v36  ;;  %v2903_v11 = vld [vmem:[%s3489_s3 + $0x1d0] sm:$0xff]  }
  0x75   : > { %2744 = vmatpush3.bf16.msra.mxu0 %v2896_v1  ;;  %2755 = vmatprep.mubr.bf16.mxu0 %v3140_v62  ;;  %v2902_v62 = vld [vmem:[%s3489_s3 + $0x190] sm:$0xff]  }
  0x76   : > { %2736 = vmatmul.mubr.bf16.gmra.mxu1 %v1274_v38  ;;  %2745 = vmatprep.subr.bf16.mxu0 %v2898_v44 }
  0x77   : > { %2768 = vmatpush3.bf16.msra.mxu1 %v2897_v36  ;;  %2779 = vmatprep.mubr.bf16.mxu1 %v3123_v48  ;;  %v2904_v48 = vld [vmem:[%s3489_s3 + $0x188] sm:$0xff]  }
  0x78   : > { %2769 = vmatprep.subr.bf16.mxu1 %v2899_v17 }
  0x79   : > { %2746 = vmatpush3.bf16.msra.mxu0 %v2898_v44 }
  0x7a   : > { %2747 = vmatprep.subr.bf16.mxu0 %v2900_v18 }
  0x7b   : > { %2770 = vmatpush3.bf16.msra.mxu1 %v2899_v17 }
  0x7c   : > { %2771 = vmatprep.subr.bf16.mxu1 %v2901_v2 }
  0x7d   : > { %2748 = vmatpush3.bf16.msra.mxu0 %v2900_v18 }
  0x7e   : > { %2749 = vmatprep.subr.bf16.mxu0 %v2902_v62 }
  0x7f   : > { %2772 = vmatpush3.bf16.msra.mxu1 %v2901_v2 }
  0x80   : > { %2773 = vmatprep.subr.bf16.mxu1 %v2903_v11 }
  0x81   : > { %2750 = vmatpush3.bf16.msra.mxu0 %v2902_v62 }
  0x82   : > { %2751 = vmatprep.subr.bf16.mxu0 %v2904_v48 }
  0x83   : > { %2774 = vmatpush3.bf16.msra.mxu1 %v2903_v11 }
  0x84   : > { %2775 = vmatprep.subr.bf16.mxu1 %v2905_v20 }
  0x85   : > { %2752 = vmatpush3.bf16.msra.mxu0 %v2904_v48 }
  0x86   : > { %2753 = vmatprep.subr.bf16.mxu0 %v2906_v21 }
  0x87   : > { %2776 = vmatpush3.bf16.msra.mxu1 %v2905_v20 }
  0x88   : > { %2777 = vmatprep.subr.bf16.mxu1 %v2907_v23 }
  0x89   : > { %2754 = vmatpush3.bf16.msra.mxu0 %v2906_v21 }
  0x8a   : > { %2787 = vmatprep.subr.bf16.mxu0 %v2908_v24 }
  0x8b   : > { %2778 = vmatpush3.bf16.msra.mxu1 %v2907_v23 }
  0x8c   : > { %2756 = vmatmul.mubr.bf16.vlgmr.msra.gmra.mxu0 %v3191_v19  ;;  %2811 = vmatprep.subr.bf16.mxu1 %v2909_v25  ;;  %v1537_v19 = vld [vmem:[#allocation2 + $0x91] sm:$0xff] }
  0x8d   : > { %2788 = vmatpush3.bf16.msra.mxu0 %v2908_v24  ;;  %2759 = vmatprep.mubr.bf16.mxu0 %v3197_v22  ;;  %v2914_v22 = vld [vmem:[%s3489_s3 + $0x220] sm:$0xff]  }
  0x8e   : > { %2780 = vmatmul.mubr.bf16.vlgmr.msra.gmra.mxu1 %v3160_v6  ;;  %2789 = vmatprep.subr.bf16.mxu0 %v2910_v26  ;;  %v1541_v6 = vpack.c.bf16 %v1537_v19, %v3151_v4  ;;  %v2916_v4 = vld [vmem:[%s3489_s3 + $0x218] sm:$0xff]  }
  0x8f   : > { %2812 = vmatpush3.bf16.msra.mxu1 %v2909_v25  ;;  %2783 = vmatprep.mubr.bf16.mxu1 %v3173_v10  ;;  %v2917_v10 = vld [vmem:[%s3491_s5 + $0x18] sm:$0xff]  }
  0x90   : > { %2813 = vmatprep.subr.bf16.mxu1 %v2911_v27 }
  0x91   : > { %2790 = vmatpush3.bf16.msra.mxu0 %v2910_v26 }
  0x92   : > { %2791 = vmatprep.subr.bf16.mxu0 %v2912_v28 }
  0x93   : > { %2814 = vmatpush3.bf16.msra.mxu1 %v2911_v27 }
  0x94   : > { %2760 = vmatmul.mubr.bf16.gmra.mxu0 %v1408_v29  ;;  %2815 = vmatprep.subr.bf16.mxu1 %v2913_v30 }
  0x95   : > { %2792 = vmatpush3.bf16.msra.mxu0 %v2912_v28  ;;  %2803 = vmatprep.mubr.bf16.mxu0 %v3232_v39  ;;  %v2921_v39 = vld [vmem:[%s3491_s5 + $0x8] sm:$0xff]  }
  0x96   : > { %2784 = vmatmul.mubr.bf16.gmra.mxu1 %v1541_v6  ;;  %2793 = vmatprep.subr.bf16.mxu0 %v2914_v22 }
  0x97   : > { %2816 = vmatpush3.bf16.msra.mxu1 %v2913_v30  ;;  %2827 = vmatprep.mubr.bf16.mxu1 %v2924_v31 }
  0x98   : > { %2817 = vmatprep.subr.bf16.mxu1 %v2915_v3 }
  0x99   : > { %2794 = vmatpush3.bf16.msra.mxu0 %v2914_v22 }
  0x9a   : > { %2795 = vmatprep.subr.bf16.mxu0 %v2916_v4 }
  0x9b   : > { %2818 = vmatpush3.bf16.msra.mxu1 %v2915_v3 }
  0x9c   : > { %2819 = vmatprep.subr.bf16.mxu1 %v2917_v10 }
  0x9d   : > { %2796 = vmatpush3.bf16.msra.mxu0 %v2916_v4 }
  0x9e   : > { %2797 = vmatprep.subr.bf16.mxu0 %v2918_v32 }
  0x9f   : > { %2820 = vmatpush3.bf16.msra.mxu1 %v2917_v10 }
  0xa0   : > { %2821 = vmatprep.subr.bf16.mxu1 %v2919_v35 }
  0xa1   : > { %2798 = vmatpush3.bf16.msra.mxu0 %v2918_v32 }
  0xa2   : > { %2799 = vmatprep.subr.bf16.mxu0 %v2920_v37 }
  0xa3   : > { %2822 = vmatpush3.bf16.msra.mxu1 %v2919_v35 }
  0xa4   : > { %2823 = vmatprep.subr.bf16.mxu1 %v2921_v39 }
  0xa5   : > { %2800 = vmatpush3.bf16.msra.mxu0 %v2920_v37 }
  0xa6   : > { %2801 = vmatprep.subr.bf16.mxu0 %v2922_v40 }
  0xa7   : > { %2824 = vmatpush3.bf16.msra.mxu1 %v2921_v39 }
  0xa8   : > { %2825 = vmatprep.subr.bf16.mxu1 %v2923_v42 }
  0xa9   : > { %2802 = vmatpush3.bf16.msra.mxu0 %v2922_v40 }
  0xab   : > { %2826 = vmatpush3.bf16.msra.mxu1 %v2923_v42 }
  0xac   : > { %2804 = vmatmul.mubr.bf16.vlgmr.msra.gmra.mxu0 %v3239_v41 }
  0xad   : > { %2807 = vmatprep.mubr.bf16.mxu0 %v3262_v52 }
  0xae   : > { %2828 = vmatmul.mubr.bf16.vlgmr.msra.gmra.mxu1 %v2925_v43 }
  0xaf   : > { %2831 = vmatprep.mubr.bf16.mxu1 %v2926_v45 }
  0xb4   : > { %2808 = vmatmul.mubr.bf16.gmra.mxu0 %v1674_v47 }
  0xb6   : > { %2832 = vmatmul.mubr.bf16.gmra.mxu1 %v2927_v49 }
  0xec   : > { %v2613_v50 = vpop.f32.mrf.mxu0 }
  0xed   : > { %v2637_v53 = vpop.f32.mrf.mxu1 }
  0xee   : > { %v720_v51 = vpop.f32.mrf.mxu0  ;;  %v842_v37 = vadd.f32 %v2637_v53, %v2613_v50 }
  0xef   : > { %v833_v55 = vpop.f32.mrf.mxu1 }
  0xf0   : > { %v2614_v54 = vpop.f32.mrf.mxu0  ;;  %v834_v40 = vadd.f32 %v833_v55, %v720_v51 }
  0xf1   : > { %v2638_v58 = vpop.f32.mrf.mxu1 }
  0xf2   : > { %v723_v56 = vpop.f32.mrf.mxu0  ;;  %v845_v39 = vadd.f32 %v2638_v58, %v2614_v54 }
  0xf3   : > { %v836_v41 = vpop.f32.mrf.mxu1 }
  0xf4   : > { %v2617_v57 = vpop.f32.mrf.mxu0  ;;  %v837_v47 = vadd.f32 %v836_v41, %v723_v56 }
  0xf6   : > { %v736_v33 = vpop.f32.mrf.mxu0 }
  0xf7   : > { %v2641_v34 = vpop.f32.mrf.mxu1 }
  0xf8   : > { %v2618_v52 = vpop.f32.mrf.mxu0 }
  0xf9   : > { %v849_v59 = vpop.f32.mrf.mxu1 }
  0xfa   : > { %v3438_v60 = vpop.f32.mrf.mxu0 }
  0xfb   : > { %3497 = vst [vmem:[#allocation3_spill] sm:$0xff] %v3438_v60  ;;  %v2642_v63 = vpop.f32.mrf.mxu1  ;;  %v858_v60 = vadd.f32 %v2641_v34, %v2617_v57 }
  0xfc   : > { %v861_v50 = vadd.f32 %v2642_v63, %v2618_v52 }
  0xfd   : > { %v852_v7 = vpop.f32.mrf.mxu1 }
 0x102   : > { %v3502_v56 = vld [vmem:[#allocation3_spill] sm:$0xff] }
 0x10c   : > { %v2661_v61 = vpop.f32.mrf.mxu0 }
 0x10d   : > { %v991_v45 = vadd.f32 %v2661_v61, %v842_v37 }
 0x10e   : > { %v958_v5 = vpop.f32.mrf.mxu0  ;;  %v2685_v8 = vpop.f32.mrf.mxu1 }
 0x10f   : > { %v989_v49 = vadd.f32 %v958_v5, %v834_v40  ;;  %v1124_v58 = vadd.f32 %v2685_v8, %v991_v45  ;;  %v853_v5 = vadd.f32 %v852_v7, %v3502_v56 }
 0x110   : > { %v2662_v9 = vpop.f32.mrf.mxu0  ;;  %v1091_v12 = vpop.f32.mrf.mxu1 }
 0x111   : > { %v992_v46 = vadd.f32 %v2662_v9, %v845_v39 }
 0x112   : > { %v961_v13 = vpop.f32.mrf.mxu0  ;;  %v2686_v14 = vpop.f32.mrf.mxu1 }
 0x113   : > { %v990_v53 = vadd.f32 %v961_v13, %v837_v47  ;;  %v1125_v51 = vadd.f32 %v2686_v14, %v992_v46 }
 0x114   : > { %v2665_v15 = vpop.f32.mrf.mxu0  ;;  %v1094_v0 = vpop.f32.mrf.mxu1 }
 0x115   : > { %v995_v55 = vadd.f32 %v2665_v15, %v858_v60  ;;  %v1123_v40 = vadd.f32 %v1094_v0, %v990_v53 }
 0x116   : > { %v974_v1 = vpop.f32.mrf.mxu0  ;;  %v2689_v16 = vpop.f32.mrf.mxu1 }
 0x117   : > { %v1128_v57 = vadd.f32 %v2689_v16, %v995_v55 }
 0x118   : > { %v2666_v36 = vpop.f32.mrf.mxu0  ;;  %v1107_v38 = vpop.f32.mrf.mxu1 }
 0x119   : > { %v996_v61 = vadd.f32 %v2666_v36, %v861_v50 }
 0x11a   : > { %v977_v44 = vpop.f32.mrf.mxu0  ;;  %v2690_v17 = vpop.f32.mrf.mxu1 }
 0x11b   : > { %v1129_v52 = vadd.f32 %v2690_v17, %v996_v61 }
 0x11c   : > { %v3440_v2 = vpop.f32.mrf.mxu1 }
 0x11d   : > { %3498 = vst [vmem:[#allocation4_spill] sm:$0xff] %v3440_v2 }
 0x12c   : > { %v2709_v18 = vpop.f32.mrf.mxu0 }
 0x12d   : > { %v1257_v39 = vadd.f32 %v2709_v18, %v1124_v58 }
 0x12e   : > { %v1224_v62 = vpop.f32.mrf.mxu0  ;;  %v2733_v11 = vpop.f32.mrf.mxu1 }
 0x12f   : > { %v1390_v8 = vadd.f32 %v2733_v11, %v1257_v39 }
 0x130   : > { %v2710_v48 = vpop.f32.mrf.mxu0  ;;  %v1357_v20 = vpop.f32.mrf.mxu1 }
 0x131   : > { %v1258_v41 = vadd.f32 %v2710_v48, %v1125_v51 }
 0x132   : > { %v1227_v21 = vpop.f32.mrf.mxu0  ;;  %v2734_v23 = vpop.f32.mrf.mxu1 }
 0x133   : > { %v1256_v63 = vadd.f32 %v1227_v21, %v1123_v40  ;;  %v1391_v14 = vadd.f32 %v2734_v23, %v1258_v41 }
 0x134   : > { %v2713_v24 = vpop.f32.mrf.mxu0  ;;  %v1360_v25 = vpop.f32.mrf.mxu1 }
 0x135   : > { %v1261_v60 = vadd.f32 %v2713_v24, %v1128_v57  ;;  %v1389_v0 = vadd.f32 %v1360_v25, %v1256_v63 }
 0x136   : > { %v1240_v26 = vpop.f32.mrf.mxu0  ;;  %v2737_v27 = vpop.f32.mrf.mxu1 }
 0x138   : > { %v2714_v28 = vpop.f32.mrf.mxu0  ;;  %v1373_v19 = vpop.f32.mrf.mxu1 }
 0x13a   : > { %v1243_v29 = vpop.f32.mrf.mxu0  ;;  %v2738_v30 = vpop.f32.mrf.mxu1 }
 0x13c   : > { %v3442_v22 = vpop.f32.mrf.mxu1 }
 0x13d   : > { %3499 = vst [vmem:[#allocation5_spill] sm:$0xff] %v3442_v22  ;;  %v850_v22 = vadd.f32 %v849_v59, %v736_v33  ;;  %v994_v59 = vadd.f32 %v977_v44, %v853_v5 }
 0x13f   : > { %v993_v37 = vadd.f32 %v974_v1, %v850_v22  ;;  %v1262_v1 = vadd.f32 %v2714_v28, %v1129_v52  ;;  %v3503_v22 = vld [vmem:[#allocation4_spill] sm:$0xff] }
 0x140   : > { %v1127_v7 = vadd.f32 %v3503_v22, %v994_v59 }
 0x141   : > { %v1126_v33 = vadd.f32 %v1107_v38, %v993_v37  ;;  %v1394_v38 = vadd.f32 %v2737_v27, %v1261_v60  ;;  %v1395_v21 = vadd.f32 %v2738_v30, %v1262_v1 }
 0x142   : > { %v1260_v17 = vadd.f32 %v1243_v29, %v1127_v7 }
 0x143   : > { %v1259_v15 = vadd.f32 %v1240_v26, %v1126_v33 }
 0x144   : > { %v3504_v47 = vld [vmem:[#allocation5_spill] sm:$0xff] }
 0x145   : > { %v1392_v44 = vadd.f32 %v1373_v19, %v1259_v15  ;;  %v1393_v27 = vadd.f32 %v3504_v47, %v1260_v17 }
 0x14c   : > { %v2757_v6 = vpop.f32.mrf.mxu0 }
 0x14d   : > { %v1524_v18 = vadd.f32 %v2757_v6, %v1390_v8 }
 0x14e   : > { %v2781_v31 = vpop.f32.mrf.mxu1  ;;  %v1491_v3 = vpop.f32.mrf.mxu0 }
 0x150   : > { %v1624_v4 = vpop.f32.mrf.mxu1  ;;  %v2758_v10 = vpop.f32.mrf.mxu0 }
 0x151   : > { %v1525_v48 = vadd.f32 %v2758_v10, %v1391_v14 }
 0x152   : > { %v2782_v32 = vpop.f32.mrf.mxu1  ;;  %v1494_v35 = vpop.f32.mrf.mxu0 }
 0x153   : > { %v1523_v11 = vadd.f32 %v1494_v35, %v1389_v0  ;;  %v1658_v24 = vadd.f32 %v2782_v32, %v1525_v48 }
 0x154   : > { %v3444_v42 = vpop.f32.mrf.mxu1  ;;  %v2761_v43 = vpop.f32.mrf.mxu0 }
 0x155   : > { %3500 = vst [vmem:[#allocation6_spill] sm:$0xff] %v3444_v42  ;;  %v1122_v42 = vadd.f32 %v1091_v12, %v989_v49  ;;  %v1528_v26 = vadd.f32 %v2761_v43, %v1394_v38 }
 0x156   : > { %v3446_v2 = vpop.f32.mrf.mxu1  ;;  %v1507_v54 = vpop.f32.mrf.mxu0 }
 0x157   : > { %3501 = vst [vmem:[#allocation7_spill] sm:$0xff] %v3446_v2  ;;  %v1255_v2 = vadd.f32 %v1224_v62, %v1122_v42  ;;  %v1526_v6 = vadd.f32 %v1507_v54, %v1392_v44 }
 0x158   : > { %v1640_v9 = vpop.f32.mrf.mxu1  ;;  %v2762_v34 = vpop.f32.mrf.mxu0 }
 0x159   : > { %v1388_v12 = vadd.f32 %v1357_v20, %v1255_v2  ;;  %v1657_v20 = vadd.f32 %v2781_v31, %v1524_v18  ;;  %v1529_v10 = vadd.f32 %v2762_v34, %v1395_v21  ;;  %v1659_v50 = vadd.f32 %v1640_v9, %v1526_v6 }
 0x15a   : > { %v2786_v13 = vpop.f32.mrf.mxu1  ;;  %v1510_v36 = vpop.f32.mrf.mxu0 }
 0x15b   : > { %v1522_v62 = vadd.f32 %v1491_v3, %v1388_v12  ;;  %v1527_v53 = vadd.f32 %v1510_v36, %v1393_v27  ;;  %v1662_v54 = vadd.f32 %v2786_v13, %v1529_v10 }
 0x15c   : > { %v3450_v42 = vpop.f32.mrf.mxu1  ;;  %v3505_v19 = vld [vmem:[#allocation6_spill] sm:$0xff] }
 0x15d   : > { %v1655_v28 = vadd.f32 %v1624_v4, %v1522_v62  ;;  %v1656_v29 = vadd.f32 %v3505_v19, %v1523_v11  ;;  %v1660_v22 = vadd.f32 %v3450_v42, %v1527_v53 }
 0x15e   : > { %v3506_v32 = vld [vmem:[#allocation7_spill] sm:$0xff] }
 0x15f   : > { %v1661_v35 = vadd.f32 %v3506_v32, %v1528_v26 }
 0x16c   : > { %v2805_v16 = vpop.f32.mrf.mxu0 }
 0x16d   : > { %v1790_v45 = vadd.f32 %v2805_v16, %v1657_v20 }
 0x16e   : > { %v2829_v23 = vpop.f32.mrf.mxu1  ;;  %v1757_v2 = vpop.f32.mrf.mxu0 }
 0x16f   : > { %v1788_v30 = vadd.f32 %v1757_v2, %v1655_v28  ;;  %v1852_v9 = vmul.f32 %v1790_v45, %v1790_v45  ;;  %v2089_v59 = vmul.f32 %v2829_v23, %v2829_v23 }
 0x170   : > { %v2002_v25 = vpop.f32.mrf.mxu1  ;;  %v2806_v3 = vpop.f32.mrf.mxu0 }
 0x171   : > { %v1791_v46 = vadd.f32 %v2806_v3, %v1658_v24  ;;  %v2087_v37 = vmul.f32 %v2002_v25, %v2002_v25  ;;  %v1850_v56 = vmul.f32 %v1788_v30, %v1788_v30 }
 0x172   : > { %v2830_v31 = vpop.f32.mrf.mxu1  ;;  %v1760_v4 = vpop.f32.mrf.mxu0 }
 0x173   : > { %v2434_v43 = vpack.c.bf16 %v1791_v46, %v1790_v45  ;;  %v2454_v49 = vpack.c.bf16 %v2830_v31, %v2829_v23  ;;  %v1789_v58 = vadd.f32 %v1760_v4, %v1656_v29  ;;  %v2090_v13 = vmul.f32 %v2830_v31, %v2830_v31 }
 0x174   : > { %v2005_v51 = vpop.f32.mrf.mxu1  ;;  %v2809_v55 = vpop.f32.mrf.mxu0  ;;  %v1853_v7 = vmul.f32 %v1791_v46, %v1791_v46 }
 0x175   : > { %2469 = vst [vmem:[%s3458_s25 + $0x8] sm:$0xff] %v2434_v43   ;;  %2472 = vst [vmem:[%s3464_s29 + $0x8] sm:$0xff] %v2454_v49   ;;  %v2449_v61 = vpack.c.bf16 %v2005_v51, %v2002_v25  ;;  %v2073_v39 = vadd.f32 %v2005_v51, %v2002_v25  ;;  %v2088_v41 = vmul.f32 %v2005_v51, %v2005_v51 }
 0x176   : > { %v2429_v5 = vpack.c.bf16 %v1789_v58, %v1788_v30  ;;  %v1836_v40 = vadd.f32 %v1789_v58, %v1788_v30  ;;  %v1851_v34 = vmul.f32 %v1789_v58, %v1789_v58  ;;  %v2833_v57 = vpop.f32.mrf.mxu1  ;;  %v1773_v33 = vpop.f32.mrf.mxu0  ;;  %v1794_v36 = vadd.f32 %v2809_v55, %v1661_v35 }
 0x177   : > { %2450 = vst [vmem:[%s3464_s29] sm:$0xff] %v2449_v61   ;;  %v2074_v52 = vadd.f32 %v2829_v23, %v2073_v39  ;;  %v2095_v63 = vadd.f32 %v2088_v41, %v2087_v37  ;;  %v1792_v60 = vadd.f32 %v1773_v33, %v1659_v50  ;;  %v2093_v19 = vmul.f32 %v2833_v57, %v2833_v57 }
 0x178   : > { %2430 = vst [vmem:[%s3458_s25] sm:$0xff] %v2429_v5   ;;  %v1837_v8 = vadd.f32 %v1836_v40, %v1790_v45  ;;  %v1858_v14 = vadd.f32 %v1851_v34, %v1850_v56  ;;  %v2018_v12 = vpop.f32.mrf.mxu1  ;;  %v2810_v15 = vpop.f32.mrf.mxu0  ;;  %v1856_v30 = vmul.f32 %v1794_v36, %v1794_v36 }
 0x179   : > { %v2096_v1 = vadd.f32 %v2095_v63, %v2089_v59  ;;  %v2075_v18 = vadd.f32 %v2830_v31, %v2074_v52  ;;  %v1795_v48 = vadd.f32 %v2810_v15, %v1662_v54  ;;  %v2091_v17 = vmul.f32 %v2018_v12, %v2018_v12 }
 0x17a   : > { %v1859_v0 = vadd.f32 %v1858_v14, %v1852_v9  ;;  %v1838_v62 = vadd.f32 %v1837_v8, %v1791_v46  ;;  %v2834_v16 = vpop.f32.mrf.mxu1  ;;  %v1776_v38 = vpop.f32.mrf.mxu0  ;;  %v1854_v2 = vmul.f32 %v1792_v60, %v1792_v60 }
 0x17b   : > { %v2076_v44 = vadd.f32 %v2075_v18, %v2018_v12  ;;  %v2097_v21 = vadd.f32 %v2096_v1, %v2090_v13  ;;  %v2444_v11 = vpack.c.bf16 %v1795_v48, %v1794_v36  ;;  %v2464_v24 = vpack.c.bf16 %v2834_v16, %v2833_v57 }
 0x17c   : > { %v1839_v23 = vadd.f32 %v1838_v62, %v1792_v60  ;;  %v1860_v20 = vadd.f32 %v1859_v0, %v1853_v7  ;;  %v2021_v26 = vpop.f32.mrf.mxu1  ;;  %v1793_v42 = vadd.f32 %v1776_v38, %v1660_v22  ;;  %v2094_v35 = vmul.f32 %v2834_v16, %v2834_v16 }
 0x17d   : > { %v2098_v28 = vadd.f32 %v2097_v21, %v2091_v17  ;;  %2471 = vst [vmem:[%s3458_s25 + $0x18] sm:$0xff] %v2444_v11   ;;  %v2459_v6 = vpack.c.bf16 %v2021_v26, %v2018_v12  ;;  %v2077_v10 = vadd.f32 %v2076_v44, %v2021_v26  ;;  %2474 = vst [vmem:[%s3464_s29 + $0x18] sm:$0xff] %v2464_v24  }
 0x17e   : > { %v1861_v25 = vadd.f32 %v1860_v20, %v1854_v2  ;;  %v2092_v3 = vmul.f32 %v2021_v26, %v2021_v26  ;;  %v2439_v45 = vpack.c.bf16 %v1793_v42, %v1792_v60  ;;  %v1840_v46 = vadd.f32 %v1839_v23, %v1793_v42 }
 0x17f   : > { %v1855_v47 = vmul.f32 %v1793_v42, %v1793_v42  ;;  %2473 = vst [vmem:[%s3464_s29 + $0x10] sm:$0xff] %v2459_v6   ;;  %v2078_v27 = vadd.f32 %v2833_v57, %v2077_v10  ;;  %v1857_v49 = vmul.f32 %v1795_v48, %v1795_v48 }
 0x180   : > { %v2099_v29 = vadd.f32 %v2098_v28, %v2092_v3  ;;  %2470 = vst [vmem:[%s3458_s25 + $0x10] sm:$0xff] %v2439_v45   ;;  %v1841_v31 = vadd.f32 %v1840_v46, %v1794_v36 }
 0x181   : > { %v1862_v4 = vadd.f32 %v1861_v25, %v1855_v47  ;;  %v2079_v32 = vadd.f32 %v2834_v16, %v2078_v27 }
 0x182   : > { %v2100_v43 = vadd.f32 %v2099_v29, %v2093_v19  ;;  %v1842_v50 = vadd.f32 %v1841_v31, %v1795_v48 }
 0x183   : > { %v1863_v53 = vadd.f32 %v1862_v4, %v1856_v30  ;;  %v2080_v54 = vrot.slane %v2079_v32, 4 }
 0x184   : > { %v2101_v58 = vadd.f32 %v2100_v43, %v2094_v35  ;;  %v1843_v51 = vrot.slane %v1842_v50, 4 }
 0x185   : > { %v1864_v55 = vadd.f32 %v1863_v53, %v1857_v49  ;;  %v2081_v37 = vadd.f32 %v2080_v54, %v2079_v32 }
 0x186   : > { %v2102_v61 = vrot.slane %v2101_v58, 4  ;;  %v1844_v39 = vadd.f32 %v1843_v51, %v1842_v50 }
 0x187   : > { %v1865_v41 = vrot.slane %v1864_v55, 4  ;;  %v2082_v56 = vrot.slane %v2081_v37, 2 }
 0x188   : > { %v2103_v5 = vadd.f32 %v2102_v61, %v2101_v58  ;;  %v1845_v40 = vrot.slane %v1844_v39, 2 }
 0x189   : > { %v1866_v34 = vadd.f32 %v1865_v41, %v1864_v55  ;;  %v2083_v57 = vadd.f32 %v2082_v56, %v2081_v37 }
 0x18a   : > { %v2104_v33 = vrot.slane %v2103_v5, 2  ;;  %v1846_v9 = vadd.f32 %v1845_v40, %v1844_v39 }
 0x18b   : > { %v1867_v59 = vrot.slane %v1866_v34, 2  ;;  %v2084_v52 = vrot.slane %v2083_v57, 1 }
 0x18c   : > { %v2105_v63 = vadd.f32 %v2104_v33, %v2103_v5  ;;  %v1847_v13 = vrot.slane %v1846_v9, 1 }
 0x18d   : > { %v1868_v8 = vadd.f32 %v1867_v59, %v1866_v34  ;;  %v2085_v14 = vadd.f32 %v2084_v52, %v2083_v57 }
 0x18e   : > { %v2106_v60 = vrot.slane %v2105_v63, 1  ;;  %v1848_v12 = vadd.f32 %v1847_v13, %v1846_v9 }
 0x18f   : > { %v1869_v15 = vrot.slane %v1868_v8, 1  ;;  %2086 = vst [vmem:[%s385_s13] sm:$0x1] %v2085_v14 }
 0x190   : > { %v2107_v1 = vadd.f32 %v2106_v60, %v2105_v63  ;;  %1849 = vst [vmem:[%s381_s17] sm:$0x1] %v1848_v12 }
 0x191   : > { %v1870_v36 = vadd.f32 %v1869_v15, %v1868_v8 }
 0x192   : > { %2108 = vst [vmem:[%s385_s13 + $0x1] sm:$0x1] %v2107_v1 }
 0x193   : > { %1871 = vst [vmem:[%s381_s17 + $0x1] sm:$0x1] %v1870_v36 }
 0x194 PF: > { %s20_s30 = sadd.s32 1, %s2934_s30  }
 0x195   : > { %p17_p4 = scmp.ge.s32.totalorder %s20_s30, 4  }
 0x197   :  { %19 = sbr.rel (!%p17_p4) target bundleno = 1 (0x1), region = 115 }

</bundles_post_ra>
